<compile_context>
chip_gen: v7x
topology: tpu7x:2x2x1
jax: 0.10.0
libtpu: 0.0.40
codegen_flags: <defaults>
</compile_context>

<pallas_src>
import jax
import jax.numpy as jnp
from jax.experimental import pallas as pl
from jax.experimental.pallas import tpu as pltpu

# ----------------------------- configuration -----------------------------
B = 2                      # batch
C = 4                      # image channels
H = W = 16                 # image spatial
PATCH = 4                  # conv_proj kernel == stride
N_PATCH = (H // PATCH) * (W // PATCH)   # 16 patches
SEQ = N_PATCH + 1                        # + class token = 17 real tokens
SEQ_PAD = 24                             # padded to a multiple of 8 sublanes
TOK = B * SEQ_PAD                        # flat (padded) token count = 48
DIM = 32                   # hidden dim (stands in for 768)
NUM_HEADS = 4
HEAD_DIM = DIM // NUM_HEADS
SCALE = HEAD_DIM ** -0.5
MLP_DIM = 4 * DIM
ADAPTER_DIM = DIM // 4
NUM_LAYERS = 2             # stands in for the 12 ViT-B layers
NUM_CLASSES = 10
LN_EPS_VIT = 1e-6          # torchvision ViT encoder LayerNorm eps
LN_EPS_ADAPTER = 1e-5      # nn.LayerNorm default eps
NEG_INF = -1e30

# packed small-vector table: one (12, VEC_PAD) slab per layer (1 DMA instead of 12)
VEC_PAD = max(MLP_DIM, 3 * DIM)          # 128
(R_LN1_W, R_LN1_B, R_LN2_W, R_LN2_B, R_AN_W, R_AN_B,
 R_B_QKV, R_B_O, R_B_MLP1, R_B_MLP2, R_B_DOWN, R_B_UP) = range(12)
N_VEC = 12


# ------------------------------ kernel helpers ------------------------------
def _layernorm(v, w, b, eps):
    mu = jnp.mean(v, axis=-1, keepdims=True)
    var = jnp.mean(jnp.square(v - mu), axis=-1, keepdims=True)
    return (v - mu) * jax.lax.rsqrt(var + eps) * w + b


def _softmax_rows(s):
    m = jnp.max(s, axis=-1, keepdims=True)
    e = jnp.exp(s - m)
    return e / jnp.sum(e, axis=-1, keepdims=True)    # exact divide (parity)


def _bf16(v):
    return v.astype(jnp.bfloat16)


# ------------------------------ fused forward kernel ------------------------------
def _vit_forward_kernel(xp_ref, conv_w_ref, conv_b_ref, cls_ref, pos_ref,
                        fc_w_ref, fc_b_ref, mask_ref,
                        vec_ref, wqkv_ref, wo_ref, wm1_ref, wm2_ref,
                        wd_ref, wu_ref,
                        logits_ref, act_ref, attn_ref):
    layer = pl.program_id(0)

    # ---- patch embedding + cls token + pos embedding (first grid step only) ----
    @pl.when(layer == 0)
    def _():
        # zero the whole (padded) activation so pad rows stay finite through every layer
        act_ref[...] = jnp.zeros_like(act_ref)
        tok = (jnp.dot(_bf16(xp_ref[...]), conv_w_ref[...],
                       preferred_element_type=jnp.float32) + conv_b_ref[...])
        cls = cls_ref[...]                      # (1, DIM)
        pos = pos_ref[...]                      # (SEQ, DIM)
        for b in range(B):                      # static: B = 2, direct row-range stores
            base = b * SEQ_PAD                  # sublane-aligned (multiple of 8)
            act_ref[pl.ds(base, 1), :] = cls + pos[0:1]
            act_ref[pl.ds(base + 1, N_PATCH), :] = (
                tok[b * N_PATCH:(b + 1) * N_PATCH] + pos[1:SEQ])
        # encoder dropout: identity at inference

    # ---- one encoder block + adapter on the flat (TOK, DIM) activation ----
    vec = vec_ref[0]                            # (N_VEC, VEC_PAD)

    def vrow(r, width):
        return vec[r:r + 1, :width]             # (1, width), broadcasts over tokens

    x = act_ref[...]                            # (TOK, DIM) f32
    mask = mask_ref[...]                        # (TOK, TOK) additive: 0 / -1e30

    # self-attention sub-block (pre-LN)
    h = _layernorm(x, vrow(R_LN1_W, DIM), vrow(R_LN1_B, DIM), LN_EPS_VIT)
    qkv = (jnp.dot(_bf16(h), wqkv_ref[0], preferred_element_type=jnp.float32)
           + vrow(R_B_QKV, 3 * DIM))            # (TOK, 3*DIM) f32

    q_all = _bf16(qkv[:, 0 * DIM:1 * DIM])
    k_all = _bf16(qkv[:, 1 * DIM:2 * DIM])
    v_all = _bf16(qkv[:, 2 * DIM:3 * DIM])
    for hh in range(NUM_HEADS):                 # static: 4 heads, batched over all TOK
        lo = hh * HEAD_DIM
        q = q_all[:, lo:lo + HEAD_DIM]
        k = k_all[:, lo:lo + HEAD_DIM]
        v = v_all[:, lo:lo + HEAD_DIM]
        # q @ k^T over ALL tokens; block-diagonal mask removes cross-sequence and
        # padded-key attention (no materialized transpose, no per-batch slicing)
        s = jax.lax.dot_general(q, k, (((1,), (1,)), ((), ())),
                                preferred_element_type=jnp.float32) * SCALE + mask
        p = _softmax_rows(s)
        # write this head's output directly into its lane range (no concatenates)
        attn_ref[:, lo:lo + HEAD_DIM] = jnp.dot(_bf16(p), v,
                                                preferred_element_type=jnp.float32)

    attn = (jnp.dot(_bf16(attn_ref[...]), wo_ref[0],
                    preferred_element_type=jnp.float32) + vrow(R_B_O, DIM))
    x2 = x + attn                                               # residual

    # MLP sub-block (pre-LN)
    y = _layernorm(x2, vrow(R_LN2_W, DIM), vrow(R_LN2_B, DIM), LN_EPS_VIT)
    y = (jnp.dot(_bf16(y), wm1_ref[0], preferred_element_type=jnp.float32)
         + vrow(R_B_MLP1, MLP_DIM))
    y = jax.nn.gelu(y, approximate=True)        # tanh GELU -> EUP (frees VALU slot)
    y = (jnp.dot(_bf16(y), wm2_ref[0], preferred_element_type=jnp.float32)
         + vrow(R_B_MLP2, DIM))
    x3 = x2 + y                                                 # block output

    # invariant adapter: down -> GELU -> up, then LayerNorm(x + inv)
    inv = (jnp.dot(_bf16(x3), wd_ref[0], preferred_element_type=jnp.float32)
           + vrow(R_B_DOWN, ADAPTER_DIM))
    inv = jax.nn.gelu(inv, approximate=True)
    inv = (jnp.dot(_bf16(inv), wu_ref[0], preferred_element_type=jnp.float32)
           + vrow(R_B_UP, DIM))
    out = _layernorm(x3 + inv, vrow(R_AN_W, DIM), vrow(R_AN_B, DIM), LN_EPS_ADAPTER)

    act_ref[...] = out                                          # carry to next layer

    # ---- classification head on CLS tokens (last grid step only) ----
    @pl.when(layer == pl.num_programs(0) - 1)
    def _():
        # CLS rows sit at sublane-aligned offsets b*SEQ_PAD
        feat = jnp.concatenate([out[b * SEQ_PAD:b * SEQ_PAD + 1] for b in range(B)],
                               axis=0)                           # (B, DIM)
        logits_ref[...] = (jnp.dot(_bf16(feat), fc_w_ref[...],
                                   preferred_element_type=jnp.float32)
                           + fc_b_ref[...]).astype(logits_ref.dtype)


# --------------------------------- wrapper ---------------------------------
def vit_forward(x_nchw, params):
    Bn = x_nchw.shape[0]
    # patchify (glue): NCHW -> [B*N_PATCH, C*PATCH*PATCH], matching Conv2d(k=p, s=p)
    xp = x_nchw.reshape(Bn, C, H // PATCH, PATCH, W // PATCH, PATCH)
    xp = xp.transpose(0, 2, 4, 1, 3, 5).reshape(Bn * N_PATCH, C * PATCH * PATCH)

    # block-diagonal additive attention mask over the padded, flattened token axis:
    # valid iff (same sequence block) and (key is a real, non-pad token)
    row = jnp.arange(TOK)
    same_seq = (row[:, None] // SEQ_PAD) == (row[None, :] // SEQ_PAD)
    key_real = (row[None, :] % SEQ_PAD) < SEQ
    mask = jnp.where(same_seq & key_real, 0.0, NEG_INF).astype(jnp.float32)

    def full_spec(a):
        return pl.BlockSpec(a.shape, lambda l, _n=a.ndim: (0,) * _n)

    def layer_spec(a):
        return pl.BlockSpec((1,) + a.shape[1:], lambda l: (l, 0, 0))

    fixed = [xp, params['conv_w'], params['conv_b'], params['cls_token'],
             params['pos_emb'], params['fc_w'], params['fc_b'], mask]
    stacked = [params['vecs'], params['w_qkv'], params['w_o'],
               params['w_mlp1'], params['w_mlp2'],
               params['w_down'], params['w_up']]

    # advisory cost estimate for XLA scheduling around the custom call
    per_layer_flops = 2 * TOK * DIM * (3 * DIM + DIM + MLP_DIM + ADAPTER_DIM) \
        + 2 * TOK * MLP_DIM * DIM + 2 * TOK * ADAPTER_DIM * DIM \
        + NUM_HEADS * (2 * TOK * TOK * HEAD_DIM) * 2
    flops = NUM_LAYERS * per_layer_flops \
        + 2 * (Bn * N_PATCH) * (C * PATCH * PATCH) * DIM \
        + 2 * Bn * DIM * NUM_CLASSES
    transcendentals = NUM_LAYERS * (NUM_HEADS * TOK * TOK
                                    + TOK * (MLP_DIM + ADAPTER_DIM) + 3 * TOK)
    bytes_accessed = sum(int(a.size) * a.dtype.itemsize for a in fixed + stacked) \
        + Bn * NUM_CLASSES * 4

    return pl.pallas_call(
        _vit_forward_kernel,
        out_shape=jax.ShapeDtypeStruct((Bn, NUM_CLASSES), jnp.float32),
        grid=(NUM_LAYERS,),
        in_specs=[full_spec(a) for a in fixed] + [layer_spec(a) for a in stacked],
        out_specs=pl.BlockSpec((Bn, NUM_CLASSES), lambda l: (0, 0)),
        scratch_shapes=[pltpu.VMEM((TOK, DIM), jnp.float32),   # running activation
                        pltpu.VMEM((TOK, DIM), jnp.float32)],  # per-layer attention out
        compiler_params=pltpu.CompilerParams(
            dimension_semantics=("arbitrary",),   # layers carry a dependency
            vmem_limit_bytes=48 * 1024 * 1024),   # raise scoped limit; < v7x 64 MiB
        cost_estimate=pl.CostEstimate(flops=flops,
                                      transcendentals=transcendentals,
                                      bytes_accessed=bytes_accessed),
    )(*fixed, *stacked)


# --------------------------- parameter construction ---------------------------
def init_params(key):
    def dense(k, fan_in, fan_out, scale=0.02):
        k1, k2 = jax.random.split(k)
        w = jax.random.normal(k1, (fan_in, fan_out), jnp.float32) * scale
        b = jax.random.normal(k2, (fan_out,), jnp.float32) * 0.01
        return w, b

    keys = jax.random.split(key, 4 + NUM_LAYERS)
    p = {}

    # conv_proj: Conv2d(C, DIM, kernel=PATCH, stride=PATCH) == linear on patches
    cw, cb = dense(keys[0], C * PATCH * PATCH, DIM)
    p['conv_w'], p['conv_b'] = cw.astype(jnp.bfloat16), cb.reshape(1, DIM)
    p['cls_token'] = jax.random.normal(keys[1], (1, DIM), jnp.float32) * 0.02
    p['pos_emb'] = jax.random.normal(keys[2], (SEQ, DIM), jnp.float32) * 0.02
    fw, fb = dense(keys[3], DIM, NUM_CLASSES)
    p['fc_w'], p['fc_b'] = fw.astype(jnp.bfloat16), fb.reshape(1, NUM_CLASSES)

    vecs, wqkv, wo, wm1, wm2, wd, wu = [], [], [], [], [], [], []
    for li in range(NUM_LAYERS):
        lk = jax.random.split(keys[4 + li], 6)
        w_qkv, b_qkv = dense(lk[0], DIM, 3 * DIM)
        w_o, b_o = dense(lk[1], DIM, DIM)
        w_mlp1, b_mlp1 = dense(lk[2], DIM, MLP_DIM)
        w_mlp2, b_mlp2 = dense(lk[3], MLP_DIM, DIM)
        w_down, b_down = dense(lk[4], DIM, ADAPTER_DIM)
        w_up, b_up = dense(lk[5], ADAPTER_DIM, DIM)
        ones, zeros = jnp.ones((DIM,), jnp.float32), jnp.zeros((DIM,), jnp.float32)
        rows = [ones, zeros,      # ln1 w/b
                ones, zeros,      # ln2 w/b
                ones, zeros,      # adapter-norm w/b
                b_qkv, b_o, b_mlp1, b_mlp2, b_down, b_up]
        vec = jnp.stack([jnp.pad(r, (0, VEC_PAD - r.shape[0])) for r in rows])
        vecs.append(vec)
        wqkv.append(w_qkv); wo.append(w_o)
        wm1.append(w_mlp1); wm2.append(w_mlp2)
        wd.append(w_down); wu.append(w_up)

    # biases / LN vectors stay f32 (packed); weights stored bf16 for MXU + DMA
    p['vecs'] = jnp.stack(vecs)                               # (L, 12, 128) f32
    p['w_qkv'] = jnp.stack(wqkv).astype(jnp.bfloat16)         # (L, DIM, 3*DIM)
    p['w_o'] = jnp.stack(wo).astype(jnp.bfloat16)             # (L, DIM, DIM)
    p['w_mlp1'] = jnp.stack(wm1).astype(jnp.bfloat16)         # (L, DIM, MLP_DIM)
    p['w_mlp2'] = jnp.stack(wm2).astype(jnp.bfloat16)         # (L, MLP_DIM, DIM)
    p['w_down'] = jnp.stack(wd).astype(jnp.bfloat16)          # (L, DIM, ADAPTER_DIM)
    p['w_up'] = jnp.stack(wu).astype(jnp.bfloat16)            # (L, ADAPTER_DIM, DIM)
    return p


if __name__ == "__main__":
    key = jax.random.PRNGKey(0)
    k_param, k_in = jax.random.split(key)
    params = init_params(k_param)
    x = jax.random.normal(k_in, (B, C, H, W), jnp.float32)    # NCHW like PyTorch

    fwd = jax.jit(vit_forward)
    logits = fwd(x, params)
    logits = jax.block_until_ready(logits)

    assert logits.shape == (B, NUM_CLASSES)
    assert bool(jnp.all(jnp.isfinite(logits)))
    print("KERNEL_OK")
</pallas_src>

<mosaic_0001>
module attributes {stable_mosaic.version = 11 : i64} {
  func.func @_vit_forward_kernel(%arg0: i32, %arg1: memref<32x64xf32, #tpu.memory_space<vmem>>, %arg2: memref<64x32xbf16, #tpu.memory_space<vmem>>, %arg3: memref<1x32xf32, #tpu.memory_space<vmem>>, %arg4: memref<1x32xf32, #tpu.memory_space<vmem>>, %arg5: memref<17x32xf32, #tpu.memory_space<vmem>>, %arg6: memref<32x10xbf16, #tpu.memory_space<vmem>>, %arg7: memref<1x10xf32, #tpu.memory_space<vmem>>, %arg8: memref<48x48xf32, #tpu.memory_space<vmem>>, %arg9: memref<1x12x128xf32, #tpu.memory_space<vmem>>, %arg10: memref<1x32x96xbf16, #tpu.memory_space<vmem>>, %arg11: memref<1x32x32xbf16, #tpu.memory_space<vmem>>, %arg12: memref<1x32x128xbf16, #tpu.memory_space<vmem>>, %arg13: memref<1x128x32xbf16, #tpu.memory_space<vmem>>, %arg14: memref<1x32x8xbf16, #tpu.memory_space<vmem>>, %arg15: memref<1x8x32xbf16, #tpu.memory_space<vmem>>, %arg16: memref<2x10xf32, #tpu.memory_space<vmem>>, %arg17: memref<48x32xf32, #tpu.memory_space<vmem>>, %arg18: memref<48x32xf32, #tpu.memory_space<vmem>>) attributes {dimension_semantics = [#tpu.dimension_semantics<arbitrary>], iteration_bounds = array<i64: 2>, scalar_prefetch = 0 : i64, scratch_operands = 2 : i64, tpu.core_type = #tpu.core_type<tc>, window_params = [{pipeline_mode = #tpu.pipeline_mode<synchronous>, transform_indices = @transform_0, window_bounds = array<i64: 32, 64>}, {pipeline_mode = #tpu.pipeline_mode<synchronous>, transform_indices = @transform_1, window_bounds = array<i64: 64, 32>}, {pipeline_mode = #tpu.pipeline_mode<synchronous>, transform_indices = @transform_2, window_bounds = array<i64: 1, 32>}, {pipeline_mode = #tpu.pipeline_mode<synchronous>, transform_indices = @transform_3, window_bounds = array<i64: 1, 32>}, {pipeline_mode = #tpu.pipeline_mode<synchronous>, transform_indices = @transform_4, window_bounds = array<i64: 17, 32>}, {pipeline_mode = #tpu.pipeline_mode<synchronous>, transform_indices = @transform_5, window_bounds = array<i64: 32, 10>}, {pipeline_mode = #tpu.pipeline_mode<synchronous>, transform_indices = @transform_6, window_bounds = array<i64: 1, 10>}, {pipeline_mode = #tpu.pipeline_mode<synchronous>, transform_indices = @transform_7, window_bounds = array<i64: 48, 48>}, {transform_indices = @transform_8, window_bounds = array<i64: 1, 12, 128>}, {transform_indices = @transform_9, window_bounds = array<i64: 1, 32, 96>}, {transform_indices = @transform_10, window_bounds = array<i64: 1, 32, 32>}, {transform_indices = @transform_11, window_bounds = array<i64: 1, 32, 128>}, {transform_indices = @transform_12, window_bounds = array<i64: 1, 128, 32>}, {transform_indices = @transform_13, window_bounds = array<i64: 1, 32, 8>}, {transform_indices = @transform_14, window_bounds = array<i64: 1, 8, 32>}, {pipeline_mode = #tpu.pipeline_mode<synchronous>, transform_indices = @transform_15, window_bounds = array<i64: 2, 10>}]} {
    %c0_i32 = arith.constant 0 : i32
    %0 = arith.cmpi eq, %arg0, %c0_i32 : i32
    %1 = arith.extui %0 : i1 to i32
    %c0_i32_0 = arith.constant 0 : i32
    %2 = arith.cmpi ne, %1, %c0_i32_0 : i32
    scf.if %2 {
      %cst_83 = arith.constant 0.000000e+00 : f32
      %237 = vector.broadcast %cst_83 : f32 to vector<48x32xf32>
      %c0_84 = arith.constant 0 : index
      %c0_85 = arith.constant 0 : index
      %238 = vector.load %arg17[%c0_84, %c0_85] : memref<48x32xf32, #tpu.memory_space<vmem>>, vector<48x32xf32>
      tpu.vector_store %arg17[%c0_84, %c0_85], %237 {strides = array<i32>} : memref<48x32xf32, #tpu.memory_space<vmem>>, vector<48x32xf32>,
      %c0_86 = arith.constant 0 : index
      %c0_87 = arith.constant 0 : index
      %239 = vector.load %arg1[%c0_86, %c0_87] : memref<32x64xf32, #tpu.memory_space<vmem>>, vector<32x64xf32>
      %240 = arith.truncf %239 : vector<32x64xf32> to vector<32x64xbf16>
      %c0_88 = arith.constant 0 : index
      %c0_89 = arith.constant 0 : index
      %241 = vector.load %arg2[%c0_88, %c0_89] : memref<64x32xbf16, #tpu.memory_space<vmem>>, vector<64x32xbf16>
      %cst_90 = arith.constant dense<0.000000e+00> : vector<32x32xf32>
      %242 = tpu.matmul %240, %241, %cst_90 {dimension_numbers = #tpu.dot_dimension_numbers<[1], [0], [0], [1], [0, 0, 1, 1], [], []>} : vector<32x64xbf16>, vector<64x32xbf16>, vector<32x32xf32> -> vector<32x32xf32>
      %c0_91 = arith.constant 0 : index
      %c0_92 = arith.constant 0 : index
      %243 = vector.load %arg3[%c0_91, %c0_92] : memref<1x32xf32, #tpu.memory_space<vmem>>, vector<1x32xf32>
      %244 = vector.broadcast %243 : vector<1x32xf32> to vector<32x32xf32>
      %245 = arith.addf %242, %244 : vector<32x32xf32>
      %c0_93 = arith.constant 0 : index
      %c0_94 = arith.constant 0 : index
      %246 = vector.load %arg4[%c0_93, %c0_94] : memref<1x32xf32, #tpu.memory_space<vmem>>, vector<1x32xf32>
      %c0_95 = arith.constant 0 : index
      %c0_96 = arith.constant 0 : index
      %247 = vector.load %arg5[%c0_95, %c0_96] : memref<17x32xf32, #tpu.memory_space<vmem>>, vector<17x32xf32>
      %248 = vector.extract_strided_slice %247 {offsets = [0, 0], sizes = [1, 32], strides = [1, 1]} : vector<17x32xf32> to vector<1x32xf32>
      %249 = arith.addf %246, %248 : vector<1x32xf32>
      %c0_97 = arith.constant 0 : index
      %c0_98 = arith.constant 0 : index
      %250 = vector.load %arg17[%c0_97, %c0_98] : memref<48x32xf32, #tpu.memory_space<vmem>>, vector<1x32xf32>
      tpu.vector_store %arg17[%c0_97, %c0_98], %249 {strides = array<i32>} : memref<48x32xf32, #tpu.memory_space<vmem>>, vector<1x32xf32>,
      %251 = vector.extract_strided_slice %245 {offsets = [0, 0], sizes = [16, 32], strides = [1, 1]} : vector<32x32xf32> to vector<16x32xf32>
      %252 = vector.extract_strided_slice %247 {offsets = [1, 0], sizes = [16, 32], strides = [1, 1]} : vector<17x32xf32> to vector<16x32xf32>
      %253 = arith.addf %251, %252 : vector<16x32xf32>
      %c1 = arith.constant 1 : index
      %c0_99 = arith.constant 0 : index
      %254 = vector.load %arg17[%c1, %c0_99] : memref<48x32xf32, #tpu.memory_space<vmem>>, vector<16x32xf32>
      tpu.vector_store %arg17[%c1, %c0_99], %253 {strides = array<i32>} : memref<48x32xf32, #tpu.memory_space<vmem>>, vector<16x32xf32>,
      %255 = vector.extract_strided_slice %247 {offsets = [0, 0], sizes = [1, 32], strides = [1, 1]} : vector<17x32xf32> to vector<1x32xf32>
      %256 = arith.addf %246, %255 : vector<1x32xf32>
      %c24_100 = arith.constant 24 : index
      %c0_101 = arith.constant 0 : index
      %257 = vector.load %arg17[%c24_100, %c0_101] : memref<48x32xf32, #tpu.memory_space<vmem>>, vector<1x32xf32>
      tpu.vector_store %arg17[%c24_100, %c0_101], %256 {strides = array<i32>} : memref<48x32xf32, #tpu.memory_space<vmem>>, vector<1x32xf32>,
      %258 = vector.extract_strided_slice %245 {offsets = [16, 0], sizes = [16, 32], strides = [1, 1]} : vector<32x32xf32> to vector<16x32xf32>
      %259 = vector.extract_strided_slice %247 {offsets = [1, 0], sizes = [16, 32], strides = [1, 1]} : vector<17x32xf32> to vector<16x32xf32>
      %260 = arith.addf %258, %259 : vector<16x32xf32>
      %c25 = arith.constant 25 : index
      %c0_102 = arith.constant 0 : index
      %261 = vector.load %arg17[%c25, %c0_102] : memref<48x32xf32, #tpu.memory_space<vmem>>, vector<16x32xf32>
      tpu.vector_store %arg17[%c25, %c0_102], %260 {strides = array<i32>} : memref<48x32xf32, #tpu.memory_space<vmem>>, vector<16x32xf32>,
    } else {
    }
    %c0 = arith.constant 0 : index
    %c0_1 = arith.constant 0 : index
    %c0_2 = arith.constant 0 : index
    %3 = vector.load %arg9[%c0, %c0_1, %c0_2] : memref<1x12x128xf32, #tpu.memory_space<vmem>>, vector<1x12x128xf32>
    %4 = vector.shape_cast %3 : vector<1x12x128xf32> to vector<12x128xf32>
    %c0_3 = arith.constant 0 : index
    %c0_4 = arith.constant 0 : index
    %5 = vector.load %arg17[%c0_3, %c0_4] : memref<48x32xf32, #tpu.memory_space<vmem>>, vector<48x32xf32>
    %c0_5 = arith.constant 0 : index
    %c0_6 = arith.constant 0 : index
    %6 = vector.load %arg8[%c0_5, %c0_6] : memref<48x48xf32, #tpu.memory_space<vmem>>, vector<48x48xf32>
    %7 = vector.extract_strided_slice %4 {offsets = [0, 0], sizes = [1, 32], strides = [1, 1]} : vector<12x128xf32> to vector<1x32xf32>
    %8 = vector.extract_strided_slice %4 {offsets = [1, 0], sizes = [1, 32], strides = [1, 1]} : vector<12x128xf32> to vector<1x32xf32>
    %cst = arith.constant dense<0.000000e+00> : vector<48xf32>
    %9 = vector.multi_reduction <add>, %5, %cst [1] : vector<48x32xf32> to vector<48xf32>
    %10 = vector.shape_cast %9 : vector<48xf32> to vector<48x1xf32>
    %cst_7 = arith.constant 3.200000e+01 : f32
    %11 = vector.broadcast %cst_7 : f32 to vector<48x1xf32>
    %12 = arith.divf %10, %11 : vector<48x1xf32>
    %13 = vector.broadcast %12 : vector<48x1xf32> to vector<48x32xf32>
    %14 = arith.subf %5, %13 : vector<48x32xf32>
    %15 = arith.mulf %14, %14 : vector<48x32xf32>
    %cst_8 = arith.constant dense<0.000000e+00> : vector<48xf32>
    %16 = vector.multi_reduction <add>, %15, %cst_8 [1] : vector<48x32xf32> to vector<48xf32>
    %17 = vector.shape_cast %16 : vector<48xf32> to vector<48x1xf32>
    %cst_9 = arith.constant 3.200000e+01 : f32
    %18 = vector.broadcast %cst_9 : f32 to vector<48x1xf32>
    %19 = arith.divf %17, %18 : vector<48x1xf32>
    %20 = vector.broadcast %12 : vector<48x1xf32> to vector<48x32xf32>
    %21 = arith.subf %5, %20 : vector<48x32xf32>
    %cst_10 = arith.constant 9.99999997E-7 : f32
    %22 = vector.broadcast %cst_10 : f32 to vector<48x1xf32>
    %23 = arith.addf %19, %22 : vector<48x1xf32>
    %24 = math.rsqrt %23 : vector<48x1xf32>
    %25 = vector.broadcast %24 : vector<48x1xf32> to vector<48x32xf32>
    %26 = arith.mulf %21, %25 : vector<48x32xf32>
    %27 = vector.broadcast %7 : vector<1x32xf32> to vector<48x32xf32>
    %28 = arith.mulf %26, %27 : vector<48x32xf32>
    %29 = vector.broadcast %8 : vector<1x32xf32> to vector<48x32xf32>
    %30 = arith.addf %28, %29 : vector<48x32xf32>
    %31 = arith.truncf %30 : vector<48x32xf32> to vector<48x32xbf16>
    %c0_11 = arith.constant 0 : index
    %c0_12 = arith.constant 0 : index
    %c0_13 = arith.constant 0 : index
    %32 = vector.load %arg10[%c0_11, %c0_12, %c0_13] : memref<1x32x96xbf16, #tpu.memory_space<vmem>>, vector<1x32x96xbf16>
    %33 = vector.shape_cast %32 : vector<1x32x96xbf16> to vector<32x96xbf16>
    %cst_14 = arith.constant dense<0.000000e+00> : vector<48x96xf32>
    %34 = tpu.matmul %31, %33, %cst_14 {dimension_numbers = #tpu.dot_dimension_numbers<[1], [0], [0], [1], [0, 0, 1, 1], [], []>} : vector<48x32xbf16>, vector<32x96xbf16>, vector<48x96xf32> -> vector<48x96xf32>
    %35 = vector.extract_strided_slice %4 {offsets = [6, 0], sizes = [1, 96], strides = [1, 1]} : vector<12x128xf32> to vector<1x96xf32>
    %36 = vector.broadcast %35 : vector<1x96xf32> to vector<48x96xf32>
    %37 = arith.addf %34, %36 : vector<48x96xf32>
    %38 = vector.extract_strided_slice %37 {offsets = [0, 0], sizes = [48, 32], strides = [1, 1]} : vector<48x96xf32> to vector<48x32xf32>
    %39 = arith.truncf %38 : vector<48x32xf32> to vector<48x32xbf16>
    %40 = vector.extract_strided_slice %37 {offsets = [0, 32], sizes = [48, 32], strides = [1, 1]} : vector<48x96xf32> to vector<48x32xf32>
    %41 = arith.truncf %40 : vector<48x32xf32> to vector<48x32xbf16>
    %42 = vector.extract_strided_slice %37 {offsets = [0, 64], sizes = [48, 32], strides = [1, 1]} : vector<48x96xf32> to vector<48x32xf32>
    %43 = arith.truncf %42 : vector<48x32xf32> to vector<48x32xbf16>
    %44 = vector.extract_strided_slice %39 {offsets = [0, 0], sizes = [48, 8], strides = [1, 1]} : vector<48x32xbf16> to vector<48x8xbf16>
    %45 = vector.extract_strided_slice %41 {offsets = [0, 0], sizes = [48, 8], strides = [1, 1]} : vector<48x32xbf16> to vector<48x8xbf16>
    %46 = vector.extract_strided_slice %43 {offsets = [0, 0], sizes = [48, 8], strides = [1, 1]} : vector<48x32xbf16> to vector<48x8xbf16>
    %cst_15 = arith.constant dense<0.000000e+00> : vector<48x48xf32>
    %47 = tpu.matmul %44, %45, %cst_15 {dimension_numbers = #tpu.dot_dimension_numbers<[1], [1], [0], [0], [0, 0, 1, 0], [], []>} : vector<48x8xbf16>, vector<48x8xbf16>, vector<48x48xf32> -> vector<48x48xf32>
    %cst_16 = arith.constant 0.353553385 : f32
    %48 = vector.broadcast %cst_16 : f32 to vector<48x48xf32>
    %49 = arith.mulf %47, %48 : vector<48x48xf32>
    %50 = arith.addf %49, %6 : vector<48x48xf32>
    %cst_17 = arith.constant dense<0xFF800000> : vector<48xf32>
    %51 = vector.multi_reduction <maximumf>, %50, %cst_17 [1] : vector<48x48xf32> to vector<48xf32>
    %52 = vector.shape_cast %51 : vector<48xf32> to vector<48x1xf32>
    %53 = vector.broadcast %52 : vector<48x1xf32> to vector<48x48xf32>
    %54 = arith.subf %50, %53 : vector<48x48xf32>
    %55 = math.exp %54 : vector<48x48xf32>
    %cst_18 = arith.constant dense<0.000000e+00> : vector<48xf32>
    %56 = vector.multi_reduction <add>, %55, %cst_18 [1] : vector<48x48xf32> to vector<48xf32>
    %57 = vector.shape_cast %56 : vector<48xf32> to vector<48x1xf32>
    %58 = vector.broadcast %57 : vector<48x1xf32> to vector<48x48xf32>
    %59 = arith.divf %55, %58 : vector<48x48xf32>
    %60 = arith.truncf %59 : vector<48x48xf32> to vector<48x48xbf16>
    %cst_19 = arith.constant dense<0.000000e+00> : vector<48x8xf32>
    %61 = tpu.matmul %60, %46, %cst_19 {dimension_numbers = #tpu.dot_dimension_numbers<[1], [0], [0], [1], [0, 0, 1, 1], [], []>} : vector<48x48xbf16>, vector<48x8xbf16>, vector<48x8xf32> -> vector<48x8xf32>
    %c0_20 = arith.constant 0 : index
    %c0_21 = arith.constant 0 : index
    %62 = vector.load %arg18[%c0_20, %c0_21] : memref<48x32xf32, #tpu.memory_space<vmem>>, vector<48x8xf32>
    tpu.vector_store %arg18[%c0_20, %c0_21], %61 {strides = array<i32>} : memref<48x32xf32, #tpu.memory_space<vmem>>, vector<48x8xf32>,
    %63 = vector.extract_strided_slice %39 {offsets = [0, 8], sizes = [48, 8], strides = [1, 1]} : vector<48x32xbf16> to vector<48x8xbf16>
    %64 = vector.extract_strided_slice %41 {offsets = [0, 8], sizes = [48, 8], strides = [1, 1]} : vector<48x32xbf16> to vector<48x8xbf16>
    %65 = vector.extract_strided_slice %43 {offsets = [0, 8], sizes = [48, 8], strides = [1, 1]} : vector<48x32xbf16> to vector<48x8xbf16>
    %cst_22 = arith.constant dense<0.000000e+00> : vector<48x48xf32>
    %66 = tpu.matmul %63, %64, %cst_22 {dimension_numbers = #tpu.dot_dimension_numbers<[1], [1], [0], [0], [0, 0, 1, 0], [], []>} : vector<48x8xbf16>, vector<48x8xbf16>, vector<48x48xf32> -> vector<48x48xf32>
    %cst_23 = arith.constant 0.353553385 : f32
    %67 = vector.broadcast %cst_23 : f32 to vector<48x48xf32>
    %68 = arith.mulf %66, %67 : vector<48x48xf32>
    %69 = arith.addf %68, %6 : vector<48x48xf32>
    %cst_24 = arith.constant dense<0xFF800000> : vector<48xf32>
    %70 = vector.multi_reduction <maximumf>, %69, %cst_24 [1] : vector<48x48xf32> to vector<48xf32>
    %71 = vector.shape_cast %70 : vector<48xf32> to vector<48x1xf32>
    %72 = vector.broadcast %71 : vector<48x1xf32> to vector<48x48xf32>
    %73 = arith.subf %69, %72 : vector<48x48xf32>
    %74 = math.exp %73 : vector<48x48xf32>
    %cst_25 = arith.constant dense<0.000000e+00> : vector<48xf32>
    %75 = vector.multi_reduction <add>, %74, %cst_25 [1] : vector<48x48xf32> to vector<48xf32>
    %76 = vector.shape_cast %75 : vector<48xf32> to vector<48x1xf32>
    %77 = vector.broadcast %76 : vector<48x1xf32> to vector<48x48xf32>
    %78 = arith.divf %74, %77 : vector<48x48xf32>
    %79 = arith.truncf %78 : vector<48x48xf32> to vector<48x48xbf16>
    %cst_26 = arith.constant dense<0.000000e+00> : vector<48x8xf32>
    %80 = tpu.matmul %79, %65, %cst_26 {dimension_numbers = #tpu.dot_dimension_numbers<[1], [0], [0], [1], [0, 0, 1, 1], [], []>} : vector<48x48xbf16>, vector<48x8xbf16>, vector<48x8xf32> -> vector<48x8xf32>
    %c0_27 = arith.constant 0 : index
    %c8 = arith.constant 8 : index
    %81 = vector.load %arg18[%c0_27, %c8] : memref<48x32xf32, #tpu.memory_space<vmem>>, vector<48x8xf32>
    tpu.vector_store %arg18[%c0_27, %c8], %80 {strides = array<i32>} : memref<48x32xf32, #tpu.memory_space<vmem>>, vector<48x8xf32>,
    %82 = vector.extract_strided_slice %39 {offsets = [0, 16], sizes = [48, 8], strides = [1, 1]} : vector<48x32xbf16> to vector<48x8xbf16>
    %83 = vector.extract_strided_slice %41 {offsets = [0, 16], sizes = [48, 8], strides = [1, 1]} : vector<48x32xbf16> to vector<48x8xbf16>
    %84 = vector.extract_strided_slice %43 {offsets = [0, 16], sizes = [48, 8], strides = [1, 1]} : vector<48x32xbf16> to vector<48x8xbf16>
    %cst_28 = arith.constant dense<0.000000e+00> : vector<48x48xf32>
    %85 = tpu.matmul %82, %83, %cst_28 {dimension_numbers = #tpu.dot_dimension_numbers<[1], [1], [0], [0], [0, 0, 1, 0], [], []>} : vector<48x8xbf16>, vector<48x8xbf16>, vector<48x48xf32> -> vector<48x48xf32>
    %cst_29 = arith.constant 0.353553385 : f32
    %86 = vector.broadcast %cst_29 : f32 to vector<48x48xf32>
    %87 = arith.mulf %85, %86 : vector<48x48xf32>
    %88 = arith.addf %87, %6 : vector<48x48xf32>
    %cst_30 = arith.constant dense<0xFF800000> : vector<48xf32>
    %89 = vector.multi_reduction <maximumf>, %88, %cst_30 [1] : vector<48x48xf32> to vector<48xf32>
    %90 = vector.shape_cast %89 : vector<48xf32> to vector<48x1xf32>
    %91 = vector.broadcast %90 : vector<48x1xf32> to vector<48x48xf32>
    %92 = arith.subf %88, %91 : vector<48x48xf32>
    %93 = math.exp %92 : vector<48x48xf32>
    %cst_31 = arith.constant dense<0.000000e+00> : vector<48xf32>
    %94 = vector.multi_reduction <add>, %93, %cst_31 [1] : vector<48x48xf32> to vector<48xf32>
    %95 = vector.shape_cast %94 : vector<48xf32> to vector<48x1xf32>
    %96 = vector.broadcast %95 : vector<48x1xf32> to vector<48x48xf32>
    %97 = arith.divf %93, %96 : vector<48x48xf32>
    %98 = arith.truncf %97 : vector<48x48xf32> to vector<48x48xbf16>
    %cst_32 = arith.constant dense<0.000000e+00> : vector<48x8xf32>
    %99 = tpu.matmul %98, %84, %cst_32 {dimension_numbers = #tpu.dot_dimension_numbers<[1], [0], [0], [1], [0, 0, 1, 1], [], []>} : vector<48x48xbf16>, vector<48x8xbf16>, vector<48x8xf32> -> vector<48x8xf32>
    %c0_33 = arith.constant 0 : index
    %c16 = arith.constant 16 : index
    %100 = vector.load %arg18[%c0_33, %c16] : memref<48x32xf32, #tpu.memory_space<vmem>>, vector<48x8xf32>
    tpu.vector_store %arg18[%c0_33, %c16], %99 {strides = array<i32>} : memref<48x32xf32, #tpu.memory_space<vmem>>, vector<48x8xf32>,
    %101 = vector.extract_strided_slice %39 {offsets = [0, 24], sizes = [48, 8], strides = [1, 1]} : vector<48x32xbf16> to vector<48x8xbf16>
    %102 = vector.extract_strided_slice %41 {offsets = [0, 24], sizes = [48, 8], strides = [1, 1]} : vector<48x32xbf16> to vector<48x8xbf16>
    %103 = vector.extract_strided_slice %43 {offsets = [0, 24], sizes = [48, 8], strides = [1, 1]} : vector<48x32xbf16> to vector<48x8xbf16>
    %cst_34 = arith.constant dense<0.000000e+00> : vector<48x48xf32>
    %104 = tpu.matmul %101, %102, %cst_34 {dimension_numbers = #tpu.dot_dimension_numbers<[1], [1], [0], [0], [0, 0, 1, 0], [], []>} : vector<48x8xbf16>, vector<48x8xbf16>, vector<48x48xf32> -> vector<48x48xf32>
    %cst_35 = arith.constant 0.353553385 : f32
    %105 = vector.broadcast %cst_35 : f32 to vector<48x48xf32>
    %106 = arith.mulf %104, %105 : vector<48x48xf32>
    %107 = arith.addf %106, %6 : vector<48x48xf32>
    %cst_36 = arith.constant dense<0xFF800000> : vector<48xf32>
    %108 = vector.multi_reduction <maximumf>, %107, %cst_36 [1] : vector<48x48xf32> to vector<48xf32>
    %109 = vector.shape_cast %108 : vector<48xf32> to vector<48x1xf32>
    %110 = vector.broadcast %109 : vector<48x1xf32> to vector<48x48xf32>
    %111 = arith.subf %107, %110 : vector<48x48xf32>
    %112 = math.exp %111 : vector<48x48xf32>
    %cst_37 = arith.constant dense<0.000000e+00> : vector<48xf32>
    %113 = vector.multi_reduction <add>, %112, %cst_37 [1] : vector<48x48xf32> to vector<48xf32>
    %114 = vector.shape_cast %113 : vector<48xf32> to vector<48x1xf32>
    %115 = vector.broadcast %114 : vector<48x1xf32> to vector<48x48xf32>
    %116 = arith.divf %112, %115 : vector<48x48xf32>
    %117 = arith.truncf %116 : vector<48x48xf32> to vector<48x48xbf16>
    %cst_38 = arith.constant dense<0.000000e+00> : vector<48x8xf32>
    %118 = tpu.matmul %117, %103, %cst_38 {dimension_numbers = #tpu.dot_dimension_numbers<[1], [0], [0], [1], [0, 0, 1, 1], [], []>} : vector<48x48xbf16>, vector<48x8xbf16>, vector<48x8xf32> -> vector<48x8xf32>
    %c0_39 = arith.constant 0 : index
    %c24 = arith.constant 24 : index
    %119 = vector.load %arg18[%c0_39, %c24] : memref<48x32xf32, #tpu.memory_space<vmem>>, vector<48x8xf32>
    tpu.vector_store %arg18[%c0_39, %c24], %118 {strides = array<i32>} : memref<48x32xf32, #tpu.memory_space<vmem>>, vector<48x8xf32>,
    %c0_40 = arith.constant 0 : index
    %c0_41 = arith.constant 0 : index
    %120 = vector.load %arg18[%c0_40, %c0_41] : memref<48x32xf32, #tpu.memory_space<vmem>>, vector<48x32xf32>
    %121 = arith.truncf %120 : vector<48x32xf32> to vector<48x32xbf16>
    %c0_42 = arith.constant 0 : index
    %c0_43 = arith.constant 0 : index
    %c0_44 = arith.constant 0 : index
    %122 = vector.load %arg11[%c0_42, %c0_43, %c0_44] : memref<1x32x32xbf16, #tpu.memory_space<vmem>>, vector<1x32x32xbf16>
    %123 = vector.shape_cast %122 : vector<1x32x32xbf16> to vector<32x32xbf16>
    %cst_45 = arith.constant dense<0.000000e+00> : vector<48x32xf32>
    %124 = tpu.matmul %121, %123, %cst_45 {dimension_numbers = #tpu.dot_dimension_numbers<[1], [0], [0], [1], [0, 0, 1, 1], [], []>} : vector<48x32xbf16>, vector<32x32xbf16>, vector<48x32xf32> -> vector<48x32xf32>
    %125 = vector.extract_strided_slice %4 {offsets = [7, 0], sizes = [1, 32], strides = [1, 1]} : vector<12x128xf32> to vector<1x32xf32>
    %126 = vector.broadcast %125 : vector<1x32xf32> to vector<48x32xf32>
    %127 = arith.addf %124, %126 : vector<48x32xf32>
    %128 = arith.addf %5, %127 : vector<48x32xf32>
    %129 = vector.extract_strided_slice %4 {offsets = [2, 0], sizes = [1, 32], strides = [1, 1]} : vector<12x128xf32> to vector<1x32xf32>
    %130 = vector.extract_strided_slice %4 {offsets = [3, 0], sizes = [1, 32], strides = [1, 1]} : vector<12x128xf32> to vector<1x32xf32>
    %cst_46 = arith.constant dense<0.000000e+00> : vector<48xf32>
    %131 = vector.multi_reduction <add>, %128, %cst_46 [1] : vector<48x32xf32> to vector<48xf32>
    %132 = vector.shape_cast %131 : vector<48xf32> to vector<48x1xf32>
    %cst_47 = arith.constant 3.200000e+01 : f32
    %133 = vector.broadcast %cst_47 : f32 to vector<48x1xf32>
    %134 = arith.divf %132, %133 : vector<48x1xf32>
    %135 = vector.broadcast %134 : vector<48x1xf32> to vector<48x32xf32>
    %136 = arith.subf %128, %135 : vector<48x32xf32>
    %137 = arith.mulf %136, %136 : vector<48x32xf32>
    %cst_48 = arith.constant dense<0.000000e+00> : vector<48xf32>
    %138 = vector.multi_reduction <add>, %137, %cst_48 [1] : vector<48x32xf32> to vector<48xf32>
    %139 = vector.shape_cast %138 : vector<48xf32> to vector<48x1xf32>
    %cst_49 = arith.constant 3.200000e+01 : f32
    %140 = vector.broadcast %cst_49 : f32 to vector<48x1xf32>
    %141 = arith.divf %139, %140 : vector<48x1xf32>
    %142 = vector.broadcast %134 : vector<48x1xf32> to vector<48x32xf32>
    %143 = arith.subf %128, %142 : vector<48x32xf32>
    %cst_50 = arith.constant 9.99999997E-7 : f32
    %144 = vector.broadcast %cst_50 : f32 to vector<48x1xf32>
    %145 = arith.addf %141, %144 : vector<48x1xf32>
    %146 = math.rsqrt %145 : vector<48x1xf32>
    %147 = vector.broadcast %146 : vector<48x1xf32> to vector<48x32xf32>
    %148 = arith.mulf %143, %147 : vector<48x32xf32>
    %149 = vector.broadcast %129 : vector<1x32xf32> to vector<48x32xf32>
    %150 = arith.mulf %148, %149 : vector<48x32xf32>
    %151 = vector.broadcast %130 : vector<1x32xf32> to vector<48x32xf32>
    %152 = arith.addf %150, %151 : vector<48x32xf32>
    %153 = arith.truncf %152 : vector<48x32xf32> to vector<48x32xbf16>
    %c0_51 = arith.constant 0 : index
    %c0_52 = arith.constant 0 : index
    %c0_53 = arith.constant 0 : index
    %154 = vector.load %arg12[%c0_51, %c0_52, %c0_53] : memref<1x32x128xbf16, #tpu.memory_space<vmem>>, vector<1x32x128xbf16>
    %155 = vector.shape_cast %154 : vector<1x32x128xbf16> to vector<32x128xbf16>
    %cst_54 = arith.constant dense<0.000000e+00> : vector<48x128xf32>
    %156 = tpu.matmul %153, %155, %cst_54 {dimension_numbers = #tpu.dot_dimension_numbers<[1], [0], [0], [1], [0, 0, 1, 1], [], []>} : vector<48x32xbf16>, vector<32x128xbf16>, vector<48x128xf32> -> vector<48x128xf32>
    %157 = vector.extract_strided_slice %4 {offsets = [8, 0], sizes = [1, 128], strides = [1, 1]} : vector<12x128xf32> to vector<1x128xf32>
    %158 = vector.broadcast %157 : vector<1x128xf32> to vector<48x128xf32>
    %159 = arith.addf %156, %158 : vector<48x128xf32>
    %160 = arith.mulf %159, %159 : vector<48x128xf32>
    %161 = arith.mulf %159, %160 : vector<48x128xf32>
    %cst_55 = arith.constant 4.471500e-02 : f32
    %162 = vector.broadcast %cst_55 : f32 to vector<48x128xf32>
    %163 = arith.mulf %162, %161 : vector<48x128xf32>
    %164 = arith.addf %159, %163 : vector<48x128xf32>
    %cst_56 = arith.constant 0.797884583 : f32
    %165 = vector.broadcast %cst_56 : f32 to vector<48x128xf32>
    %166 = arith.mulf %165, %164 : vector<48x128xf32>
    %167 = math.tanh %166 : vector<48x128xf32>
    %cst_57 = arith.constant 1.000000e+00 : f32
    %168 = vector.broadcast %cst_57 : f32 to vector<48x128xf32>
    %169 = arith.addf %168, %167 : vector<48x128xf32>
    %cst_58 = arith.constant 5.000000e-01 : f32
    %170 = vector.broadcast %cst_58 : f32 to vector<48x128xf32>
    %171 = arith.mulf %170, %169 : vector<48x128xf32>
    %172 = arith.mulf %159, %171 : vector<48x128xf32>
    %173 = arith.truncf %172 : vector<48x128xf32> to vector<48x128xbf16>
    %c0_59 = arith.constant 0 : index
    %c0_60 = arith.constant 0 : index
    %c0_61 = arith.constant 0 : index
    %174 = vector.load %arg13[%c0_59, %c0_60, %c0_61] : memref<1x128x32xbf16, #tpu.memory_space<vmem>>, vector<1x128x32xbf16>
    %175 = vector.shape_cast %174 : vector<1x128x32xbf16> to vector<128x32xbf16>
    %cst_62 = arith.constant dense<0.000000e+00> : vector<48x32xf32>
    %176 = tpu.matmul %173, %175, %cst_62 {dimension_numbers = #tpu.dot_dimension_numbers<[1], [0], [0], [1], [0, 0, 1, 1], [], []>} : vector<48x128xbf16>, vector<128x32xbf16>, vector<48x32xf32> -> vector<48x32xf32>
    %177 = vector.extract_strided_slice %4 {offsets = [9, 0], sizes = [1, 32], strides = [1, 1]} : vector<12x128xf32> to vector<1x32xf32>
    %178 = vector.broadcast %177 : vector<1x32xf32> to vector<48x32xf32>
    %179 = arith.addf %176, %178 : vector<48x32xf32>
    %180 = arith.addf %128, %179 : vector<48x32xf32>
    %181 = arith.truncf %180 : vector<48x32xf32> to vector<48x32xbf16>
    %c0_63 = arith.constant 0 : index
    %c0_64 = arith.constant 0 : index
    %c0_65 = arith.constant 0 : index
    %182 = vector.load %arg14[%c0_63, %c0_64, %c0_65] : memref<1x32x8xbf16, #tpu.memory_space<vmem>>, vector<1x32x8xbf16>
    %183 = vector.shape_cast %182 : vector<1x32x8xbf16> to vector<32x8xbf16>
    %cst_66 = arith.constant dense<0.000000e+00> : vector<48x8xf32>
    %184 = tpu.matmul %181, %183, %cst_66 {dimension_numbers = #tpu.dot_dimension_numbers<[1], [0], [0], [1], [0, 0, 1, 1], [], []>} : vector<48x32xbf16>, vector<32x8xbf16>, vector<48x8xf32> -> vector<48x8xf32>
    %185 = vector.extract_strided_slice %4 {offsets = [10, 0], sizes = [1, 8], strides = [1, 1]} : vector<12x128xf32> to vector<1x8xf32>
    %186 = vector.broadcast %185 : vector<1x8xf32> to vector<48x8xf32>
    %187 = arith.addf %184, %186 : vector<48x8xf32>
    %188 = arith.mulf %187, %187 : vector<48x8xf32>
    %189 = arith.mulf %187, %188 : vector<48x8xf32>
    %cst_67 = arith.constant 4.471500e-02 : f32
    %190 = vector.broadcast %cst_67 : f32 to vector<48x8xf32>
    %191 = arith.mulf %190, %189 : vector<48x8xf32>
    %192 = arith.addf %187, %191 : vector<48x8xf32>
    %cst_68 = arith.constant 0.797884583 : f32
    %193 = vector.broadcast %cst_68 : f32 to vector<48x8xf32>
    %194 = arith.mulf %193, %192 : vector<48x8xf32>
    %195 = math.tanh %194 : vector<48x8xf32>
    %cst_69 = arith.constant 1.000000e+00 : f32
    %196 = vector.broadcast %cst_69 : f32 to vector<48x8xf32>
    %197 = arith.addf %196, %195 : vector<48x8xf32>
    %cst_70 = arith.constant 5.000000e-01 : f32
    %198 = vector.broadcast %cst_70 : f32 to vector<48x8xf32>
    %199 = arith.mulf %198, %197 : vector<48x8xf32>
    %200 = arith.mulf %187, %199 : vector<48x8xf32>
    %201 = arith.truncf %200 : vector<48x8xf32> to vector<48x8xbf16>
    %c0_71 = arith.constant 0 : index
    %c0_72 = arith.constant 0 : index
    %c0_73 = arith.constant 0 : index
    %202 = vector.load %arg15[%c0_71, %c0_72, %c0_73] : memref<1x8x32xbf16, #tpu.memory_space<vmem>>, vector<1x8x32xbf16>
    %203 = vector.shape_cast %202 : vector<1x8x32xbf16> to vector<8x32xbf16>
    %cst_74 = arith.constant dense<0.000000e+00> : vector<48x32xf32>
    %204 = tpu.matmul %201, %203, %cst_74 {dimension_numbers = #tpu.dot_dimension_numbers<[1], [0], [0], [1], [0, 0, 1, 1], [], []>} : vector<48x8xbf16>, vector<8x32xbf16>, vector<48x32xf32> -> vector<48x32xf32>
    %205 = vector.extract_strided_slice %4 {offsets = [11, 0], sizes = [1, 32], strides = [1, 1]} : vector<12x128xf32> to vector<1x32xf32>
    %206 = vector.broadcast %205 : vector<1x32xf32> to vector<48x32xf32>
    %207 = arith.addf %204, %206 : vector<48x32xf32>
    %208 = arith.addf %180, %207 : vector<48x32xf32>
    %209 = vector.extract_strided_slice %4 {offsets = [4, 0], sizes = [1, 32], strides = [1, 1]} : vector<12x128xf32> to vector<1x32xf32>
    %210 = vector.extract_strided_slice %4 {offsets = [5, 0], sizes = [1, 32], strides = [1, 1]} : vector<12x128xf32> to vector<1x32xf32>
    %cst_75 = arith.constant dense<0.000000e+00> : vector<48xf32>
    %211 = vector.multi_reduction <add>, %208, %cst_75 [1] : vector<48x32xf32> to vector<48xf32>
    %212 = vector.shape_cast %211 : vector<48xf32> to vector<48x1xf32>
    %cst_76 = arith.constant 3.200000e+01 : f32
    %213 = vector.broadcast %cst_76 : f32 to vector<48x1xf32>
    %214 = arith.divf %212, %213 : vector<48x1xf32>
    %215 = vector.broadcast %214 : vector<48x1xf32> to vector<48x32xf32>
    %216 = arith.subf %208, %215 : vector<48x32xf32>
    %217 = arith.mulf %216, %216 : vector<48x32xf32>
    %cst_77 = arith.constant dense<0.000000e+00> : vector<48xf32>
    %218 = vector.multi_reduction <add>, %217, %cst_77 [1] : vector<48x32xf32> to vector<48xf32>
    %219 = vector.shape_cast %218 : vector<48xf32> to vector<48x1xf32>
    %cst_78 = arith.constant 3.200000e+01 : f32
    %220 = vector.broadcast %cst_78 : f32 to vector<48x1xf32>
    %221 = arith.divf %219, %220 : vector<48x1xf32>
    %222 = vector.broadcast %214 : vector<48x1xf32> to vector<48x32xf32>
    %223 = arith.subf %208, %222 : vector<48x32xf32>
    %cst_79 = arith.constant 9.99999974E-6 : f32
    %224 = vector.broadcast %cst_79 : f32 to vector<48x1xf32>
    %225 = arith.addf %221, %224 : vector<48x1xf32>
    %226 = math.rsqrt %225 : vector<48x1xf32>
    %227 = vector.broadcast %226 : vector<48x1xf32> to vector<48x32xf32>
    %228 = arith.mulf %223, %227 : vector<48x32xf32>
    %229 = vector.broadcast %209 : vector<1x32xf32> to vector<48x32xf32>
    %230 = arith.mulf %228, %229 : vector<48x32xf32>
    %231 = vector.broadcast %210 : vector<1x32xf32> to vector<48x32xf32>
    %232 = arith.addf %230, %231 : vector<48x32xf32>
    %c0_80 = arith.constant 0 : index
    %c0_81 = arith.constant 0 : index
    %233 = vector.load %arg17[%c0_80, %c0_81] : memref<48x32xf32, #tpu.memory_space<vmem>>, vector<48x32xf32>
    tpu.vector_store %arg17[%c0_80, %c0_81], %232 {strides = array<i32>} : memref<48x32xf32, #tpu.memory_space<vmem>>, vector<48x32xf32>,
    %c1_i32 = arith.constant 1 : i32
    %234 = arith.cmpi eq, %arg0, %c1_i32 : i32
    %235 = arith.extui %234 : i1 to i32
    %c0_i32_82 = arith.constant 0 : i32
    %236 = arith.cmpi ne, %235, %c0_i32_82 : i32
    scf.if %236 {
      %237 = vector.extract_strided_slice %232 {offsets = [0, 0], sizes = [1, 32], strides = [1, 1]} : vector<48x32xf32> to vector<1x32xf32>
      %238 = vector.extract_strided_slice %232 {offsets = [24, 0], sizes = [1, 32], strides = [1, 1]} : vector<48x32xf32> to vector<1x32xf32>
      %239 = tpu.concatenate %237, %238 in 0 : vector<1x32xf32>, vector<1x32xf32> -> vector<2x32xf32>
      %240 = arith.truncf %239 : vector<2x32xf32> to vector<2x32xbf16>
      %c0_83 = arith.constant 0 : index
      %c0_84 = arith.constant 0 : index
      %241 = vector.load %arg6[%c0_83, %c0_84] : memref<32x10xbf16, #tpu.memory_space<vmem>>, vector<32x10xbf16>
      %cst_85 = arith.constant dense<0.000000e+00> : vector<2x10xf32>
      %242 = tpu.matmul %240, %241, %cst_85 {dimension_numbers = #tpu.dot_dimension_numbers<[1], [0], [0], [1], [0, 0, 1, 1], [], []>} : vector<2x32xbf16>, vector<32x10xbf16>, vector<2x10xf32> -> vector<2x10xf32>
      %c0_86 = arith.constant 0 : index
      %c0_87 = arith.constant 0 : index
      %243 = vector.load %arg7[%c0_86, %c0_87] : memref<1x10xf32, #tpu.memory_space<vmem>>, vector<1x10xf32>
      %244 = vector.broadcast %243 : vector<1x10xf32> to vector<2x10xf32>
      %245 = arith.addf %242, %244 : vector<2x10xf32>
      %c0_88 = arith.constant 0 : index
      %c0_89 = arith.constant 0 : index
      %246 = vector.load %arg16[%c0_88, %c0_89] : memref<2x10xf32, #tpu.memory_space<vmem>>, vector<2x10xf32>
      tpu.vector_store %arg16[%c0_88, %c0_89], %245 {strides = array<i32>} : memref<2x10xf32, #tpu.memory_space<vmem>>, vector<2x10xf32>,
    } else {
    }
    return
  }
  func.func @transform_0(%arg0: i32) -> (i32, i32) {
    %c0_i32 = arith.constant 0 : i32
    %c0_i32_0 = arith.constant 0 : i32
    %c0_i32_1 = arith.constant 0 : i32
    return %c0_i32, %c0_i32_0 : i32, i32
  }
  func.func @transform_1(%arg0: i32) -> (i32, i32) {
    %c0_i32 = arith.constant 0 : i32
    %c0_i32_0 = arith.constant 0 : i32
    %c0_i32_1 = arith.constant 0 : i32
    return %c0_i32, %c0_i32_0 : i32, i32
  }
  func.func @transform_2(%arg0: i32) -> (i32, i32) {
    %c0_i32 = arith.constant 0 : i32
    %c0_i32_0 = arith.constant 0 : i32
    %c0_i32_1 = arith.constant 0 : i32
    return %c0_i32, %c0_i32_0 : i32, i32
  }
  func.func @transform_3(%arg0: i32) -> (i32, i32) {
    %c0_i32 = arith.constant 0 : i32
    %c0_i32_0 = arith.constant 0 : i32
    %c0_i32_1 = arith.constant 0 : i32
    return %c0_i32, %c0_i32_0 : i32, i32
  }
  func.func @transform_4(%arg0: i32) -> (i32, i32) {
    %c0_i32 = arith.constant 0 : i32
    %c0_i32_0 = arith.constant 0 : i32
    %c0_i32_1 = arith.constant 0 : i32
    return %c0_i32, %c0_i32_0 : i32, i32
  }
  func.func @transform_5(%arg0: i32) -> (i32, i32) {
    %c0_i32 = arith.constant 0 : i32
    %c0_i32_0 = arith.constant 0 : i32
    %c0_i32_1 = arith.constant 0 : i32
    return %c0_i32, %c0_i32_0 : i32, i32
  }
  func.func @transform_6(%arg0: i32) -> (i32, i32) {
    %c0_i32 = arith.constant 0 : i32
    %c0_i32_0 = arith.constant 0 : i32
    %c0_i32_1 = arith.constant 0 : i32
    return %c0_i32, %c0_i32_0 : i32, i32
  }
  func.func @transform_7(%arg0: i32) -> (i32, i32) {
    %c0_i32 = arith.constant 0 : i32
    %c0_i32_0 = arith.constant 0 : i32
    %c0_i32_1 = arith.constant 0 : i32
    return %c0_i32, %c0_i32_0 : i32, i32
  }
  func.func @transform_8(%arg0: i32) -> (i32, i32, i32) {
    %c0_i32 = arith.constant 0 : i32
    %c0_i32_0 = arith.constant 0 : i32
    %c0_i32_1 = arith.constant 0 : i32
    return %arg0, %c0_i32, %c0_i32_0 : i32, i32, i32
  }
  func.func @transform_9(%arg0: i32) -> (i32, i32, i32) {
    %c0_i32 = arith.constant 0 : i32
    %c0_i32_0 = arith.constant 0 : i32
    %c0_i32_1 = arith.constant 0 : i32
    return %arg0, %c0_i32, %c0_i32_0 : i32, i32, i32
  }
  func.func @transform_10(%arg0: i32) -> (i32, i32, i32) {
    %c0_i32 = arith.constant 0 : i32
    %c0_i32_0 = arith.constant 0 : i32
    %c0_i32_1 = arith.constant 0 : i32
    return %arg0, %c0_i32, %c0_i32_0 : i32, i32, i32
  }
  func.func @transform_11(%arg0: i32) -> (i32, i32, i32) {
    %c0_i32 = arith.constant 0 : i32
    %c0_i32_0 = arith.constant 0 : i32
    %c0_i32_1 = arith.constant 0 : i32
    return %arg0, %c0_i32, %c0_i32_0 : i32, i32, i32
  }
  func.func @transform_12(%arg0: i32) -> (i32, i32, i32) {
    %c0_i32 = arith.constant 0 : i32
    %c0_i32_0 = arith.constant 0 : i32
    %c0_i32_1 = arith.constant 0 : i32
    return %arg0, %c0_i32, %c0_i32_0 : i32, i32, i32
  }
  func.func @transform_13(%arg0: i32) -> (i32, i32, i32) {
    %c0_i32 = arith.constant 0 : i32
    %c0_i32_0 = arith.constant 0 : i32
    %c0_i32_1 = arith.constant 0 : i32
    return %arg0, %c0_i32, %c0_i32_0 : i32, i32, i32
  }
  func.func @transform_14(%arg0: i32) -> (i32, i32, i32) {
    %c0_i32 = arith.constant 0 : i32
    %c0_i32_0 = arith.constant 0 : i32
    %c0_i32_1 = arith.constant 0 : i32
    return %arg0, %c0_i32, %c0_i32_0 : i32, i32, i32
  }
  func.func @transform_15(%arg0: i32) -> (i32, i32) {
    %c0_i32 = arith.constant 0 : i32
    %c0_i32_0 = arith.constant 0 : i32
    %c0_i32_1 = arith.constant 0 : i32
    return %c0_i32, %c0_i32_0 : i32, i32
  }
}

</mosaic_0001>

<bundles_post_ra>
// kernel: vit_forward.1
= control target key start
LH: loop header
LB: loop body
LE: loop exit
PB: predicated region body
PF: predicated region fallthrough
CT: control target
= control target key end

     0   :  { %s4750_s0 = inlined_call_operand.vmem [shape: f32[32,64], index: 0, kind: input, shape index: {}]   ;;  %s4751_s1 = inlined_call_operand.vmem [shape: bf16[64,32], index: 1, kind: input, shape index: {}]   ;;  %s4752_s2 = inlined_call_operand.vmem [shape: f32[1,32], index: 2, kind: input, shape index: {}]   ;;  %s4753_s3 = inlined_call_operand.vmem [shape: f32[1,32], index: 3, kind: input, shape index: {}]   ;;  %s4754_s4 = inlined_call_operand.vmem [shape: f32[17,32], index: 4, kind: input, shape index: {}]   ;;  %s4755_s5 = inlined_call_operand.vmem [shape: bf16[32,10], index: 5, kind: input, shape index: {}]   ;;  %s4756_s6 = inlined_call_operand.vmem [shape: f32[1,10], index: 6, kind: input, shape index: {}]   ;;  %s4757_s7 = inlined_call_operand.vmem [shape: f32[48,48], index: 7, kind: input, shape index: {}]   ;;  %s4758_s8 = inlined_call_operand.vmem [shape: f32[2,12,128], index: 8, kind: input, shape index: {}]   ;;  %s4759_s9 = inlined_call_operand.vmem [shape: bf16[2,32,96], index: 9, kind: input, shape index: {}]   ;;  %s4760_s10 = inlined_call_operand.vmem [shape: bf16[2,32,32], index: 10, kind: input, shape index: {}]   ;;  %s4761_s11 = inlined_call_operand.vmem [shape: bf16[2,32,128], index: 11, kind: input, shape index: {}]   ;;  %s4762_s12 = inlined_call_operand.vmem [shape: bf16[2,128,32], index: 12, kind: input, shape index: {}]   ;;  %s4763_s13 = inlined_call_operand.vmem [shape: bf16[2,32,8], index: 13, kind: input, shape index: {}]   ;;  %s4764_s14 = inlined_call_operand.vmem [shape: bf16[2,8,32], index: 14, kind: input, shape index: {}]   ;;  %s4765_s15 = inlined_call_operand.hbm [shape: f32[2,10], index: 15, kind: output, shape index: {}]  }
   0x1   :  { %4769 = sst [smem:[#allocation8_spill]] %s4755_s5 }
   0x2   :  { %4770 = sst [smem:[#allocation9_spill]] %s4756_s6 }
   0x3   :  { %4771 = sst [smem:[#allocation10_spill]] %s4758_s8 }
   0x4   :  { %4772 = sst [smem:[#allocation11_spill]] %s4759_s9 }
   0x5   :  { %4773 = sst [smem:[#allocation12_spill]] %s4765_s15 }
   0x6   :  { %20 = vsyncpa [#allocation5], 0  ;;  %s3831_s18 = smov 0  }
   0x7 LB: > { %4774 = sst [smem:[#allocation7_spill]] %s3729_s18  ;;  %s3837_s19 = sadd.s32 4294967295, %s3729_s18   ;;  %s3729_s18 = sphi %s3831_s18, %s26_s18  }
   0x8   : > { %p3020_p0 = scmp.ge.s32.totalorder %s3729_s18, 1  ;;  %p492_p1 = scmp.lt.s32.totalorder %s3729_s18, 3 }
   0xa   : > { %p493_p2 = pnand %p3020_p0, %p492_p1 }
   0xb   : > { %p564_p3 = scmp.lt.s32.totalorder (!%p493_p2), %s3837_s19, 1  ;;  %s4775_s8 = sld [smem:[#allocation10_spill]] (!%p493_p2) }
   0xc   : > { %496 = sbr.rel (%p493_p2) target bundleno = 3968 (0xf80), region = 80  ;;  %s4776_s9 = sld [smem:[#allocation11_spill]] (!%p493_p2) }
   0xd   : > { %p3034_p4 = scmp.ne.s32.totalorder (!%p493_p2), %s3837_s19, 0 }
  0x13   : > { %s565_s20 = scalar_select %p564_p3, %s3837_s19, 1 }
  0x14   : > { %602 = sbr.rel (%p3034_p4) target bundleno = 257 (0x101), region = 84  ;;  %v3508_v0 = vld [vmem:[%s4751_s1] sm:$0xff] (!%p3034_p4)   ;;  %v3509_v1 = vld [vmem:[%s4751_s1 + $0x8] sm:$0xff] (!%p3034_p4)   ;;  %vm603_vm0 = vcmask (!%p3034_p4), 261120   ;;  %v3731_v2 = vmov (!%p3034_p4), 0.0   ;;  %v3510_v3 = vld [vmem:[%s4751_s1 + $0x10] sm:$0xff] (!%p3034_p4)  }
  0x15   : > { %s3106_s21 = sshll.u32 %s565_s20, 4  ;;  %s3110_s22 = sshll.u32 %s565_s20, 6  ;;  %3204 = vmatprep.subr.bf16.mxu0 (!%p3034_p4), %v3508_v0  ;;  %604 = vst.msk [vmem:[#allocation2] sm:$0xff] (!%p3034_p4), %vm603_vm0, %v3731_v2  ;;  %607 = vst.msk [vmem:[#allocation2 + $0x18] sm:$0xff] (!%p3034_p4), %vm603_vm0, %v3731_v2  ;;  %v610_v4 = vld [vmem:[%s4750_s0] sm:$0xff] (!%p3034_p4)  ;;  %v611_v5 = vld [vmem:[%s4750_s0 + $0x8] sm:$0xff] (!%p3034_p4) }
  0x16   : > { %s3846_s25 = scalar_lea.vmem %s4775_s8, %s3106_s21  ;;  %s3851_s28 = scalar_lea.vmem %s4776_s9, %s3106_s21  ;;  %3205 = vmatpush3.bf16.msra.mxu0 (!%p3034_p4), %v3508_v0  ;;  %608 = vst.msk [vmem:[#allocation2 + $0x20] sm:$0xff] (!%p3034_p4), %vm603_vm0, %v3731_v2  ;;  %605 = vst.msk [vmem:[#allocation2 + $0x8] sm:$0xff] (!%p3034_p4), %vm603_vm0, %v3731_v2  ;;  %vm655_vm1 = vcmask (!%p3034_p4), 523264   ;;  %v614_v6 = vpack.c.bf16 (!%p3034_p4), %v611_v5, %v610_v4  ;;  %v3511_v7 = vld [vmem:[%s4751_s1 + $0x18] sm:$0xff] (!%p3034_p4)   ;;  %v612_v8 = vld [vmem:[%s4750_s0 + $0x10] sm:$0xff] (!%p3034_p4)  ;;  %vm716_vm2 = vcmask (!%p3034_p4), 253952  }
  0x17   : > { %s3856_s16 = scalar_lea.vmem %s4760_s10, %s3106_s21  ;;  %s3861_s15 = scalar_lea.vmem %s4761_s11, %s3106_s21  ;;  %606 = vst.msk [vmem:[#allocation2 + $0x10] sm:$0xff] (!%p3034_p4), %vm603_vm0, %v3731_v2  ;;  %609 = vst.msk [vmem:[#allocation2 + $0x28] sm:$0xff] (!%p3034_p4), %vm603_vm0, %v3731_v2  ;;  %3206 = vmatprep.subr.bf16.mxu0 (!%p3034_p4), %v3509_v1  ;;  %v613_v9 = vld [vmem:[%s4750_s0 + $0x18] sm:$0xff] (!%p3034_p4)  ;;  %v711_v11 = vld [vmem:[%s4753_s3] sm:$0x1] (!%p3034_p4)  ;;  %vm721_vm3 = vcmask (!%p3034_p4), 1046528  }
  0x18   : > { %s3866_s23 = scalar_lea.vmem %s4762_s12, %s3110_s22  ;;  %s3871_s26 = scalar_lea.vmem %s4763_s13, %s3106_s21  ;;  %3212 = vmatprep.mubr.msk.bf16.mxu0 (!%p3034_p4), %vm655_vm1, %v614_v6  ;;  %v615_v10 = vpack.c.bf16 (!%p3034_p4), %v613_v9, %v612_v8  ;;  %v712_v12 = vld [vmem:[%s4754_s4] sm:$0xff] (!%p3034_p4)  ;;  %v713_v14 = vld [vmem:[%s4754_s4 + $0x8] sm:$0xff] (!%p3034_p4)  ;;  %v714_v15 = vld [vmem:[%s4754_s4 + $0x10] sm:$0x1] (!%p3034_p4) }
  0x19   : > { %s3033_s27 = sshll.u32 %s565_s20, 2  ;;  %v715_v13 = vadd.f32 (!%p3034_p4), %v712_v12, %v711_v11  ;;  %v722_v16 = vrot.slane (!%p3034_p4), %v712_v12, 1  ;;  %v723_v17 = vrot.slane (!%p3034_p4), %v713_v14, 1  ;;  %v3035_v18 = vld [vmem:[%s4752_s2] ss:$0 sm:$0xff] (!%p3034_p4)  ;;  %v725_v19 = vrot.slane (!%p3034_p4), %v714_v15, 1 }
  0x1a   : > { %s3876_s30 = scalar_lea.vmem %s4764_s14, %s3033_s27  ;;  %3207 = vmatpush3.bf16.msra.mxu0 (!%p3034_p4), %v3509_v1 }
  0x1b   : > { %3208 = vmatprep.subr.bf16.mxu0 %v3510_v3  ;;  %717 = vst.msk [vmem:[#allocation2] sm:$0x1] %vm716_vm2, %v715_v13  ;;  %733 = vst.msk [vmem:[#allocation2 + $0x18] sm:$0x1] %vm716_vm2, %v715_v13  ;;  %v724_v21 = vsel %vm721_vm3, %v722_v16, %v723_v17  ;;  %v726_v26 = vsel %vm721_vm3, %v723_v17, %v725_v19 }
  0x1e   : > { %3209 = vmatpush3.bf16.msra.mxu0 %v3510_v3 }
  0x1f   : > { %3210 = vmatprep.subr.bf16.mxu0 %v3511_v7 }
  0x22   : > { %3211 = vmatpush3.bf16.msra.mxu0 %v3511_v7 }
  0x25   : > { %3213 = vmatmul.mubr.msk.bf16.vlgmr.msra.gmra.mrb[0].mxu0 %vm655_vm1, %v615_v10 }
  0xf8   : > { %v3214_v20 = vpop.f32.mrb[0].mxu0 }
  0xf9   : > { %v705_v22 = vadd.f32 %v3214_v20, %v3035_v18  ;;  %v696_v23 = vpop.f32.mrb[1].mxu0 }
  0xfa   : > { %v697_v24 = vadd.f32 %v3035_v18, %v696_v23  ;;  %v3215_v25 = vpop.f32.mrb[2].mxu0 }
  0xfb   : > { %v734_v27 = vadd.f32 %v724_v21, %v705_v22  ;;  %v708_v28 = vadd.f32 %v3215_v25, %v3035_v18  ;;  %v699_v29 = vpop.f32.mrb[3].mxu0 }
  0xfc   : > { %v729_v30 = vadd.f32 %v724_v21, %v697_v24  ;;  %v700_v31 = vadd.f32 %v3035_v18, %v699_v29 }
  0xfd   : > { %736 = vst.msk [vmem:[#allocation2 + $0x19] sm:$0xff] %vm603_vm0, %v734_v27  ;;  %v735_v32 = vadd.f32 %v726_v26, %v708_v28 }
  0xfe   : > { %731 = vst.msk [vmem:[#allocation2 + $0x1] sm:$0xff] %vm603_vm0, %v729_v30  ;;  %v730_v33 = vadd.f32 %v726_v26, %v700_v31 }
  0xff   : > { %737 = vst.msk [vmem:[#allocation2 + $0x21] sm:$0xff] %vm603_vm0, %v735_v32 }
 0x100   : > { %732 = vst.msk [vmem:[#allocation2 + $0x9] sm:$0xff] %vm603_vm0, %v730_v33 }
 0x101 PF: > { %vm752_vm4 = vcmask 261120   ;;  %v3512_v12 = vld [vmem:[%s3851_s28] sm:$0xff]   ;;  %v3732_v13 = vmov 0.0   ;;  %vm3733_vm5 = vmmov 0   ;;  %v3513_v14 = vld [vmem:[%s3851_s28 + $0x8] sm:$0xff]   ;;  %v832_v20 = vlaneseq  ;;  %s3734_s28 = smov 96  }
 0x102   : > { %3216 = vmatprep.subr.bf16.mxu1 %v3732_v13  ;;  %3220 = vmatprep.mubr.msk.bf16.mxu1 %vm3733_vm5, %v3732_v13  ;;  %s3735_s5 = smov 88   ;;  %s3736_s6 = smov 120   ;;  %vm953_vm6 = vcmask 64512   ;;  %vm1041_vm7 = vcmask 392192   ;;  %vm1459_vm8 = vcmask 130112   ;;  %vm1733_vm9 = vcmask 195712  }
 0x103   : > { %3217 = vmatpush3.bf16.msra.mxu1 %v3512_v12  ;;  %3250 = vmatprep.subr.bf16.mxu0 %v3732_v13  ;;  %v3974_v27 = vshrl.u32 %v832_v20, 7  ;;  %s3737_s8 = smov 112   ;;  %s3738_s9 = smov 80   ;;  %vm2007_vm10 = vcmask 261312   ;;  %vm2650_vm11 = vcmask 1043456  }
 0x104   : > { %3218 = vmatprep.subr.bf16.mxu1 %v3732_v13  ;;  %3256 = vmatprep.mubr.msk.bf16.mxu0 %vm3733_vm5, %v3732_v13  ;;  %s3739_s20 = smov 104   ;;  %s3740_s21 = smov 72  }
 0x105   : > { %v834_v32 = vsub.s32 0, %v3974_v27  ;;  %s3741_s22 = smov 64   ;;  %s3742_s24 = smov 56  }
 0x106   : > { %v744_v40 = vld [vmem:[#allocation2 + $0x20] sm:$0xff]  ;;  %v745_v41 = vld [vmem:[#allocation2 + $0x28] sm:$0xff]  ;;  %s3743_s27 = smov 48   ;;  %s3745_s29 = smov 8  }
 0x107   : > { %v742_v35 = vld [vmem:[#allocation2 + $0x10] sm:$0xff]  ;;  %v741_v36 = vld [vmem:[#allocation2 + $0x8] sm:$0xff]  ;;  %v765_v44 = vsel %vm752_vm4, %v744_v40, 0.0  ;;  %v768_v45 = vsel %vm752_vm4, %v745_v41, 0.0  ;;  %3219 = vmatpush3.bf16.msra.mxu1 %v3513_v14  ;;  %s3746_s18 = smov 16   ;;  %s3747_s17 = smov 24  }
 0x108   : > { %v740_v34 = vld [vmem:[#allocation2] sm:$0xff]  ;;  %v759_v38 = vsel %vm752_vm4, %v742_v35, 0.0  ;;  %v743_v39 = vld [vmem:[#allocation2 + $0x18] sm:$0xff]  ;;  %v756_v42 = vsel %vm752_vm4, %v741_v36, 0.0  ;;  %3232 = vmatprep.subr.bf16.mxu1 %v3732_v13  ;;  %p3097_p5 = scmp.ne.s32.totalorder %s3837_s19, 1 }
 0x109   : > { %v753_v37 = vsel %vm752_vm4, %v740_v34, 0.0  ;;  %760 = vadd.xlane.f32.xlu1 %v759_v38  ;;  %v762_v43 = vsel %vm752_vm4, %v743_v39, 0.0  ;;  %vm3749_vm12 = vmmov (!%p3097_p5), 0   ;;  %vm2828_vm13 = vcmask (!%p3097_p5), 1040384  }
 0x10a   : > { %754 = vadd.xlane.f32.xlu0 %v753_v37  ;;  %vm2897_vm14 = vcmask (!%p3097_p5), 74752  }
 0x10d   : > { %763 = vadd.xlane.f32.xlu1 %v762_v43 }
 0x10e   : > { %757 = vadd.xlane.f32.xlu0 %v756_v42 }
 0x111   : > { %769 = vadd.xlane.f32.xlu1 %v768_v45 }
 0x112   : > { %766 = vadd.xlane.f32.xlu0 %v765_v44 }
 0x196   : > { %v761_v47 = vpop.xlane.xlu1 %760 }
 0x197   : > { %v755_v46 = vpop.xlane.xlu0 %754  ;;  %v774_v49 = vmul.f32 0.03125, %v761_v47 }
 0x198   : > { %v772_v48 = vmul.f32 0.03125, %v755_v46 }
 0x199   : > { %v3936_v51 = vsub.f32 %v742_v35, %v774_v49 }
 0x19a   : > { %v3934_v50 = vsub.f32 %v740_v34, %v772_v48  ;;  %v764_v53 = vpop.xlane.xlu1 %763  ;;  %v738_v34 = vld [vmem:[%s3846_s25] sm:$0xff] }
 0x19b   : > { %v758_v52 = vpop.xlane.xlu0 %757  ;;  %v775_v55 = vmul.f32 0.03125, %v764_v53  ;;  %v786_v57 = vmul.f32 %v3936_v51, %v3936_v51 }
 0x19c   : > { %v773_v54 = vmul.f32 0.03125, %v758_v52  ;;  %v784_v56 = vmul.f32 %v3934_v50, %v3934_v50 }
 0x19d   : > { %v3944_v59 = vsub.f32 %v743_v39, %v775_v55  ;;  %v796_v63 = vsel %vm752_vm4, %v786_v57, 0.0  ;;  %v835_v39 = vrot.slane %v738_v34, %v834_v32 }
 0x19e   : > { %v3942_v58 = vsub.f32 %v741_v36, %v773_v54  ;;  %v790_v60 = vsel %vm752_vm4, %v784_v56, 0.0  ;;  %v770_v62 = vpop.xlane.xlu1 %769 }
 0x19f   : > { %791 = vadd.xlane.f32.xlu0 %v790_v60  ;;  %v767_v61 = vpop.xlane.xlu0 %766  ;;  %v777_v1 = vmul.f32 0.03125, %v770_v62  ;;  %v787_v3 = vmul.f32 %v3944_v59, %v3944_v59 }
 0x1a0   : > { %v776_v0 = vmul.f32 0.03125, %v767_v61  ;;  %v785_v2 = vmul.f32 %v3942_v58, %v3942_v58 }
 0x1a1   : > { %v3954_v5 = vsub.f32 %v745_v41, %v777_v1  ;;  %v799_v7 = vsel %vm752_vm4, %v787_v3, 0.0  ;;  %v861_v3 = vsub.s32 6, %v3974_v27 }
 0x1a2   : > { %v3952_v4 = vsub.f32 %v744_v40, %v776_v0  ;;  %v793_v6 = vsel %vm752_vm4, %v785_v2, 0.0  ;;  %v844_v40 = vsub.s32 1, %v3974_v27 }
 0x1a3   : > { %797 = vadd.xlane.f32.xlu0 %v796_v63  ;;  %794 = vadd.xlane.f32.xlu1 %v793_v6  ;;  %v789_v9 = vmul.f32 %v3954_v5, %v3954_v5 }
 0x1a4   : > { %v788_v8 = vmul.f32 %v3952_v4, %v3952_v4  ;;  %v845_v44 = vrot.slane %v738_v34, %v844_v40 }
 0x1a5   : > { %v805_v11 = vsel %vm752_vm4, %v789_v9, 0.0 }
 0x1a6   : > { %v802_v10 = vsel %vm752_vm4, %v788_v8, 0.0 }
 0x1a7   : > { %800 = vadd.xlane.f32.xlu1 %v799_v7  ;;  %803 = vadd.xlane.f32.xlu0 %v802_v10 }
 0x1ab   : > { %806 = vadd.xlane.f32.xlu1 %v805_v11 }
 0x22c   : > { %v792_v15 = vpop.xlane.xlu0 %791 }
 0x22d   : > { %v808_v16 = vmul.f32 0.03125, %v792_v15 }
 0x22f   : > { %v814_v17 = vadd.f32 1e-06, %v808_v16 }
 0x230   : > { %v795_v18 = vpop.xlane.xlu1 %794  ;;  %v798_v19 = vpop.xlane.xlu0 %797 }
 0x231   : > { %3528 = vrsqrt.f32 %v814_v17  ;;  %v809_v21 = vmul.f32 0.03125, %v795_v18  ;;  %v810_v22 = vmul.f32 0.03125, %v798_v19 }
 0x233   : > { %v815_v23 = vadd.f32 1e-06, %v809_v21  ;;  %v816_v24 = vadd.f32 1e-06, %v810_v22 }
 0x234   : > { %v801_v25 = vpop.xlane.xlu1 %800  ;;  %v804_v26 = vpop.xlane.xlu0 %803 }
 0x235   : > { %3530 = vrsqrt.f32 %v815_v23  ;;  %v811_v28 = vmul.f32 0.03125, %v801_v25  ;;  %v812_v30 = vmul.f32 0.03125, %v804_v26 }
 0x236   : > { %3532 = vrsqrt.f32 %v816_v24 }
 0x237   : > { %v817_v29 = vadd.f32 1e-06, %v811_v28  ;;  %v818_v36 = vadd.f32 1e-06, %v812_v30 }
 0x238   : > { %v807_v31 = vpop.xlane.xlu1 %806 }
 0x239   : > { %3534 = vrsqrt.f32 %v817_v29  ;;  %v813_v33 = vmul.f32 0.03125, %v807_v31 }
 0x23b   : > { %v3529_v35 = vpop.eup %3528  ;;  %v819_v37 = vadd.f32 1e-06, %v813_v33 }
 0x23c   : > { %v826_v38 = vmul.f32 %v3529_v35, %v3934_v50 }
 0x23d   : > { %3536 = vrsqrt.f32 %v819_v37 }
 0x23e   : > { %3538 = vrsqrt.f32 %v818_v36  ;;  %v836_v43 = vmul.f32 %v835_v39, %v826_v38 }
 0x23f   : > { %v3531_v41 = vpop.eup %3530 }
 0x240   : > { %v827_v42 = vmul.f32 %v3531_v41, %v3942_v58  ;;  %v3533_v45 = vpop.eup %3532  ;;  %v846_v48 = vadd.f32 %v845_v44, %v836_v43 }
 0x241   : > { %v828_v50 = vmul.f32 %v3533_v45, %v3936_v51 }
 0x242   : > { %v837_v46 = vmul.f32 %v835_v39, %v827_v42 }
 0x243   : > { %v3535_v47 = vpop.eup %3534  ;;  %v838_v56 = vmul.f32 %v835_v39, %v828_v50 }
 0x244   : > { %v847_v49 = vadd.f32 %v845_v44, %v837_v46  ;;  %v829_v52 = vmul.f32 %v3535_v47, %v3944_v59 }
 0x245   : > { %v848_v61 = vadd.f32 %v845_v44, %v838_v56 }
 0x246   : > { %v852_v53 = vpack.c.bf16 %v847_v49, %v846_v48  ;;  %v839_v54 = vmul.f32 %v835_v39, %v829_v52 }
 0x247   : > { %v3537_v55 = vpop.eup %3536 }
 0x248   : > { %3221 = vmatmul.mubr.msk.bf16.vlgmr.msra.gmra.mrb[0].mxu1 %vm752_vm4, %v852_v53  ;;  %v3539_v57 = vpop.eup %3538  ;;  %v849_v58 = vadd.f32 %v845_v44, %v839_v54  ;;  %v831_v60 = vmul.f32 %v3537_v55, %v3954_v5  ;;  %v862_v5 = vrot.slane %v738_v34, %v861_v3 }
 0x249   : > { %3224 = vmatprep.mubr.msk.bf16.mxu1 %vm3733_vm5, %v3732_v13  ;;  %v830_v62 = vmul.f32 %v3539_v57, %v3952_v4 }
 0x24a   : > { %v853_v63 = vpack.c.bf16 %v849_v58, %v848_v61  ;;  %v841_v51 = vmul.f32 %v835_v39, %v831_v60 }
 0x24b   : > { %v840_v59 = vmul.f32 %v835_v39, %v830_v62 }
 0x24c   : > { %v851_v0 = vadd.f32 %v845_v44, %v841_v51 }
 0x24d   : > { %v850_v1 = vadd.f32 %v845_v44, %v840_v59 }
 0x24f   : > { %v854_v2 = vpack.c.bf16 %v851_v0, %v850_v1 }
 0x250   : > { %3225 = vmatmul.mubr.msk.bf16.gmra.mrb[4].mxu1 %vm752_vm4, %v853_v63 }
 0x251   : > { %3228 = vmatprep.mubr.msk.bf16.mxu1 %vm3733_vm5, %v3732_v13 }
 0x258   : > { %3229 = vmatmul.mubr.msk.bf16.gmra.mrb[8].mxu1 %vm752_vm4, %v854_v2 }
 0x259   : > { %3238 = vmatprep.mubr.msk.bf16.mxu1 %vm3733_vm5, %v3732_v13 }
 0x31b   : > { %v918_v4 = vpop.f32.mrb[0].mxu1 }
 0x31c   : > { %v3222_v6 = vpop.f32.mrb[1].mxu1  ;;  %v919_v8 = vadd.f32 %v918_v4, %v862_v5 }
 0x31d   : > { %v921_v7 = vpop.f32.mrb[2].mxu1 }
 0x31e   : > { %v922_v9 = vadd.f32 %v921_v7, %v862_v5  ;;  %v3223_v10 = vpop.f32.mrb[3].mxu1 }
 0x320   : > { %v3999_v11 = vpack.c.bf16 %v922_v9, %v919_v8  ;;  %v4109_v8 = vld [vmem:[%s4757_s7 + $0x8] sm:$0xff] }
 0x322   : > { %947 = vrot.lane.b32.xlu0 %v3999_v11, %s3734_s28 }
 0x323   : > { %v926_v12 = vpop.f32.mrb[4].mxu1 }
 0x324   : > { %v3226_v14 = vpop.f32.mrb[5].mxu1  ;;  %v927_v16 = vadd.f32 %v926_v12, %v862_v5 }
 0x325   : > { %v929_v15 = vpop.f32.mrb[6].mxu1 }
 0x326   : > { %v930_v17 = vadd.f32 %v929_v15, %v862_v5  ;;  %v3227_v18 = vpop.f32.mrb[7].mxu1 }
 0x327   : > { %v4124_v18 = vld [vmem:[%s4757_s7 + $0x10] sm:$0xff] }
 0x328   : > { %v4002_v19 = vpack.c.bf16 %v930_v17, %v927_v16 }
 0x32a   : > { %1200 = vrot.lane.b32.xlu0 %v4002_v19, %s3735_s5  ;;  %949 = vrot.lane.b32.xlu1 %v4002_v19, %s3734_s28 }
 0x32b   : > { %v934_v20 = vpop.f32.mrb[8].mxu1 }
 0x32c   : > { %v3230_v21 = vpop.f32.mrb[9].mxu1  ;;  %v935_v23 = vadd.f32 %v934_v20, %v862_v5 }
 0x32d   : > { %v937_v22 = vpop.f32.mrb[10].mxu1 }
 0x32e   : > { %v938_v24 = vadd.f32 %v937_v22, %v862_v5  ;;  %1192 = vrot.lane.b32.xlu0 %v3999_v11, %s3736_s6  ;;  %v3231_v25 = vpop.f32.mrb[11].mxu1  ;;  %v4104_v5 = vld [vmem:[%s4757_s7] sm:$0xff] }
 0x330   : > { %v4007_v26 = vpack.c.bf16 %v938_v24, %v935_v23  ;;  %v4129_v23 = vld [vmem:[%s4757_s7 + $0x18] sm:$0xff] }
 0x332   : > { %1194 = vrot.lane.b32.xlu0 %v4002_v19, %s3736_s6  ;;  %951 = vrot.lane.b32.xlu1 %v4007_v26, %s3734_s28 }
 0x336   : > { %1196 = vrot.lane.b32.xlu0 %v4007_v26, %s3736_s6  ;;  %1198 = vrot.lane.b32.xlu1 %v3999_v11, %s3735_s5 }
 0x33a   : > { %1466 = vrot.lane.b32.xlu0 %v3999_v11, %s3737_s8  ;;  %1202 = vrot.lane.b32.xlu1 %v4007_v26, %s3735_s5  ;;  %s4778_s5 = sld [smem:[#allocation9_spill]] (!%p3097_p5) }
 0x33e   : > { %1468 = vrot.lane.b32.xlu0 %v4002_v19, %s3737_s8  ;;  %1472 = vrot.lane.b32.xlu1 %v3999_v11, %s3738_s9 }
 0x342   : > { %1470 = vrot.lane.b32.xlu0 %v4007_v26, %s3737_s8  ;;  %1474 = vrot.lane.b32.xlu1 %v4002_v19, %s3738_s9 }
 0x346   : > { %1740 = vrot.lane.b32.xlu0 %v3999_v11, %s3739_s20  ;;  %1476 = vrot.lane.b32.xlu1 %v4007_v26, %s3738_s9 }
 0x34a   : > { %1744 = vrot.lane.b32.xlu0 %v4007_v26, %s3739_s20  ;;  %1746 = vrot.lane.b32.xlu1 %v3999_v11, %s3740_s21 }
 0x34e   : > { %1113 = vrot.lane.b32.xlu0 %v4002_v19, %s3741_s22  ;;  %1748 = vrot.lane.b32.xlu1 %v4002_v19, %s3740_s21 }
 0x352   : > { %1362 = vrot.lane.b32.xlu0 %v4002_v19, %s3742_s24  ;;  %1750 = vrot.lane.b32.xlu1 %v4007_v26, %s3740_s21 }
 0x356   : > { %1742 = vrot.lane.b32.xlu1 %v4002_v19, %s3739_s20 }
 0x35a   : > { %1111 = vrot.lane.b32.xlu1 %v3999_v11, %s3741_s22 }
 0x35e   : > { %1360 = vrot.lane.b32.xlu1 %v3999_v11, %s3742_s24 }
 0x362   : > { %1115 = vrot.lane.b32.xlu1 %v4007_v26, %s3741_s22 }
 0x394   : > { %v948_v28 = vpop.permute.xlu0 %947 }
 0x395   : > { %v964_v29 = vsel %vm953_vm6, %v948_v28, 0 }
 0x396   : > { %3233 = vmatpush3.bf16.xpose.msra.mxu1 %v964_v29 }
 0x397   : > { %3234 = vmatprep.subr.bf16.mxu1 %v3732_v13 }
 0x39c   : > { %v1201_v30 = vpop.permute.xlu0 %1200  ;;  %v950_v31 = vpop.permute.xlu1 %949 }
 0x39d   : > { %v967_v33 = vsel %vm953_vm6, %v950_v31, 0  ;;  %v1217_v46 = vsel %vm953_vm6, %v1201_v30, 0 }
 0x39e   : > { %3235 = vmatpush3.bf16.xpose.msra.mxu1 %v967_v33  ;;  %v4142_v33 = vld [vmem:[%s4757_s7 + $0x20] sm:$0xff] }
 0x39f   : > { %3236 = vmatprep.subr.bf16.mxu1 %v3732_v13 }
 0x3a0   : > { %v1193_v34 = vpop.permute.xlu0 %1192 }
 0x3a4   : > { %v952_v35 = vpop.permute.xlu1 %951  ;;  %v1195_v37 = vpop.permute.xlu0 %1194 }
 0x3a5   : > { %v970_v36 = vsel %vm953_vm6, %v952_v35, 0 }
 0x3a6   : > { %3237 = vmatpush3.bf16.xpose.msra.mxu1 %v970_v36 }
 0x3a7   : > { %3268 = vmatprep.subr.bf16.mxu1 %v3732_v13 }
 0x3a8   : > { %v1199_v38 = vpop.permute.xlu1 %1198  ;;  %v1197_v39 = vpop.permute.xlu0 %1196 }
 0x3a9   : > { %v1214_v42 = vsel %vm953_vm6, %v1199_v38, 0  ;;  %v4149_v38 = vld [vmem:[%s4757_s7 + $0x28] sm:$0xff] }
 0x3ac   : > { %v1203_v41 = vpop.permute.xlu1 %1202  ;;  %v1467_v44 = vpop.permute.xlu0 %1466 }
 0x3ad   : > { %3239 = vmatmul.mubr.msk.bf16.vlgmr.msra.gmra.mrb[12].mxu1 %vm953_vm6, %v3999_v11  ;;  %v1220_v50 = vsel %vm953_vm6, %v1203_v41, 0 }
 0x3ae   : > { %3269 = vmatpush3.bf16.xpose.msra.mxu1 %v1214_v42  ;;  %3242 = vmatprep.mubr.msk.bf16.mxu1 %vm3733_vm5, %v3732_v13 }
 0x3af   : > { %3270 = vmatprep.subr.bf16.mxu1 %v3732_v13 }
 0x3b0   : > { %v1473_v43 = vpop.permute.xlu1 %1472  ;;  %v1469_v47 = vpop.permute.xlu0 %1468 }
 0x3b1   : > { %v1488_v56 = vsel %vm953_vm6, %v1473_v43, 0 }
 0x3b4   : > { %v1475_v45 = vpop.permute.xlu1 %1474  ;;  %v1471_v52 = vpop.permute.xlu0 %1470 }
 0x3b5   : > { %3243 = vmatmul.mubr.msk.bf16.gmra.mrb[16].mxu1 %vm953_vm6, %v4002_v19  ;;  %v1491_v61 = vsel %vm953_vm6, %v1475_v45, 0 }
 0x3b6   : > { %3271 = vmatpush3.bf16.xpose.msra.mxu1 %v1217_v46  ;;  %3246 = vmatprep.mubr.msk.bf16.mxu1 %vm3733_vm5, %v3732_v13 }
 0x3b7   : > { %3272 = vmatprep.subr.bf16.mxu1 %v3732_v13 }
 0x3b8   : > { %v1477_v48 = vpop.permute.xlu1 %1476  ;;  %v1741_v54 = vpop.permute.xlu0 %1740 }
 0x3b9   : > { %v1494_v59 = vsel %vm953_vm6, %v1477_v48, 0 }
 0x3bc   : > { %v1747_v49 = vpop.permute.xlu1 %1746  ;;  %v1745_v58 = vpop.permute.xlu0 %1744 }
 0x3bd   : > { %3247 = vmatmul.mubr.msk.bf16.gmra.mrb[20].mxu1 %vm953_vm6, %v4007_v26  ;;  %v1762_v0 = vsel %vm953_vm6, %v1747_v49, 0 }
 0x3be   : > { %3273 = vmatpush3.bf16.xpose.msra.mxu1 %v1220_v50  ;;  %3274 = vmatprep.mubr.msk.bf16.mxu1 %vm3733_vm5, %v3732_v13 }
 0x3bf   : > { %3304 = vmatprep.subr.bf16.mxu1 %v3732_v13 }
 0x3c0   : > { %v1749_v53 = vpop.permute.xlu1 %1748  ;;  %v1114_v62 = vpop.permute.xlu0 %1113 }
 0x3c1   : > { %v1765_v1 = vsel %vm953_vm6, %v1749_v53, 0 }
 0x3c4   : > { %v1751_v55 = vpop.permute.xlu1 %1750 }
 0x3c5   : > { %3275 = vmatmul.mubr.msk.bf16.vlgmr.msra.gmra.mrb[24].mxu1 %vm953_vm6, %v1193_v34  ;;  %v1768_v2 = vsel %vm953_vm6, %v1751_v55, 0 }
 0x3c6   : > { %3305 = vmatpush3.bf16.xpose.msra.mxu1 %v1488_v56  ;;  %3278 = vmatprep.mubr.msk.bf16.mxu1 %vm3733_vm5, %v3732_v13 }
 0x3c7   : > { %3306 = vmatprep.subr.bf16.mxu1 %v3732_v13 }
 0x3c8   : > { %v1743_v57 = vpop.permute.xlu1 %1742 }
 0x3cc   : > { %v1112_v60 = vpop.permute.xlu1 %1111 }
 0x3cd   : > { %3251 = vmatpush3.bf16.msra.mxu0 %v1112_v60  ;;  %3279 = vmatmul.mubr.msk.bf16.gmra.mrb[28].mxu1 %vm953_vm6, %v1195_v37 }
 0x3ce   : > { %3307 = vmatpush3.bf16.xpose.msra.mxu1 %v1491_v61  ;;  %3252 = vmatprep.subr.bf16.mxu0 %v3732_v13 }
 0x3cf   : > { %3282 = vmatprep.mubr.msk.bf16.mxu1 %vm3733_vm5, %v3732_v13  ;;  %3308 = vmatprep.subr.bf16.mxu1 %v3732_v13 }
 0x3d0   : > { %v4068_v63 = vpop.permute.xlu1 %1360 }
 0x3d1   : > { %3253 = vmatpush3.bf16.msra.mxu0 %v1114_v62 }
 0x3d2   : > { %3254 = vmatprep.subr.bf16.mxu0 %v3732_v13 }
 0x3d4   : > { %v1116_v51 = vpop.permute.xlu1 %1115 }
 0x3d5   : > { %3255 = vmatpush3.bf16.msra.mxu0 %v1116_v51  ;;  %3283 = vmatmul.mubr.msk.bf16.gmra.mrb[32].mxu1 %vm953_vm6, %v1197_v39 }
 0x3d6   : > { %3309 = vmatpush3.bf16.xpose.msra.mxu1 %v1494_v59  ;;  %3310 = vmatprep.mubr.msk.bf16.mxu1 %vm3733_vm5, %v3732_v13 }
 0x3d7   : > { %3340 = vmatprep.subr.bf16.mxu1 %v3732_v13  ;;  %3286 = vmatprep.subr.bf16.mxu0 %v3732_v13 }
 0x3dd   : > { %3311 = vmatmul.mubr.msk.bf16.vlgmr.msra.gmra.mrb[36].mxu1 %vm953_vm6, %v1467_v44 }
 0x3de   : > { %3341 = vmatpush3.bf16.xpose.msra.mxu1 %v1762_v0  ;;  %3314 = vmatprep.mubr.msk.bf16.mxu1 %vm3733_vm5, %v3732_v13 }
 0x3df   : > { %3342 = vmatprep.subr.bf16.mxu1 %v3732_v13 }
 0x3e5   : > { %3315 = vmatmul.mubr.msk.bf16.gmra.mrb[40].mxu1 %vm953_vm6, %v1469_v47 }
 0x3e6   : > { %3343 = vmatpush3.bf16.xpose.msra.mxu1 %v1765_v1  ;;  %3318 = vmatprep.mubr.msk.bf16.mxu1 %vm3733_vm5, %v3732_v13 }
 0x3e7   : > { %3344 = vmatprep.subr.bf16.mxu1 %v3732_v13 }
 0x3ed   : > { %3319 = vmatmul.mubr.msk.bf16.gmra.mrb[44].mxu1 %vm953_vm6, %v1471_v52 }
 0x3ee   : > { %3345 = vmatpush3.bf16.xpose.msra.mxu1 %v1768_v2  ;;  %3346 = vmatprep.mubr.msk.bf16.mxu1 %vm3733_vm5, %v3732_v13 }
 0x3ef   : > { %3376 = vmatprep.subr.bf16.mxu1 %v3732_v13 }
 0x3f5   : > { %3347 = vmatmul.mubr.msk.bf16.vlgmr.msra.gmra.mrb[48].mxu1 %vm953_vm6, %v1741_v54 }
 0x3f6   : > { %3350 = vmatprep.mubr.msk.bf16.mxu1 %vm3733_vm5, %v3732_v13 }
 0x3fd   : > { %3351 = vmatmul.mubr.msk.bf16.gmra.mrb[52].mxu1 %vm953_vm6, %v1743_v57 }
 0x3fe   : > { %3354 = vmatprep.mubr.msk.bf16.mxu1 %vm3733_vm5, %v3732_v13 }
 0x405   : > { %3355 = vmatmul.mubr.msk.bf16.gmra.mrb[56].mxu1 %vm953_vm6, %v1745_v58 }
 0x406   : > { %3380 = vmatprep.mubr.msk.bf16.mxu1 %vm3733_vm5, %v3732_v13 }
 0x480   : > { %v1006_v3 = vpop.f32.mrb[12].mxu1 }
 0x481   : > { %v1029_v4 = vmul.f32 0.35355338, %v1006_v3  ;;  %v3240_v6 = vpop.f32.mrb[13].mxu1 }
 0x482   : > { %v1009_v7 = vpop.f32.mrb[14].mxu1 }
 0x483   : > { %v1030_v9 = vmul.f32 0.35355338, %v1009_v7  ;;  %v3241_v10 = vpop.f32.mrb[15].mxu1  ;;  %v4112_v12 = vadd.f32 %v1029_v4, %v4104_v5 }
 0x485   : > { %v1042_v14 = vsel %vm1041_vm7, %v4112_v12, -inf  ;;  %v4117_v15 = vadd.f32 %v1030_v9, %v4109_v8 }
 0x486   : > { %1043 = vmax.xlane.f32.xlu1 %v1042_v14 }
 0x487   : > { %v1045_v16 = vsel %vm1041_vm7, %v4117_v15, -inf }
 0x488   : > { %1046 = vmax.xlane.f32.xlu0 %v1045_v16  ;;  %v1014_v17 = vpop.f32.mrb[16].mxu1 }
 0x489   : > { %v1031_v20 = vmul.f32 0.35355338, %v1014_v17  ;;  %v3244_v21 = vpop.f32.mrb[17].mxu1 }
 0x48a   : > { %v1017_v22 = vpop.f32.mrb[18].mxu1 }
 0x48b   : > { %v1032_v24 = vmul.f32 0.35355338, %v1017_v22  ;;  %v3245_v25 = vpop.f32.mrb[19].mxu1  ;;  %v4132_v28 = vadd.f32 %v1031_v20, %v4124_v18 }
 0x48d   : > { %v1048_v29 = vsel %vm1041_vm7, %v4132_v28, -inf  ;;  %v4137_v30 = vadd.f32 %v1032_v24, %v4129_v23 }
 0x48e   : > { %1049 = vmax.xlane.f32.xlu0 %v1048_v29 }
 0x48f   : > { %v1051_v36 = vsel %vm1041_vm7, %v4137_v30, -inf }
 0x490   : > { %v1022_v31 = vpop.f32.mrb[20].mxu1 }
 0x491   : > { %v1033_v34 = vmul.f32 0.35355338, %v1022_v31  ;;  %v3248_v35 = vpop.f32.mrb[21].mxu1 }
 0x492   : > { %1052 = vmax.xlane.f32.xlu0 %v1051_v36  ;;  %v1025_v37 = vpop.f32.mrb[22].mxu1 }
 0x493   : > { %v1034_v39 = vmul.f32 0.35355338, %v1025_v37  ;;  %v3249_v41 = vpop.f32.mrb[23].mxu1  ;;  %v4152_v42 = vadd.f32 %v1033_v34, %v4142_v33 }
 0x495   : > { %v1054_v43 = vsel %vm1041_vm7, %v4152_v42, -inf  ;;  %v4157_v44 = vadd.f32 %v1034_v39, %v4149_v38 }
 0x496   : > { %1055 = vmax.xlane.f32.xlu1 %v1054_v43 }
 0x497   : > { %v1057_v45 = vsel %vm1041_vm7, %v4157_v44, -inf }
 0x498   : > { %1058 = vmax.xlane.f32.xlu0 %v1057_v45  ;;  %v1256_v46 = vpop.f32.mrb[24].mxu1 }
 0x499   : > { %v1279_v47 = vmul.f32 0.35355338, %v1256_v46  ;;  %v3276_v48 = vpop.f32.mrb[25].mxu1 }
 0x49a   : > { %v1259_v49 = vpop.f32.mrb[26].mxu1 }
 0x49b   : > { %v1280_v50 = vmul.f32 0.35355338, %v1259_v49  ;;  %v3277_v52 = vpop.f32.mrb[27].mxu1  ;;  %v4162_v53 = vadd.f32 %v1279_v47, %v4104_v5 }
 0x49d   : > { %v1291_v54 = vsel %vm1041_vm7, %v4162_v53, -inf  ;;  %v4167_v55 = vadd.f32 %v1280_v50, %v4109_v8 }
 0x49e   : > { %1292 = vmax.xlane.f32.xlu1 %v1291_v54 }
 0x49f   : > { %v1294_v56 = vsel %vm1041_vm7, %v4167_v55, -inf }
 0x4a0   : > { %1295 = vmax.xlane.f32.xlu0 %v1294_v56  ;;  %v1264_v57 = vpop.f32.mrb[28].mxu1 }
 0x4a1   : > { %v1281_v58 = vmul.f32 0.35355338, %v1264_v57  ;;  %v3280_v60 = vpop.f32.mrb[29].mxu1 }
 0x4a2   : > { %v1267_v61 = vpop.f32.mrb[30].mxu1 }
 0x4a3   : > { %v1282_v62 = vmul.f32 0.35355338, %v1267_v61  ;;  %v3281_v51 = vpop.f32.mrb[31].mxu1  ;;  %v4172_v59 = vadd.f32 %v1281_v58, %v4124_v18 }
 0x4a5   : > { %v1297_v0 = vsel %vm1041_vm7, %v4172_v59, -inf  ;;  %v4177_v1 = vadd.f32 %v1282_v62, %v4129_v23 }
 0x4a6   : > { %1298 = vmax.xlane.f32.xlu1 %v1297_v0 }
 0x4a7   : > { %v1300_v2 = vsel %vm1041_vm7, %v4177_v1, -inf }
 0x4a8   : > { %1301 = vmax.xlane.f32.xlu0 %v1300_v2  ;;  %v1272_v3 = vpop.f32.mrb[32].mxu1 }
 0x4a9   : > { %v1283_v4 = vmul.f32 0.35355338, %v1272_v3  ;;  %v3284_v6 = vpop.f32.mrb[33].mxu1 }
 0x4aa   : > { %v1275_v7 = vpop.f32.mrb[34].mxu1 }
 0x4ab   : > { %v3285_v9 = vpop.f32.mrb[35].mxu1  ;;  %v4182_v10 = vadd.f32 %v1283_v4, %v4142_v33  ;;  %v1284_v49 = vmul.f32 0.35355338, %v1275_v7 }
 0x4ad   : > { %v1303_v14 = vsel %vm1041_vm7, %v4182_v10, -inf  ;;  %v4193_v60 = vadd.f32 %v1284_v49, %v4149_v38  ;;  %v4257_v49 = vpop.permute.xlu0 %1362 }
 0x4ae   : > { %1304 = vmax.xlane.f32.xlu1 %v1303_v14 }
 0x4af   : > { %v1306_v0 = vsel %vm1041_vm7, %v4193_v60, -inf }
 0x4b0   : > { %v1530_v16 = vpop.f32.mrb[36].mxu1 }
 0x4b1   : > { %v3312_v17 = vpop.f32.mrb[37].mxu1  ;;  %v1553_v54 = vmul.f32 0.35355338, %v1530_v16 }
 0x4b2   : > { %v1533_v20 = vpop.f32.mrb[38].mxu1 }
 0x4b3   : > { %v3313_v21 = vpop.f32.mrb[39].mxu1  ;;  %v1554_v58 = vmul.f32 0.35355338, %v1533_v20  ;;  %v4196_v62 = vadd.f32 %v1553_v54, %v4104_v5 }
 0x4b5   : > { %v4201_v2 = vadd.f32 %v1554_v58, %v4109_v8  ;;  %v1565_v4 = vsel %vm1041_vm7, %v4196_v62, -inf }
 0x4b7   : > { %v1568_v9 = vsel %vm1041_vm7, %v4201_v2, -inf }
 0x4b8   : > { %v1538_v22 = vpop.f32.mrb[40].mxu1 }
 0x4b9   : > { %v3316_v24 = vpop.f32.mrb[41].mxu1  ;;  %v1555_v61 = vmul.f32 0.35355338, %v1538_v22 }
 0x4ba   : > { %v1541_v25 = vpop.f32.mrb[42].mxu1 }
 0x4bb   : > { %v3317_v29 = vpop.f32.mrb[43].mxu1  ;;  %v1556_v51 = vmul.f32 0.35355338, %v1541_v25  ;;  %v4206_v6 = vadd.f32 %v1555_v61, %v4124_v18 }
 0x4bd   : > { %v4211_v14 = vadd.f32 %v1556_v51, %v4129_v23  ;;  %v1571_v17 = vsel %vm1041_vm7, %v4206_v6, -inf }
 0x4be   : > { %1634 = vrot.lane.b32.xlu0 %v3999_v11, %s3743_s27 }
 0x4bf   : > { %1364 = vrot.lane.b32.xlu1 %v4007_v26, %s3742_s24  ;;  %v1574_v22 = vsel %vm1041_vm7, %v4211_v14, -inf  ;;  %s3744_s24 = smov 40  }
 0x4c0   : > { %v1546_v31 = vpop.f32.mrb[44].mxu1 }
 0x4c1   : > { %v3320_v34 = vpop.f32.mrb[45].mxu1  ;;  %v1557_v3 = vmul.f32 0.35355338, %v1546_v31 }
 0x4c2   : > { %1636 = vrot.lane.b32.xlu0 %v4002_v19, %s3743_s27  ;;  %v1549_v35 = vpop.f32.mrb[46].mxu1 }
 0x4c3   : > { %v3321_v36 = vpop.f32.mrb[47].mxu1  ;;  %v1558_v7 = vmul.f32 0.35355338, %v1549_v35  ;;  %v4216_v20 = vadd.f32 %v1557_v3, %v4142_v33 }
 0x4c5   : > { %v4221_v24 = vadd.f32 %v1558_v7, %v4149_v38  ;;  %v1577_v29 = vsel %vm1041_vm7, %v4216_v20, -inf }
 0x4c7   : > { %v1580_v35 = vsel %vm1041_vm7, %v4221_v24, -inf }
 0x4c8   : > { %v1804_v37 = vpop.f32.mrb[48].mxu1 }
 0x4c9   : > { %v3348_v39 = vpop.f32.mrb[49].mxu1  ;;  %v1827_v16 = vmul.f32 0.35355338, %v1804_v37 }
 0x4ca   : > { %v1807_v41 = vpop.f32.mrb[50].mxu1 }
 0x4cb   : > { %v3349_v43 = vpop.f32.mrb[51].mxu1  ;;  %v1828_v21 = vmul.f32 0.35355338, %v1807_v41  ;;  %v4226_v31 = vadd.f32 %v1827_v16, %v4104_v5 }
 0x4cd   : > { %v4231_v36 = vadd.f32 %v1828_v21, %v4109_v8  ;;  %v1839_v39 = vsel %vm1041_vm7, %v4226_v31, -inf }
 0x4cf   : > { %v1842_v5 = vsel %vm1041_vm7, %v4231_v36, -inf }
 0x4d0   : > { %v1812_v45 = vpop.f32.mrb[52].mxu1 }
 0x4d1   : > { %v3352_v46 = vpop.f32.mrb[53].mxu1  ;;  %v1829_v25 = vmul.f32 0.35355338, %v1812_v45 }
 0x4d2   : > { %v1815_v47 = vpop.f32.mrb[54].mxu1 }
 0x4d3   : > { %v3353_v48 = vpop.f32.mrb[55].mxu1  ;;  %v1830_v34 = vmul.f32 0.35355338, %v1815_v47  ;;  %v4236_v41 = vadd.f32 %v1829_v25, %v4124_v18 }
 0x4d5   : > { %v4241_v45 = vadd.f32 %v1830_v34, %v4129_v23  ;;  %v1845_v8 = vsel %vm1041_vm7, %v4236_v41, -inf }
 0x4d7   : > { %v1848_v18 = vsel %vm1041_vm7, %v4241_v45, -inf }
 0x4d8   : > { %v1820_v50 = vpop.f32.mrb[56].mxu1 }
 0x4d9   : > { %v3356_v52 = vpop.f32.mrb[57].mxu1  ;;  %v1831_v37 = vmul.f32 0.35355338, %v1820_v50 }
 0x4da   : > { %v1823_v56 = vpop.f32.mrb[58].mxu1 }
 0x4db   : > { %v3357_v57 = vpop.f32.mrb[59].mxu1  ;;  %v1832_v43 = vmul.f32 0.35355338, %v1823_v56  ;;  %v4246_v46 = vadd.f32 %v1831_v37, %v4142_v33 }
 0x4dd   : > { %v4251_v47 = vadd.f32 %v1832_v43, %v4149_v38  ;;  %v1851_v48 = vsel %vm1041_vm7, %v4246_v46, -inf }
 0x4df   : > { %v1854_v23 = vsel %vm1041_vm7, %v4251_v47, -inf }
 0x4e1   : > { %1307 = vmax.xlane.f32.xlu0 %v1306_v0 }
 0x4e3   : > { %1566 = vmax.xlane.f32.xlu1 %v1565_v4 }
 0x4e5   : > { %1569 = vmax.xlane.f32.xlu0 %v1568_v9 }
 0x4e7   : > { %1572 = vmax.xlane.f32.xlu1 %v1571_v17 }
 0x4e9   : > { %1575 = vmax.xlane.f32.xlu0 %v1574_v22 }
 0x4eb   : > { %1578 = vmax.xlane.f32.xlu1 %v1577_v29 }
 0x4ed   : > { %1581 = vmax.xlane.f32.xlu0 %v1580_v35 }
 0x4ef   : > { %1840 = vmax.xlane.f32.xlu1 %v1839_v39 }
 0x4f1   : > { %1843 = vmax.xlane.f32.xlu0 %v1842_v5 }
 0x4f3   : > { %1846 = vmax.xlane.f32.xlu1 %v1845_v8 }
 0x4f5   : > { %1849 = vmax.xlane.f32.xlu0 %v1848_v18 }
 0x4f7   : > { %1852 = vmax.xlane.f32.xlu1 %v1851_v48 }
 0x4f9   : > { %1855 = vmax.xlane.f32.xlu0 %v1854_v23 }
 0x513   : > { %v1044_v33 = vpop.xlane.xlu1 %1043 }
 0x514   : > { %v1060_v50 = vsub.f32 %v4112_v12, %v1044_v33 }
 0x515   : > { %v1047_v52 = vpop.xlane.xlu0 %1046 }
 0x516   : > { %v1066_v54 = vmul.f32 1.442695, %v1060_v50  ;;  %v1061_v56 = vsub.f32 %v4117_v15, %v1047_v52 }
 0x518   : > { %3540 = vpow2.f32 %v1066_v54  ;;  %v1068_v38 = vmul.f32 1.442695, %v1061_v56 }
 0x51a   : > { %3542 = vpow2.f32 %v1068_v38 }
 0x51b   : > { %v1050_v57 = vpop.xlane.xlu0 %1049 }
 0x51c   : > { %v1062_v58 = vsub.f32 %v4132_v28, %v1050_v57 }
 0x51e   : > { %v1070_v61 = vmul.f32 1.442695, %v1062_v58 }
 0x51f   : > { %v1053_v51 = vpop.xlane.xlu0 %1052 }
 0x520   : > { %3544 = vpow2.f32 %v1070_v61  ;;  %v1063_v0 = vsub.f32 %v4137_v30, %v1053_v51 }
 0x522   : > { %v4263_v3 = vpop.eup %3540  ;;  %v1072_v4 = vmul.f32 1.442695, %v1063_v0 }
 0x523   : > { %v1056_v7 = vpop.xlane.xlu1 %1055  ;;  %v1078_v12 = vsel %vm1041_vm7, %v4263_v3, 0.0 }
 0x524   : > { %v4267_v9 = vpop.eup %3542  ;;  %3546 = vpow2.f32 %v1072_v4  ;;  %v1064_v15 = vsub.f32 %v4152_v42, %v1056_v7  ;;  %1079 = vadd.xlane.f32.xlu1 %v1078_v12 }
 0x525   : > { %v1059_v16 = vpop.xlane.xlu0 %1058  ;;  %v1081_v28 = vsel %vm1041_vm7, %v4267_v9, 0.0 }
 0x526   : > { %v1074_v17 = vmul.f32 1.442695, %v1064_v15  ;;  %v1065_v30 = vsub.f32 %v4157_v44, %v1059_v16  ;;  %1082 = vadd.xlane.f32.xlu0 %v1081_v28 }
 0x528   : > { %3548 = vpow2.f32 %v1074_v17  ;;  %v1076_v21 = vmul.f32 1.442695, %v1065_v30 }
 0x52a   : > { %v4273_v22 = vpop.eup %3544  ;;  %3550 = vpow2.f32 %v1076_v21 }
 0x52b   : > { %v1293_v25 = vpop.xlane.xlu1 %1292  ;;  %v1084_v29 = vsel %vm1041_vm7, %v4273_v22, 0.0 }
 0x52c   : > { %v1309_v42 = vsub.f32 %v4162_v53, %v1293_v25  ;;  %1085 = vadd.xlane.f32.xlu1 %v1084_v29 }
 0x52d   : > { %v1296_v18 = vpop.xlane.xlu0 %1295 }
 0x52e   : > { %v4278_v34 = vpop.eup %3546  ;;  %v1315_v35 = vmul.f32 1.442695, %v1309_v42  ;;  %v1310_v48 = vsub.f32 %v4167_v55, %v1296_v18 }
 0x52f   : > { %v1087_v37 = vsel %vm1041_vm7, %v4278_v34, 0.0 }
 0x530   : > { %3552 = vpow2.f32 %v1315_v35  ;;  %1088 = vadd.xlane.f32.xlu0 %v1087_v37  ;;  %v1317_v33 = vmul.f32 1.442695, %v1310_v48 }
 0x532   : > { %v4282_v44 = vpop.eup %3548  ;;  %3554 = vpow2.f32 %v1317_v33 }
 0x533   : > { %v1090_v39 = vsel %vm1041_vm7, %v4282_v44, 0.0  ;;  %v1299_v23 = vpop.xlane.xlu1 %1298 }
 0x534   : > { %v4286_v43 = vpop.eup %3550  ;;  %1091 = vadd.xlane.f32.xlu1 %v1090_v39  ;;  %v1311_v50 = vsub.f32 %v4172_v59, %v1299_v23 }
 0x535   : > { %v1093_v53 = vsel %vm1041_vm7, %v4286_v43, 0.0  ;;  %v1302_v52 = vpop.xlane.xlu0 %1301 }
 0x536   : > { %1094 = vadd.xlane.f32.xlu0 %v1093_v53  ;;  %v1319_v54 = vmul.f32 1.442695, %v1311_v50  ;;  %v1312_v56 = vsub.f32 %v4177_v1, %v1302_v52 }
 0x538   : > { %3556 = vpow2.f32 %v1319_v54  ;;  %v1321_v57 = vmul.f32 1.442695, %v1312_v56 }
 0x539   : > { %v4302_v58 = vpop.permute.xlu0 %1634 }
 0x53a   : > { %v4290_v5 = vpop.eup %3552  ;;  %3558 = vpow2.f32 %v1321_v57 }
 0x53b   : > { %v1327_v8 = vsel %vm1041_vm7, %v4290_v5, 0.0  ;;  %v1305_v38 = vpop.xlane.xlu1 %1304 }
 0x53c   : > { %1328 = vadd.xlane.f32.xlu1 %v1327_v8  ;;  %v4304_v51 = vpop.eup %3554 }
 0x53d   : > { %v4306_v55 = vpop.permute.xlu0 %1636  ;;  %v1330_v59 = vsel %vm1041_vm7, %v4304_v51, 0.0 }
 0x53f   : > { %v4312_v1 = vpop.permute.xlu1 %1364 }
 0x542   : > { %v4310_v0 = vpop.eup %3556 }
 0x544   : > { %v4316_v7 = vpop.eup %3558 }
 0x545   : > { %v1336_v30 = vsel %vm1041_vm7, %v4316_v7, 0.0 }
 0x54c   : > { %1908 = vrot.lane.b32.xlu0 %v3999_v11, %s3744_s24  ;;  %v1313_v11 = vsub.f32 %v4182_v10, %v1305_v38  ;;  %v1333_v10 = vsel %vm1041_vm7, %v4310_v0, 0.0 }
 0x54d   : > { %1638 = vrot.lane.b32.xlu1 %v4007_v26, %s3743_s27 }
 0x54e   : > { %v1323_v61 = vmul.f32 1.442695, %v1313_v11 }
 0x550   : > { %3560 = vpow2.f32 %v1323_v61 }
 0x55a   : > { %v4322_v21 = vpop.eup %3560 }
 0x56b   : > { %1331 = vadd.xlane.f32.xlu0 %v1330_v59 }
 0x56e   : > { %v1308_v4 = vpop.xlane.xlu0 %1307 }
 0x56f   : > { %v1314_v12 = vsub.f32 %v4193_v60, %v1308_v4  ;;  %1334 = vadd.xlane.f32.xlu0 %v1333_v10 }
 0x570   : > { %v1567_v15 = vpop.xlane.xlu1 %1566 }
 0x571   : > { %v1325_v16 = vmul.f32 1.442695, %v1314_v12  ;;  %v1583_v28 = vsub.f32 %v4196_v62, %v1567_v15  ;;  %v1339_v62 = vsel %vm1041_vm7, %v4322_v21, 0.0 }
 0x572   : > { %v1570_v17 = vpop.xlane.xlu0 %1569 }
 0x573   : > { %3562 = vpow2.f32 %v1325_v16  ;;  %v1589_v25 = vmul.f32 1.442695, %v1583_v28  ;;  %v1584_v29 = vsub.f32 %v4201_v2, %v1570_v17  ;;  %1337 = vadd.xlane.f32.xlu0 %v1336_v30 }
 0x574   : > { %v1573_v42 = vpop.xlane.xlu1 %1572 }
 0x575   : > { %3564 = vpow2.f32 %v1589_v25  ;;  %v1591_v35 = vmul.f32 1.442695, %v1584_v29  ;;  %v1585_v60 = vsub.f32 %v4206_v6, %v1573_v42 }
 0x576   : > { %v1576_v37 = vpop.xlane.xlu0 %1575 }
 0x577   : > { %3566 = vpow2.f32 %v1591_v35  ;;  %v1593_v39 = vmul.f32 1.442695, %v1585_v60  ;;  %v1586_v53 = vsub.f32 %v4211_v14, %v1576_v37  ;;  %1340 = vadd.xlane.f32.xlu0 %v1339_v62 }
 0x578   : > { %v1579_v8 = vpop.xlane.xlu1 %1578 }
 0x579   : > { %3568 = vpow2.f32 %v1593_v39  ;;  %v1595_v18 = vmul.f32 1.442695, %v1586_v53  ;;  %v1587_v2 = vsub.f32 %v4216_v20, %v1579_v8 }
 0x57a   : > { %v1582_v48 = vpop.xlane.xlu0 %1581 }
 0x57b   : > { %3570 = vpow2.f32 %v1595_v18  ;;  %v1597_v23 = vmul.f32 1.442695, %v1587_v2  ;;  %v1588_v33 = vsub.f32 %v4221_v24, %v1582_v48 }
 0x57c   : > { %v1841_v6 = vpop.xlane.xlu1 %1840 }
 0x57d   : > { %v4331_v50 = vpop.eup %3562  ;;  %3572 = vpow2.f32 %v1597_v23  ;;  %v1599_v52 = vmul.f32 1.442695, %v1588_v33  ;;  %v1857_v54 = vsub.f32 %v4226_v31, %v1841_v6 }
 0x57e   : > { %v1844_v56 = vpop.xlane.xlu0 %1843  ;;  %v1342_v14 = vsel %vm1041_vm7, %v4331_v50, 0.0 }
 0x57f   : > { %v4336_v38 = vpop.eup %3564  ;;  %v1863_v57 = vmul.f32 1.442695, %v1857_v54  ;;  %v1858_v20 = vsub.f32 %v4231_v36, %v1844_v56  ;;  %1343 = vadd.xlane.f32.xlu0 %v1342_v14  ;;  %3574 = vpow2.f32 %v1599_v52 }
 0x580   : > { %v1847_v11 = vpop.xlane.xlu1 %1846  ;;  %v1601_v24 = vsel %vm1041_vm7, %v4336_v38, 0.0 }
 0x581   : > { %v4341_v61 = vpop.eup %3566  ;;  %3576 = vpow2.f32 %v1863_v57  ;;  %v1865_v59 = vmul.f32 1.442695, %v1858_v20  ;;  %v1859_v31 = vsub.f32 %v4236_v41, %v1847_v11  ;;  %1602 = vadd.xlane.f32.xlu1 %v1601_v24 }
 0x582   : > { %v1850_v4 = vpop.xlane.xlu0 %1849  ;;  %v1604_v10 = vsel %vm1041_vm7, %v4341_v61, 0.0 }
 0x583   : > { %v4346_v12 = vpop.eup %3568  ;;  %v1867_v36 = vmul.f32 1.442695, %v1859_v31  ;;  %v1860_v15 = vsub.f32 %v4241_v45, %v1850_v4  ;;  %1605 = vadd.xlane.f32.xlu0 %v1604_v10  ;;  %3578 = vpow2.f32 %v1865_v59 }
 0x584   : > { %v1853_v16 = vpop.xlane.xlu1 %1852  ;;  %v1607_v29 = vsel %vm1041_vm7, %v4346_v12, 0.0 }
 0x585   : > { %v4349_v28 = vpop.eup %3570  ;;  %3580 = vpow2.f32 %v1867_v36  ;;  %v1869_v17 = vmul.f32 1.442695, %v1860_v15  ;;  %v1861_v30 = vsub.f32 %v4246_v46, %v1853_v16 }
 0x586   : > { %v1856_v41 = vpop.xlane.xlu0 %1855  ;;  %v1610_v25 = vsel %vm1041_vm7, %v4349_v28, 0.0 }
 0x587   : > { %v4356_v42 = vpop.eup %3572  ;;  %1611 = vadd.xlane.f32.xlu1 %v1610_v25  ;;  %1608 = vadd.xlane.f32.xlu0 %v1607_v29  ;;  %3582 = vpow2.f32 %v1869_v17  ;;  %v1871_v45 = vmul.f32 1.442695, %v1861_v30  ;;  %v1862_v35 = vsub.f32 %v4251_v47, %v1856_v41 }
 0x588   : > { %v1613_v46 = vsel %vm1041_vm7, %v4356_v42, 0.0 }
 0x589   : > { %v4359_v60 = vpop.eup %3574  ;;  %3584 = vpow2.f32 %v1871_v45  ;;  %v1873_v39 = vmul.f32 1.442695, %v1862_v35 }
 0x58a   : > { %v1616_v8 = vsel %vm1041_vm7, %v4359_v60, 0.0 }
 0x58b   : > { %v4363_v37 = vpop.eup %3576  ;;  %1614 = vadd.xlane.f32.xlu0 %v1613_v46  ;;  %3586 = vpow2.f32 %v1873_v39 }
 0x58c   : > { %v1875_v62 = vsel %vm1041_vm7, %v4363_v37, 0.0 }
 0x58d   : > { %1876 = vadd.xlane.f32.xlu1 %v1875_v62  ;;  %v4367_v53 = vpop.eup %3578 }
 0x58e   : > { %v1878_v2 = vsel %vm1041_vm7, %v4367_v53, 0.0 }
 0x58f   : > { %v4371_v47 = vpop.eup %3580  ;;  %1617 = vadd.xlane.f32.xlu0 %v1616_v8 }
 0x590   : > { %v1881_v18 = vsel %vm1041_vm7, %v4371_v47, 0.0 }
 0x591   : > { %1882 = vadd.xlane.f32.xlu1 %v1881_v18  ;;  %v4377_v48 = vpop.eup %3582 }
 0x592   : > { %v1884_v23 = vsel %vm1041_vm7, %v4377_v48, 0.0 }
 0x593   : > { %1879 = vadd.xlane.f32.xlu0 %v1878_v2  ;;  %v4381_v33 = vpop.eup %3584 }
 0x594   : > { %v1887_v6 = vsel %vm1041_vm7, %v4381_v33, 0.0 }
 0x595   : > { %v4385_v52 = vpop.eup %3586 }
 0x596   : > { %v1890_v54 = vsel %vm1041_vm7, %v4385_v52, 0.0 }
 0x597   : > { %1885 = vadd.xlane.f32.xlu0 %v1884_v23 }
 0x59b   : > { %1888 = vadd.xlane.f32.xlu0 %v1887_v6 }
 0x59f   : > { %1891 = vadd.xlane.f32.xlu0 %v1890_v54 }
 0x5a2   : > { %1910 = vrot.lane.b32.xlu1 %v4002_v19, %s3744_s24 }
 0x5b1   : > { %v1080_v56 = vpop.xlane.xlu1 %1079 }
 0x5b2   : > { %3588 = vrcp.f32 %v1080_v56 }
 0x5b3   : > { %v1083_v14 = vpop.xlane.xlu0 %1082 }
 0x5b4   : > { %3590 = vrcp.f32 %v1083_v14 }
 0x5b5   : > { %1912 = vrot.lane.b32.xlu0 %v4007_v26, %s3744_s24 }
 0x5b9   : > { %v1086_v57 = vpop.xlane.xlu1 %1085 }
 0x5ba   : > { %3592 = vrcp.f32 %v1086_v57 }
 0x5bc   : > { %v3589_v20 = vpop.eup %3588 }
 0x5bd   : > { %v1089_v11 = vpop.xlane.xlu0 %1088  ;;  %v1097_v59 = vmul.f32 %v3589_v20, %v4263_v3 }
 0x5be   : > { %v3591_v24 = vpop.eup %3590  ;;  %3594 = vrcp.f32 %v1089_v11 }
 0x5bf   : > { %v1099_v31 = vmul.f32 %v3591_v24, %v4267_v9 }
 0x5c1   : > { %v1092_v4 = vpop.xlane.xlu1 %1091  ;;  %v1108_v10 = vpack.c.bf16 %v1099_v31, %v1097_v59 }
 0x5c2   : > { %3596 = vrcp.f32 %v1092_v4 }
 0x5c3   : > { %3257 = vmatmul.mubr.msk.bf16.vlgmr.msra.gmra.mrb[0].mxu0 %vm1041_vm7, %v1108_v10  ;;  %v1095_v19 = vpop.xlane.xlu0 %1094 }
 0x5c4   : > { %3287 = vmatpush3.bf16.msra.mxu0 %v4068_v63  ;;  %3598 = vrcp.f32 %v1095_v19  ;;  %3260 = vmatprep.mubr.msk.bf16.mxu0 %vm3733_vm5, %v3732_v13  ;;  %v3593_v26 = vpop.eup %3592 }
 0x5c5   : > { %3288 = vmatprep.subr.bf16.mxu0 %v3732_v13  ;;  %v1101_v3 = vmul.f32 %v3593_v26, %v4273_v22 }
 0x5c7   : > { %v4414_v22 = vpop.permute.xlu0 %1908 }
 0x5c8   : > { %v3595_v36 = vpop.eup %3594  ;;  %3289 = vmatpush3.bf16.msra.mxu0 %v4257_v49 }
 0x5c9   : > { %3290 = vmatprep.subr.bf16.mxu0 %v3732_v13  ;;  %v1103_v9 = vmul.f32 %v3595_v36, %v4278_v34  ;;  %v1329_v34 = vpop.xlane.xlu1 %1328 }
 0x5ca   : > { %3600 = vrcp.f32 %v1329_v34 }
 0x5cb   : > { %v1109_v15 = vpack.c.bf16 %v1103_v9, %v1101_v3 }
 0x5cc   : > { %3291 = vmatpush3.bf16.msra.mxu0 %v4312_v1  ;;  %v3597_v63 = vpop.eup %3596 }
 0x5cd   : > { %3261 = vmatmul.mubr.msk.bf16.gmra.mrb[4].mxu0 %vm1041_vm7, %v1109_v15  ;;  %3322 = vmatprep.subr.bf16.mxu0 %v3732_v13  ;;  %v1105_v17 = vmul.f32 %v3597_v63, %v4282_v44  ;;  %v1639_v8 = vpop.permute.xlu1 %1638 }
 0x5ce   : > { %v3599_v16 = vpop.eup %3598  ;;  %3264 = vmatprep.mubr.msk.bf16.mxu0 %vm3733_vm5, %v3732_v13 }
 0x5cf   : > { %v1107_v49 = vmul.f32 %v3599_v16, %v4286_v43 }
 0x5d1   : > { %v1110_v30 = vpack.c.bf16 %v1107_v49, %v1105_v17 }
 0x5d4   : > { %v3601_v29 = vpop.eup %3600 }
 0x5d5   : > { %3265 = vmatmul.mubr.msk.bf16.gmra.mrb[8].mxu0 %vm1041_vm7, %v1110_v30  ;;  %v1346_v44 = vmul.f32 %v3601_v29, %v4290_v5 }
 0x5d6   : > { %3292 = vmatprep.mubr.msk.bf16.mxu0 %vm3733_vm5, %v3732_v13 }
 0x5f8   : > { %v1332_v1 = vpop.xlane.xlu0 %1331 }
 0x5f9   : > { %3602 = vrcp.f32 %v1332_v1 }
 0x5fc   : > { %v1335_v41 = vpop.xlane.xlu0 %1334 }
 0x5fd   : > { %3604 = vrcp.f32 %v1335_v41 }
 0x600   : > { %v1338_v25 = vpop.xlane.xlu0 %1337 }
 0x601   : > { %3606 = vrcp.f32 %v1338_v25 }
 0x603   : > { %v3603_v43 = vpop.eup %3602 }
 0x604   : > { %v1348_v45 = vmul.f32 %v3603_v43, %v4304_v51  ;;  %v1341_v46 = vpop.xlane.xlu0 %1340 }
 0x605   : > { %3608 = vrcp.f32 %v1341_v46 }
 0x606   : > { %v1357_v35 = vpack.c.bf16 %v1348_v45, %v1346_v44 }
 0x607   : > { %v3605_v62 = vpop.eup %3604 }
 0x608   : > { %3293 = vmatmul.mubr.msk.bf16.vlgmr.msra.gmra.mrb[12].mxu0 %vm1041_vm7, %v1357_v35  ;;  %v1350_v5 = vmul.f32 %v3605_v62, %v4310_v0 }
 0x609   : > { %3323 = vmatpush3.bf16.msra.mxu0 %v4302_v58  ;;  %3296 = vmatprep.mubr.msk.bf16.mxu0 %vm3733_vm5, %v3732_v13 }
 0x60a   : > { %3324 = vmatprep.subr.bf16.mxu0 %v3732_v13 }
 0x60b   : > { %v3607_v39 = vpop.eup %3606 }
 0x60c   : > { %v1344_v18 = vpop.xlane.xlu0 %1343  ;;  %v1352_v51 = vmul.f32 %v3607_v39, %v4316_v7 }
 0x60d   : > { %3325 = vmatpush3.bf16.msra.mxu0 %v4306_v55  ;;  %3610 = vrcp.f32 %v1344_v18 }
 0x60e   : > { %3326 = vmatprep.subr.bf16.mxu0 %v3732_v13  ;;  %v1358_v2 = vpack.c.bf16 %v1352_v51, %v1350_v5  ;;  %v1603_v58 = vpop.xlane.xlu1 %1602 }
 0x60f   : > { %v3609_v7 = vpop.eup %3608 }
 0x610   : > { %3297 = vmatmul.mubr.msk.bf16.gmra.mrb[16].mxu0 %vm1041_vm7, %v1358_v2  ;;  %v1606_v23 = vpop.xlane.xlu0 %1605  ;;  %v1354_v56 = vmul.f32 %v3609_v7, %v4322_v21 }
 0x611   : > { %3327 = vmatpush3.bf16.msra.mxu0 %v1639_v8  ;;  %3612 = vrcp.f32 %v1606_v23  ;;  %3300 = vmatprep.mubr.msk.bf16.mxu0 %vm3733_vm5, %v3732_v13 }
 0x612   : > { %3358 = vmatprep.subr.bf16.mxu0 %v3732_v13  ;;  %3614 = vrcp.f32 %v1603_v58 }
 0x614   : > { %v1609_v0 = vpop.xlane.xlu0 %1608  ;;  %v1612_v6 = vpop.xlane.xlu1 %1611 }
 0x615   : > { %3616 = vrcp.f32 %v1612_v6 }
 0x616   : > { %3618 = vrcp.f32 %v1609_v0 }
 0x617   : > { %v3611_v55 = vpop.eup %3610 }
 0x618   : > { %v1615_v54 = vpop.xlane.xlu0 %1614  ;;  %v1356_v14 = vmul.f32 %v3611_v55, %v4331_v50 }
 0x61a   : > { %v1359_v57 = vpack.c.bf16 %v1356_v14, %v1354_v56  ;;  %v1877_v11 = vpop.xlane.xlu1 %1876 }
 0x61b   : > { %v3613_v20 = vpop.eup %3612 }
 0x61c   : > { %3301 = vmatmul.mubr.msk.bf16.gmra.mrb[20].mxu0 %vm1041_vm7, %v1359_v57  ;;  %v1618_v24 = vpop.xlane.xlu0 %1617  ;;  %v3615_v59 = vpop.eup %3614  ;;  %v1622_v31 = vmul.f32 %v3613_v20, %v4341_v61 }
 0x61d   : > { %3328 = vmatprep.mubr.msk.bf16.mxu0 %vm3733_vm5, %v3732_v13  ;;  %v1620_v4 = vmul.f32 %v3615_v59, %v4336_v38  ;;  %3620 = vrcp.f32 %v1618_v24  ;;  %v3514_v59 = vld [vmem:[%s3856_s16] sm:$0xff]  }
 0x61e   : > { %v1883_v50 = vpop.xlane.xlu1 %1882  ;;  %3622 = vrcp.f32 %v1615_v54  ;;  %3377 = vmatpush3.bf16.msra.mxu1 %v3514_v59  ;;  %v3685_v59 = vld [vmem:[#allocation2] sm:$0xff] }
 0x61f   : > { %v3617_v21 = vpop.eup %3616  ;;  %v1631_v19 = vpack.c.bf16 %v1622_v31, %v1620_v4  ;;  %3378 = vmatprep.subr.bf16.mxu1 %v3732_v13 }
 0x620   : > { %v1880_v10 = vpop.xlane.xlu0 %1879  ;;  %v3619_v26 = vpop.eup %3618  ;;  %v1626_v38 = vmul.f32 %v3617_v21, %v4349_v28 }
 0x621   : > { %v1624_v61 = vmul.f32 %v3619_v26, %v4346_v12  ;;  %3624 = vrcp.f32 %v1880_v10 }
 0x622   : > { %v1911_v3 = vpop.permute.xlu1 %1910  ;;  %3626 = vrcp.f32 %v1877_v11 }
 0x623   : > { %v1632_v15 = vpack.c.bf16 %v1626_v38, %v1624_v61  ;;  %v3515_v61 = vld [vmem:[%s3856_s16 + $0x8] sm:$0xff]   ;;  %s4777_s16 = sld [smem:[#allocation8_spill]] (!%p3097_p5) }
 0x624   : > { %3329 = vmatmul.mubr.msk.bf16.vlgmr.msra.gmra.mrb[24].mxu0 %vm1041_vm7, %v1631_v19  ;;  %v1886_v36 = vpop.xlane.xlu0 %1885  ;;  %3379 = vmatpush3.bf16.msra.mxu1 %v3515_v61 }
 0x625   : > { %3359 = vmatpush3.bf16.msra.mxu0 %v4414_v22  ;;  %3332 = vmatprep.mubr.msk.bf16.mxu0 %vm3733_vm5, %v3732_v13  ;;  %3628 = vrcp.f32 %v1886_v36 }
 0x626   : > { %3360 = vmatprep.subr.bf16.mxu0 %v3732_v13  ;;  %3630 = vrcp.f32 %v1883_v50  ;;  %3408 = vmatprep.subr.bf16.mxu1 %v3732_v13 }
 0x627   : > { %v3621_v63 = vpop.eup %3620 }
 0x628   : > { %v1889_v9 = vpop.xlane.xlu0 %1888  ;;  %v3623_v49 = vpop.eup %3622  ;;  %v1630_v12 = vmul.f32 %v3621_v63, %v4359_v60 }
 0x629   : > { %3361 = vmatpush3.bf16.msra.mxu0 %v1911_v3  ;;  %v1628_v28 = vmul.f32 %v3623_v49, %v4356_v42 }
 0x62a   : > { %3362 = vmatprep.subr.bf16.mxu0 %v3732_v13 }
 0x62b   : > { %v1633_v30 = vpack.c.bf16 %v1630_v12, %v1628_v28  ;;  %v3625_v22 = vpop.eup %3624 }
 0x62c   : > { %3333 = vmatmul.mubr.msk.bf16.gmra.mrb[28].mxu0 %vm1041_vm7, %v1632_v15  ;;  %v1892_v16 = vpop.xlane.xlu0 %1891  ;;  %v3627_v34 = vpop.eup %3626  ;;  %v1896_v1 = vmul.f32 %v3625_v22, %v4367_v53 }
 0x62d   : > { %3336 = vmatprep.mubr.msk.bf16.mxu0 %vm3733_vm5, %v3732_v13  ;;  %v1894_v60 = vmul.f32 %v3627_v34, %v4363_v37  ;;  %3632 = vrcp.f32 %v1892_v16 }
 0x62e   : > { %3634 = vrcp.f32 %v1889_v9 }
 0x62f   : > { %v1905_v41 = vpack.c.bf16 %v1896_v1, %v1894_v60  ;;  %v3629_v42 = vpop.eup %3628 }
 0x630   : > { %v1913_v17 = vpop.permute.xlu0 %1912  ;;  %v3631_v25 = vpop.eup %3630  ;;  %v1900_v29 = vmul.f32 %v3629_v42, %v4377_v48 }
 0x631   : > { %3363 = vmatpush3.bf16.msra.mxu0 %v1913_v17  ;;  %v1898_v43 = vmul.f32 %v3631_v25, %v4371_v47 }
 0x632   : > { %3392 = vmatprep.subr.bf16.mxu0 %v3732_v13 }
 0x633   : > { %v1906_v44 = vpack.c.bf16 %v1900_v29, %v1898_v43 }
 0x634   : > { %3337 = vmatmul.mubr.msk.bf16.gmra.mrb[32].mxu0 %vm1041_vm7, %v1633_v30 }
 0x635   : > { %3364 = vmatprep.mubr.msk.bf16.mxu0 %vm3733_vm5, %v3732_v13 }
 0x637   : > { %v3633_v45 = vpop.eup %3632 }
 0x638   : > { %v3635_v53 = vpop.eup %3634  ;;  %v1904_v37 = vmul.f32 %v3633_v45, %v4385_v52 }
 0x639   : > { %v1902_v35 = vmul.f32 %v3635_v53, %v4381_v33 }
 0x63b   : > { %v1907_v46 = vpack.c.bf16 %v1904_v37, %v1902_v35 }
 0x63c   : > { %3365 = vmatmul.mubr.msk.bf16.vlgmr.msra.gmra.mrb[36].mxu0 %vm1041_vm7, %v1905_v41 }
 0x63d   : > { %3368 = vmatprep.mubr.msk.bf16.mxu0 %vm3733_vm5, %v3732_v13 }
 0x644   : > { %3369 = vmatmul.mubr.msk.bf16.gmra.mrb[40].mxu0 %vm1041_vm7, %v1906_v44 }
 0x645   : > { %3372 = vmatprep.mubr.msk.bf16.mxu0 %vm3733_vm5, %v3732_v13 }
 0x64c   : > { %3373 = vmatmul.mubr.msk.bf16.gmra.mrb[44].mxu0 %vm1041_vm7, %v1907_v46 }
 0x64d   : > { %3396 = vmatprep.mubr.msk.bf16.mxu0 %vm3733_vm5, %v3732_v13 }
 0x696   : > { %v1163_v48 = vpop.f32.mrb[0].mxu0 }
 0x697   : > { %1186 = vst.msk [vmem:[#allocation3] sm:$0xff] %vm953_vm6, %v1163_v48  ;;  %v3258_v47 = vpop.f32.mrb[1].mxu0 }
 0x698   : > { %v1166_v62 = vpop.f32.mrb[2].mxu0 }
 0x699   : > { %1187 = vst.msk [vmem:[#allocation3 + $0x8] sm:$0xff] %vm953_vm6, %v1166_v62  ;;  %v3259_v39 = vpop.f32.mrb[3].mxu0 }
 0x6a0   : > { %v1171_v8 = vpop.f32.mrb[4].mxu0 }
 0x6a1   : > { %1188 = vst.msk [vmem:[#allocation3 + $0x10] sm:$0xff] %vm953_vm6, %v1171_v8  ;;  %v3262_v52 = vpop.f32.mrb[5].mxu0 }
 0x6a2   : > { %v1174_v18 = vpop.f32.mrb[6].mxu0 }
 0x6a3   : > { %1189 = vst.msk [vmem:[#allocation3 + $0x18] sm:$0xff] %vm953_vm6, %v1174_v18  ;;  %v3263_v33 = vpop.f32.mrb[7].mxu0 }
 0x6a8   : > { %v1179_v5 = vpop.f32.mrb[8].mxu0 }
 0x6a9   : > { %1190 = vst.msk [vmem:[#allocation3 + $0x20] sm:$0xff] %vm953_vm6, %v1179_v5  ;;  %v3266_v51 = vpop.f32.mrb[9].mxu0 }
 0x6aa   : > { %v1182_v2 = vpop.f32.mrb[10].mxu0 }
 0x6ab   : > { %1191 = vst.msk [vmem:[#allocation3 + $0x28] sm:$0xff] %vm953_vm6, %v1182_v2  ;;  %v3267_v58 = vpop.f32.mrb[11].mxu0 }
 0x6db   : > { %v1412_v23 = vpop.f32.mrb[12].mxu0 }
 0x6dc   : > { %1441 = vrot.lane.b32.xlu0 %v1412_v23, %s3745_s29  ;;  %v3294_v0 = vpop.f32.mrb[13].mxu0 }
 0x6dd   : > { %v1415_v7 = vpop.f32.mrb[14].mxu0 }
 0x6de   : > { %v3295_v6 = vpop.f32.mrb[15].mxu0 }
 0x6e0   : > { %1443 = vrot.lane.b32.xlu0 %v1415_v7, %s3745_s29 }
 0x6e3   : > { %v1420_v55 = vpop.f32.mrb[16].mxu0 }
 0x6e4   : > { %1445 = vrot.lane.b32.xlu1 %v1420_v55, %s3745_s29  ;;  %v3298_v54 = vpop.f32.mrb[17].mxu0 }
 0x6e5   : > { %v1423_v56 = vpop.f32.mrb[18].mxu0  ;;  %v2029_v54 = vsub.s32 7, %v3974_v27 }
 0x6e6   : > { %1447 = vrot.lane.b32.xlu0 %v1423_v56, %s3745_s29  ;;  %v3299_v14 = vpop.f32.mrb[19].mxu0  ;;  %v4521_v56 = vld [vmem:[%s3846_s25] sm:$0xff] }
 0x6e7   : > { %v2030_v14 = vrot.slane %v4521_v56, %v2029_v54 }
 0x6ef   : > { %v1428_v57 = vpop.f32.mrb[20].mxu0 }
 0x6f0   : > { %v3302_v20 = vpop.f32.mrb[21].mxu0 }
 0x6f1   : > { %v1431_v11 = vpop.f32.mrb[22].mxu0 }
 0x6f2   : > { %v3303_v24 = vpop.f32.mrb[23].mxu0 }
 0x6f7   : > { %v1686_v31 = vpop.f32.mrb[24].mxu0 }
 0x6f8   : > { %1715 = vrot.lane.b32.xlu1 %v1686_v31, %s3746_s18  ;;  %v3330_v4 = vpop.f32.mrb[25].mxu0 }
 0x6f9   : > { %v1689_v10 = vpop.f32.mrb[26].mxu0 }
 0x6fa   : > { %1717 = vrot.lane.b32.xlu0 %v1689_v10, %s3746_s18  ;;  %v3331_v21 = vpop.f32.mrb[27].mxu0 }
 0x6fb   : > { %v3686_v21 = vld [vmem:[#allocation2 + $0x8] sm:$0xff] }
 0x6ff   : > { %v1694_v19 = vpop.f32.mrb[28].mxu0 }
 0x700   : > { %1719 = vrot.lane.b32.xlu1 %v1694_v19, %s3746_s18  ;;  %v3334_v50 = vpop.f32.mrb[29].mxu0 }
 0x701   : > { %v1697_v26 = vpop.f32.mrb[30].mxu0 }
 0x702   : > { %1721 = vrot.lane.b32.xlu0 %v1697_v26, %s3746_s18  ;;  %v3335_v36 = vpop.f32.mrb[31].mxu0 }
 0x707   : > { %v1702_v38 = vpop.f32.mrb[32].mxu0 }
 0x708   : > { %v3338_v3 = vpop.f32.mrb[33].mxu0 }
 0x709   : > { %v1705_v9 = vpop.f32.mrb[34].mxu0 }
 0x70a   : > { %v3339_v15 = vpop.f32.mrb[35].mxu0 }
 0x70f   : > { %v1960_v63 = vpop.f32.mrb[36].mxu0 }
 0x710   : > { %1989 = vrot.lane.b32.xlu1 %v1960_v63, %s3747_s17  ;;  %v3366_v16 = vpop.f32.mrb[37].mxu0 }
 0x711   : > { %v1963_v49 = vpop.f32.mrb[38].mxu0 }
 0x712   : > { %1991 = vrot.lane.b32.xlu0 %v1963_v49, %s3747_s17  ;;  %v3367_v12 = vpop.f32.mrb[39].mxu0  ;;  %v3688_v49 = vld [vmem:[#allocation2 + $0x18] sm:$0xff] }
 0x714   : > { %1449 = vrot.lane.b32.xlu1 %v1428_v57, %s3745_s29 }
 0x716   : > { %1451 = vrot.lane.b32.xlu0 %v1431_v11, %s3745_s29 }
 0x717   : > { %v1968_v17 = vpop.f32.mrb[40].mxu0 }
 0x718   : > { %1993 = vrot.lane.b32.xlu1 %v1968_v17, %s3747_s17  ;;  %v3370_v28 = vpop.f32.mrb[41].mxu0 }
 0x719   : > { %v1971_v30 = vpop.f32.mrb[42].mxu0 }
 0x71a   : > { %1995 = vrot.lane.b32.xlu0 %v1971_v30, %s3747_s17  ;;  %v3371_v22 = vpop.f32.mrb[43].mxu0 }
 0x71c   : > { %1723 = vrot.lane.b32.xlu1 %v1702_v38, %s3746_s18 }
 0x71e   : > { %1725 = vrot.lane.b32.xlu0 %v1705_v9, %s3746_s18  ;;  %v3687_v9 = vld [vmem:[#allocation2 + $0x10] sm:$0xff] }
 0x71f   : > { %v1976_v34 = vpop.f32.mrb[44].mxu0 }
 0x720   : > { %1997 = vrot.lane.b32.xlu1 %v1976_v34, %s3747_s17  ;;  %v3374_v1 = vpop.f32.mrb[45].mxu0 }
 0x721   : > { %v1979_v60 = vpop.f32.mrb[46].mxu0 }
 0x722   : > { %1999 = vrot.lane.b32.xlu0 %v1979_v60, %s3747_s17  ;;  %v3375_v41 = vpop.f32.mrb[47].mxu0  ;;  %v3689_v60 = vld [vmem:[#allocation2 + $0x20] sm:$0xff] }
 0x74e   : > { %v1442_v42 = vpop.permute.xlu0 %1441 }
 0x74f   : > { %1460 = vst.msk [vmem:[#allocation3] sm:$0xff] %vm1459_vm8, %v1442_v42 }
 0x752   : > { %v1444_v25 = vpop.permute.xlu0 %1443 }
 0x753   : > { %1461 = vst.msk [vmem:[#allocation3 + $0x8] sm:$0xff] %vm1459_vm8, %v1444_v25 }
 0x756   : > { %v1446_v29 = vpop.permute.xlu1 %1445 }
 0x757   : > { %1462 = vst.msk [vmem:[#allocation3 + $0x10] sm:$0xff] %vm1459_vm8, %v1446_v29  ;;  %v3690_v29 = vld [vmem:[#allocation2 + $0x28] sm:$0xff] }
 0x758   : > { %v1448_v43 = vpop.permute.xlu0 %1447 }
 0x759   : > { %1463 = vst.msk [vmem:[#allocation3 + $0x18] sm:$0xff] %vm1459_vm8, %v1448_v43 }
 0x76a   : > { %v1716_v44 = vpop.permute.xlu1 %1715 }
 0x76b   : > { %1734 = vst.msk [vmem:[#allocation3] sm:$0xff] %vm1733_vm9, %v1716_v44 }
 0x76c   : > { %v1718_v45 = vpop.permute.xlu0 %1717 }
 0x76d   : > { %1735 = vst.msk [vmem:[#allocation3 + $0x8] sm:$0xff] %vm1733_vm9, %v1718_v45 }
 0x772   : > { %v1720_v53 = vpop.permute.xlu1 %1719 }
 0x773   : > { %1736 = vst.msk [vmem:[#allocation3 + $0x10] sm:$0xff] %vm1733_vm9, %v1720_v53 }
 0x774   : > { %v1722_v37 = vpop.permute.xlu0 %1721 }
 0x775   : > { %1737 = vst.msk [vmem:[#allocation3 + $0x18] sm:$0xff] %vm1733_vm9, %v1722_v37 }
 0x782   : > { %v1990_v35 = vpop.permute.xlu1 %1989 }
 0x783   : > { %2008 = vst.msk [vmem:[#allocation3] sm:$0xff] %vm2007_vm10, %v1990_v35 }
 0x784   : > { %v1992_v46 = vpop.permute.xlu0 %1991 }
 0x785   : > { %2009 = vst.msk [vmem:[#allocation3 + $0x8] sm:$0xff] %vm2007_vm10, %v1992_v46 }
 0x786   : > { %v1450_v48 = vpop.permute.xlu1 %1449 }
 0x787   : > { %1464 = vst.msk [vmem:[#allocation3 + $0x20] sm:$0xff] %vm1459_vm8, %v1450_v48 }
 0x788   : > { %v1452_v47 = vpop.permute.xlu0 %1451 }
 0x789   : > { %1465 = vst.msk [vmem:[#allocation3 + $0x28] sm:$0xff] %vm1459_vm8, %v1452_v47 }
 0x78a   : > { %v1994_v62 = vpop.permute.xlu1 %1993  ;;  %v2014_v8 = vld [vmem:[#allocation3] sm:$0xff] }
 0x78b   : > { %2010 = vst.msk [vmem:[#allocation3 + $0x10] sm:$0xff] %vm2007_vm10, %v1994_v62 }
 0x78c   : > { %v1996_v39 = vpop.permute.xlu0 %1995  ;;  %v2015_v52 = vld [vmem:[#allocation3 + $0x8] sm:$0xff] }
 0x78d   : > { %2011 = vst.msk [vmem:[#allocation3 + $0x18] sm:$0xff] %vm2007_vm10, %v1996_v39  ;;  %v2020_v18 = vpack.c.bf16 %v2015_v52, %v2014_v8 }
 0x78e   : > { %v1724_v33 = vpop.permute.xlu1 %1723 }
 0x78f   : > { %1738 = vst.msk [vmem:[#allocation3 + $0x20] sm:$0xff] %vm1733_vm9, %v1724_v33  ;;  %3381 = vmatmul.mubr.msk.bf16.vlgmr.msra.gmra.mrb[60].mxu1 %vm752_vm4, %v2020_v18 }
 0x790   : > { %v1726_v5 = vpop.permute.xlu0 %1725  ;;  %3384 = vmatprep.mubr.msk.bf16.mxu1 %vm3733_vm5, %v3732_v13 }
 0x791   : > { %1739 = vst.msk [vmem:[#allocation3 + $0x28] sm:$0xff] %vm1733_vm9, %v1726_v5 }
 0x792   : > { %v1998_v51 = vpop.permute.xlu1 %1997  ;;  %v2016_v58 = vld [vmem:[#allocation3 + $0x10] sm:$0xff] }
 0x793   : > { %2012 = vst.msk [vmem:[#allocation3 + $0x20] sm:$0xff] %vm2007_vm10, %v1998_v51 }
 0x794   : > { %v2000_v2 = vpop.permute.xlu0 %1999  ;;  %v2017_v23 = vld [vmem:[#allocation3 + $0x18] sm:$0xff] }
 0x795   : > { %2013 = vst.msk [vmem:[#allocation3 + $0x28] sm:$0xff] %vm2007_vm10, %v2000_v2  ;;  %v2021_v0 = vpack.c.bf16 %v2017_v23, %v2016_v58 }
 0x797   : > { %3385 = vmatmul.mubr.msk.bf16.gmra.mrb[64].mxu1 %vm752_vm4, %v2021_v0 }
 0x798   : > { %3388 = vmatprep.mubr.msk.bf16.mxu1 %vm3733_vm5, %v3732_v13 }
 0x79a   : > { %v2018_v7 = vld [vmem:[#allocation3 + $0x20] sm:$0xff] }
 0x79c   : > { %v2019_v6 = vld [vmem:[#allocation3 + $0x28] sm:$0xff] }
 0x79d   : > { %v2022_v55 = vpack.c.bf16 %v2019_v6, %v2018_v7 }
 0x79f   : > { %3389 = vmatmul.mubr.msk.bf16.gmra.mrb[68].mxu1 %vm752_vm4, %v2022_v55 }
 0x7a0   : > { %3424 = vmatprep.mubr.msk.bf16.mxu1 %vm3733_vm5, %v3732_v13 }
 0x862   : > { %v2086_v57 = vpop.f32.mrb[60].mxu1 }
 0x863   : > { %v2087_v20 = vadd.f32 %v2086_v57, %v2030_v14  ;;  %v3382_v11 = vpop.f32.mrb[61].mxu1 }
 0x864   : > { %v2089_v24 = vpop.f32.mrb[62].mxu1 }
 0x865   : > { %v4524_v31 = vadd.f32 %v3685_v59, %v2087_v20  ;;  %v2090_v4 = vadd.f32 %v2089_v24, %v2030_v14  ;;  %v3383_v10 = vpop.f32.mrb[63].mxu1 }
 0x867   : > { %v4526_v19 = vadd.f32 %v3686_v21, %v2090_v4  ;;  %v2115_v50 = vsel %vm752_vm4, %v4524_v31, 0.0  ;;  %v3516_v21 = vld [vmem:[%s3861_s15] sm:$0xff]  }
 0x868   : > { %2116 = vadd.xlane.f32.xlu1 %v2115_v50  ;;  %3393 = vmatpush3.bf16.msra.mxu0 %v3516_v21  ;;  %v3517_v50 = vld [vmem:[%s3861_s15 + $0x8] sm:$0xff]   ;;  %v3520_v21 = vld [vmem:[%s3866_s23 + $0x10] sm:$0xff]  }
 0x869   : > { %v2118_v26 = vsel %vm752_vm4, %v4526_v19, 0.0  ;;  %3394 = vmatprep.subr.bf16.mxu0 %v3732_v13 }
 0x86a   : > { %2119 = vadd.xlane.f32.xlu0 %v2118_v26  ;;  %v2094_v36 = vpop.f32.mrb[64].mxu1 }
 0x86b   : > { %v2095_v61 = vadd.f32 %v2094_v36, %v2030_v14  ;;  %v3386_v38 = vpop.f32.mrb[65].mxu1 }
 0x86c   : > { %v2097_v3 = vpop.f32.mrb[66].mxu1  ;;  %3395 = vmatpush3.bf16.msra.mxu0 %v3517_v50  ;;  %v3521_v50 = vld [vmem:[%s3866_s23 + $0x18] sm:$0xff]  }
 0x86d   : > { %v4532_v15 = vadd.f32 %v3687_v9, %v2095_v61  ;;  %v2098_v63 = vadd.f32 %v2097_v3, %v2030_v14  ;;  %v3387_v16 = vpop.f32.mrb[67].mxu1  ;;  %3436 = vmatprep.subr.bf16.mxu0 %v3732_v13 }
 0x86f   : > { %v4534_v12 = vadd.f32 %v3688_v49, %v2098_v63  ;;  %v2121_v17 = vsel %vm752_vm4, %v4532_v15, 0.0  ;;  %v2195_v49 = vsub.s32 2, %v3974_v27 }
 0x870   : > { %2122 = vadd.xlane.f32.xlu0 %v2121_v17 }
 0x871   : > { %v2124_v28 = vsel %vm752_vm4, %v4534_v12, 0.0 }
 0x872   : > { %2125 = vadd.xlane.f32.xlu1 %v2124_v28  ;;  %v2102_v30 = vpop.f32.mrb[68].mxu1 }
 0x873   : > { %v2103_v22 = vadd.f32 %v2102_v30, %v2030_v14  ;;  %v3390_v34 = vpop.f32.mrb[69].mxu1 }
 0x874   : > { %v2105_v1 = vpop.f32.mrb[70].mxu1  ;;  %v2196_v34 = vrot.slane %v4521_v56, %v2195_v49 }
 0x875   : > { %v4540_v41 = vadd.f32 %v3689_v60, %v2103_v22  ;;  %v2106_v42 = vadd.f32 %v2105_v1, %v2030_v14  ;;  %v3391_v25 = vpop.f32.mrb[71].mxu1  ;;  %v2205_v1 = vsub.s32 3, %v3974_v27 }
 0x877   : > { %v4542_v43 = vadd.f32 %v3690_v29, %v2106_v42  ;;  %v2127_v44 = vsel %vm752_vm4, %v4540_v41, 0.0 }
 0x878   : > { %2128 = vadd.xlane.f32.xlu0 %v2127_v44 }
 0x879   : > { %v2130_v45 = vsel %vm752_vm4, %v4542_v43, 0.0 }
 0x87a   : > { %2131 = vadd.xlane.f32.xlu1 %v2130_v45  ;;  %v2206_v45 = vrot.slane %v4521_v56, %v2205_v1 }
 0x8f5   : > { %v2117_v53 = vpop.xlane.xlu1 %2116 }
 0x8f6   : > { %v2133_v37 = vmul.f32 0.03125, %v2117_v53 }
 0x8f7   : > { %v2120_v35 = vpop.xlane.xlu0 %2119 }
 0x8f8   : > { %v2139_v46 = vsub.f32 %v4524_v31, %v2133_v37  ;;  %v2134_v48 = vmul.f32 0.03125, %v2120_v35 }
 0x8fa   : > { %v4550_v47 = vsub.f32 %v4526_v19, %v2134_v48  ;;  %v2145_v62 = vmul.f32 %v2139_v46, %v2139_v46 }
 0x8fc   : > { %v2151_v39 = vsel %vm752_vm4, %v2145_v62, 0.0  ;;  %v2146_v8 = vmul.f32 %v4550_v47, %v4550_v47 }
 0x8fd   : > { %v2123_v52 = vpop.xlane.xlu0 %2122  ;;  %2152 = vadd.xlane.f32.xlu0 %v2151_v39 }
 0x8fe   : > { %v2135_v18 = vmul.f32 0.03125, %v2123_v52  ;;  %v2154_v33 = vsel %vm752_vm4, %v2146_v8, 0.0 }
 0x8ff   : > { %v2126_v5 = vpop.xlane.xlu1 %2125  ;;  %2155 = vadd.xlane.f32.xlu1 %v2154_v33 }
 0x900   : > { %v4557_v51 = vsub.f32 %v4532_v15, %v2135_v18  ;;  %v2136_v2 = vmul.f32 0.03125, %v2126_v5 }
 0x902   : > { %v4560_v58 = vsub.f32 %v4534_v12, %v2136_v2  ;;  %v2147_v23 = vmul.f32 %v4557_v51, %v4557_v51 }
 0x904   : > { %v2157_v0 = vsel %vm752_vm4, %v2147_v23, 0.0  ;;  %v2148_v7 = vmul.f32 %v4560_v58, %v4560_v58 }
 0x905   : > { %2158 = vadd.xlane.f32.xlu0 %v2157_v0  ;;  %v2129_v6 = vpop.xlane.xlu0 %2128 }
 0x906   : > { %v2137_v55 = vmul.f32 0.03125, %v2129_v6  ;;  %v2160_v54 = vsel %vm752_vm4, %v2148_v7, 0.0 }
 0x907   : > { %2161 = vadd.xlane.f32.xlu1 %v2160_v54  ;;  %v2132_v14 = vpop.xlane.xlu1 %2131 }
 0x908   : > { %v4569_v57 = vsub.f32 %v4540_v41, %v2137_v55  ;;  %v2138_v20 = vmul.f32 0.03125, %v2132_v14 }
 0x90a   : > { %v4572_v11 = vsub.f32 %v4542_v43, %v2138_v20  ;;  %v2149_v24 = vmul.f32 %v4569_v57, %v4569_v57 }
 0x90c   : > { %v2163_v59 = vsel %vm752_vm4, %v2149_v24, 0.0  ;;  %v2150_v4 = vmul.f32 %v4572_v11, %v4572_v11 }
 0x90d   : > { %2164 = vadd.xlane.f32.xlu0 %v2163_v59 }
 0x90e   : > { %v2166_v10 = vsel %vm752_vm4, %v2150_v4, 0.0 }
 0x90f   : > { %2167 = vadd.xlane.f32.xlu1 %v2166_v10 }
 0x98a   : > { %v2153_v26 = vpop.xlane.xlu0 %2152 }
 0x98b   : > { %v2169_v36 = vmul.f32 0.03125, %v2153_v26  ;;  %v3522_v26 = vld [vmem:[%s3866_s23 + $0x20] sm:$0xff]  }
 0x98c   : > { %v2156_v61 = vpop.xlane.xlu1 %2155 }
 0x98d   : > { %v2175_v38 = vadd.f32 1e-06, %v2169_v36  ;;  %v2170_v3 = vmul.f32 0.03125, %v2156_v61  ;;  %v3523_v36 = vld [vmem:[%s3866_s23 + $0x28] sm:$0xff]   ;;  %v3524_v61 = vld [vmem:[%s3866_s23 + $0x30] sm:$0xff]  }
 0x98f   : > { %3636 = vrsqrt.f32 %v2175_v38  ;;  %v2176_v9 = vadd.f32 1e-06, %v2170_v3  ;;  %v3525_v38 = vld [vmem:[%s3866_s23 + $0x38] sm:$0xff]   ;;  %v3526_v3 = vld [vmem:[%s3871_s26] sm:$0xff]  }
 0x991   : > { %3638 = vrsqrt.f32 %v2176_v9  ;;  %v3527_v9 = vld [vmem:[%s3871_s26 + $0x8] sm:$0xff]  }
 0x992   : > { %v2159_v63 = vpop.xlane.xlu0 %2158 }
 0x993   : > { %v2171_v16 = vmul.f32 0.03125, %v2159_v63  ;;  %v4626_v63 = vld [vmem:[%s3846_s25 + $0x8] sm:$0xf] }
 0x994   : > { %v2162_v17 = vpop.xlane.xlu1 %2161 }
 0x995   : > { %v2177_v28 = vadd.f32 1e-06, %v2171_v16  ;;  %v2172_v30 = vmul.f32 0.03125, %v2162_v17  ;;  %v2223_v16 = vrot.slane %v4626_v63, %v834_v32 }
 0x997   : > { %3640 = vrsqrt.f32 %v2177_v28  ;;  %v2178_v22 = vadd.f32 1e-06, %v2172_v30 }
 0x999   : > { %v3637_v60 = vpop.eup %3636  ;;  %3642 = vrsqrt.f32 %v2178_v22 }
 0x99a   : > { %v2187_v42 = vmul.f32 %v3637_v60, %v2139_v46  ;;  %v2165_v25 = vpop.xlane.xlu0 %2164 }
 0x99b   : > { %v3639_v29 = vpop.eup %3638  ;;  %v2173_v44 = vmul.f32 0.03125, %v2165_v25 }
 0x99c   : > { %v2197_v53 = vmul.f32 %v2196_v34, %v2187_v42  ;;  %v2188_v37 = vmul.f32 %v3639_v29, %v4550_v47  ;;  %v2168_v35 = vpop.xlane.xlu1 %2167 }
 0x99d   : > { %v2179_v48 = vadd.f32 1e-06, %v2173_v44  ;;  %v2174_v62 = vmul.f32 0.03125, %v2168_v35 }
 0x99e   : > { %v2198_v39 = vmul.f32 %v2196_v34, %v2188_v37  ;;  %v2207_v52 = vadd.f32 %v2206_v45, %v2197_v53 }
 0x99f   : > { %3644 = vrsqrt.f32 %v2179_v48  ;;  %v2180_v8 = vadd.f32 1e-06, %v2174_v62 }
 0x9a0   : > { %v2208_v18 = vadd.f32 %v2206_v45, %v2198_v39 }
 0x9a1   : > { %v3641_v33 = vpop.eup %3640  ;;  %3646 = vrsqrt.f32 %v2180_v8 }
 0x9a2   : > { %v2189_v46 = vmul.f32 %v3641_v33, %v4557_v51  ;;  %v2213_v5 = vpack.c.bf16 %v2208_v18, %v2207_v52 }
 0x9a3   : > { %v3643_v2 = vpop.eup %3642 }
 0x9a4   : > { %v2190_v23 = vmul.f32 %v3643_v2, %v4560_v58  ;;  %3397 = vmatmul.mubr.msk.bf16.vlgmr.msra.gmra.mrb[48].mxu0 %vm752_vm4, %v2213_v5  ;;  %v2199_v0 = vmul.f32 %v2196_v34, %v2189_v46 }
 0x9a5   : > { %3400 = vmatprep.mubr.msk.bf16.mxu0 %vm3733_vm5, %v3732_v13  ;;  %3437 = vmatpush3.bf16.msra.mxu0 %v3526_v3 }
 0x9a6   : > { %v2200_v47 = vmul.f32 %v2196_v34, %v2190_v23  ;;  %v2209_v7 = vadd.f32 %v2206_v45, %v2199_v0  ;;  %3438 = vmatprep.subr.bf16.mxu0 %v3732_v13 }
 0x9a8   : > { %v2210_v6 = vadd.f32 %v2206_v45, %v2200_v47 }
 0x9a9   : > { %v3645_v55 = vpop.eup %3644  ;;  %3439 = vmatpush3.bf16.msra.mxu0 %v3527_v9 }
 0x9aa   : > { %v2191_v54 = vmul.f32 %v3645_v55, %v4569_v57  ;;  %v2214_v14 = vpack.c.bf16 %v2210_v6, %v2209_v7  ;;  %v3518_v57 = vld [vmem:[%s3866_s23] sm:$0xff]   ;;  %3452 = vmatprep.subr.bf16.mxu0 %v3732_v13 }
 0x9ab   : > { %v3647_v51 = vpop.eup %3646  ;;  %3409 = vmatpush3.bf16.msra.mxu1 %v3518_v57 }
 0x9ac   : > { %v2192_v20 = vmul.f32 %v3647_v51, %v4572_v11  ;;  %3401 = vmatmul.mubr.msk.bf16.gmra.mrb[52].mxu0 %vm752_vm4, %v2214_v14  ;;  %v2201_v58 = vmul.f32 %v2196_v34, %v2191_v54  ;;  %3410 = vmatprep.subr.bf16.mxu1 %v3732_v13  ;;  %v3519_v11 = vld [vmem:[%s3866_s23 + $0x8] sm:$0xff]  }
 0x9ad   : > { %3404 = vmatprep.mubr.msk.bf16.mxu0 %vm3733_vm5, %v3732_v13 }
 0x9ae   : > { %v2202_v24 = vmul.f32 %v2196_v34, %v2192_v20  ;;  %v2211_v59 = vadd.f32 %v2206_v45, %v2201_v58 }
 0x9af   : > { %3411 = vmatpush3.bf16.msra.mxu1 %v3519_v11 }
 0x9b0   : > { %v2212_v4 = vadd.f32 %v2206_v45, %v2202_v24  ;;  %3412 = vmatprep.subr.bf16.mxu1 %v3732_v13 }
 0x9b2   : > { %v2215_v10 = vpack.c.bf16 %v2212_v4, %v2211_v59 }
 0x9b3   : > { %3413 = vmatpush3.bf16.msra.mxu1 %v3520_v21 }
 0x9b4   : > { %3405 = vmatmul.mubr.msk.bf16.gmra.mrb[56].mxu0 %vm752_vm4, %v2215_v10  ;;  %3414 = vmatprep.subr.bf16.mxu1 %v3732_v13 }
 0x9b5   : > { %3440 = vmatprep.mubr.msk.bf16.mxu0 %vm3733_vm5, %v3732_v13 }
 0x9b7   : > { %3415 = vmatpush3.bf16.msra.mxu1 %v3521_v50 }
 0x9b8   : > { %3416 = vmatprep.subr.bf16.mxu1 %v3732_v13 }
 0x9bb   : > { %3417 = vmatpush3.bf16.msra.mxu1 %v3522_v26 }
 0x9bc   : > { %3418 = vmatprep.subr.bf16.mxu1 %v3732_v13 }
 0x9bf   : > { %3419 = vmatpush3.bf16.msra.mxu1 %v3523_v36 }
 0x9c0   : > { %3420 = vmatprep.subr.bf16.mxu1 %v3732_v13 }
 0x9c3   : > { %3421 = vmatpush3.bf16.msra.mxu1 %v3524_v61 }
 0x9c4   : > { %3422 = vmatprep.subr.bf16.mxu1 %v3732_v13 }
 0x9c7   : > { %3423 = vmatpush3.bf16.msra.mxu1 %v3525_v38 }
 0xa77   : > { %v2279_v17 = vpop.f32.mrb[48].mxu0 }
 0xa78   : > { %v2280_v28 = vadd.f32 %v2279_v17, %v2223_v16  ;;  %v3398_v30 = vpop.f32.mrb[49].mxu0 }
 0xa79   : > { %v2282_v22 = vpop.f32.mrb[50].mxu0 }
 0xa7a   : > { %v2302_v34 = vmul.f32 %v2280_v28, %v2280_v28  ;;  %v2283_v60 = vadd.f32 %v2282_v22, %v2223_v16  ;;  %v3399_v42 = vpop.f32.mrb[51].mxu0 }
 0xa7c   : > { %v2308_v25 = vmul.f32 %v2302_v34, %v2280_v28  ;;  %v2303_v29 = vmul.f32 %v2283_v60, %v2283_v60 }
 0xa7e   : > { %v2314_v44 = vmul.f32 0.044715, %v2308_v25  ;;  %v2309_v45 = vmul.f32 %v2303_v29, %v2283_v60 }
 0xa7f   : > { %v2287_v53 = vpop.f32.mrb[52].mxu0 }
 0xa80   : > { %v2320_v37 = vadd.f32 %v2314_v44, %v2280_v28  ;;  %v2315_v35 = vmul.f32 0.044715, %v2309_v45  ;;  %v2288_v48 = vadd.f32 %v2287_v53, %v2223_v16  ;;  %v3402_v62 = vpop.f32.mrb[53].mxu0 }
 0xa81   : > { %v2290_v39 = vpop.f32.mrb[54].mxu0 }
 0xa82   : > { %v2326_v8 = vmul.f32 0.7978846, %v2320_v37  ;;  %v2321_v52 = vadd.f32 %v2315_v35, %v2283_v60  ;;  %v2304_v32 = vmul.f32 %v2288_v48, %v2288_v48  ;;  %v2291_v18 = vadd.f32 %v2290_v39, %v2223_v16  ;;  %v3403_v33 = vpop.f32.mrb[55].mxu0 }
 0xa84   : > { %3648 = vtanh.f32 %v2326_v8  ;;  %v2327_v46 = vmul.f32 0.7978846, %v2321_v52  ;;  %v2310_v5 = vmul.f32 %v2304_v32, %v2288_v48  ;;  %v2305_v2 = vmul.f32 %v2291_v18, %v2291_v18 }
 0xa86   : > { %3650 = vtanh.f32 %v2327_v46  ;;  %v2316_v23 = vmul.f32 0.044715, %v2310_v5  ;;  %v2311_v0 = vmul.f32 %v2305_v2, %v2291_v18 }
 0xa87   : > { %v2295_v47 = vpop.f32.mrb[56].mxu0 }
 0xa88   : > { %v2322_v7 = vadd.f32 %v2316_v23, %v2288_v48  ;;  %v2317_v6 = vmul.f32 0.044715, %v2311_v0  ;;  %v2296_v55 = vadd.f32 %v2295_v47, %v2223_v16  ;;  %v3406_v54 = vpop.f32.mrb[57].mxu0 }
 0xa89   : > { %v2298_v14 = vpop.f32.mrb[58].mxu0 }
 0xa8a   : > { %v2328_v51 = vmul.f32 0.7978846, %v2322_v7  ;;  %v2323_v20 = vadd.f32 %v2317_v6, %v2291_v18  ;;  %v2306_v58 = vmul.f32 %v2296_v55, %v2296_v55  ;;  %v2299_v24 = vadd.f32 %v2298_v14, %v2223_v16  ;;  %v3407_v59 = vpop.f32.mrb[59].mxu0 }
 0xa8c   : > { %3652 = vtanh.f32 %v2328_v51  ;;  %v2329_v4 = vmul.f32 0.7978846, %v2323_v20  ;;  %v2312_v10 = vmul.f32 %v2306_v58, %v2296_v55  ;;  %v2307_v57 = vmul.f32 %v2299_v24, %v2299_v24 }
 0xa8e   : > { %v3649_v11 = vpop.eup %3648  ;;  %3654 = vtanh.f32 %v2329_v4  ;;  %v2318_v21 = vmul.f32 0.044715, %v2312_v10  ;;  %v2313_v50 = vmul.f32 %v2307_v57, %v2299_v24 }
 0xa8f   : > { %v2338_v26 = vadd.f32 1.0, %v3649_v11 }
 0xa90   : > { %v3651_v36 = vpop.eup %3650  ;;  %v2324_v61 = vadd.f32 %v2318_v21, %v2296_v55  ;;  %v2319_v38 = vmul.f32 0.044715, %v2313_v50 }
 0xa91   : > { %v2344_v3 = vmul.f32 0.5, %v2338_v26  ;;  %v2339_v9 = vadd.f32 1.0, %v3651_v36 }
 0xa92   : > { %v2330_v17 = vmul.f32 0.7978846, %v2324_v61  ;;  %v2325_v30 = vadd.f32 %v2319_v38, %v2299_v24  ;;  %v2636_v38 = vld [vmem:[%s3876_s30] sm:$0xf] }
 0xa93   : > { %v2345_v22 = vmul.f32 0.5, %v2339_v9  ;;  %v2350_v34 = vmul.f32 %v2344_v3, %v2280_v28  ;;  %v2652_v3 = vsel %vm2650_vm11, %v2636_v38, 0 }
 0xa94   : > { %3656 = vtanh.f32 %v2330_v17  ;;  %v2331_v16 = vmul.f32 0.7978846, %v2325_v30 }
 0xa95   : > { %v2351_v42 = vmul.f32 %v2345_v22, %v2283_v60 }
 0xa96   : > { %v3653_v25 = vpop.eup %3652  ;;  %3658 = vtanh.f32 %v2331_v16 }
 0xa97   : > { %v2356_v29 = vpack.c.bf16 %v2351_v42, %v2350_v34  ;;  %v2340_v44 = vadd.f32 1.0, %v3653_v25 }
 0xa98   : > { %v3655_v45 = vpop.eup %3654 }
 0xa99   : > { %3425 = vmatmul.mubr.bf16.vlgmr.msra.gmra.mrb[72].mxu1 %v2356_v29  ;;  %v2341_v53 = vadd.f32 1.0, %v3655_v45  ;;  %v2346_v37 = vmul.f32 0.5, %v2340_v44 }
 0xa9a   : > { %3428 = vmatprep.mubr.msk.bf16.mxu1 %vm3733_vm5, %v3732_v13 }
 0xa9b   : > { %v2347_v35 = vmul.f32 0.5, %v2341_v53  ;;  %v2352_v62 = vmul.f32 %v2346_v37, %v2288_v48  ;;  %v2378_v48 = vrot.slane %v4626_v63, %v844_v40 }
 0xa9d   : > { %v2353_v39 = vmul.f32 %v2347_v35, %v2291_v18 }
 0xa9e   : > { %v3657_v8 = vpop.eup %3656 }
 0xa9f   : > { %v2357_v52 = vpack.c.bf16 %v2353_v39, %v2352_v62  ;;  %v2342_v32 = vadd.f32 1.0, %v3657_v8 }
 0xaa0   : > { %v3659_v33 = vpop.eup %3658 }
 0xaa1   : > { %3429 = vmatmul.mubr.bf16.gmra.mrb[76].mxu1 %v2357_v52  ;;  %v2343_v28 = vadd.f32 1.0, %v3659_v33  ;;  %v2348_v60 = vmul.f32 0.5, %v2342_v32 }
 0xaa2   : > { %3432 = vmatprep.mubr.msk.bf16.mxu1 %vm3733_vm5, %v3732_v13 }
 0xaa3   : > { %v2349_v46 = vmul.f32 0.5, %v2343_v28  ;;  %v2354_v5 = vmul.f32 %v2348_v60, %v2296_v55 }
 0xaa5   : > { %v2355_v2 = vmul.f32 %v2349_v46, %v2299_v24 }
 0xaa7   : > { %v2358_v23 = vpack.c.bf16 %v2355_v2, %v2354_v5 }
 0xaa9   : > { %3433 = vmatmul.mubr.bf16.gmra.mrb[80].mxu1 %v2358_v23 }
 0xb6c   : > { %v2461_v18 = vpop.f32.mrb[72].mxu1 }
 0xb6d   : > { %v2462_v0 = vadd.f32 %v2461_v18, %v2378_v48  ;;  %v3426_v47 = vpop.f32.mrb[73].mxu1 }
 0xb6e   : > { %v2464_v7 = vpop.f32.mrb[74].mxu1 }
 0xb6f   : > { %v2465_v6 = vadd.f32 %v2464_v7, %v2378_v48  ;;  %v3427_v54 = vpop.f32.mrb[75].mxu1  ;;  %v4639_v14 = vadd.f32 %v2462_v0, %v4524_v31 }
 0xb71   : > { %v4642_v51 = vadd.f32 %v2465_v6, %v4526_v19 }
 0xb73   : > { %v2490_v55 = vpack.c.bf16 %v4642_v51, %v4639_v14 }
 0xb74   : > { %v2469_v20 = vpop.f32.mrb[76].mxu1 }
 0xb75   : > { %v2470_v58 = vadd.f32 %v2469_v20, %v2378_v48  ;;  %v3430_v24 = vpop.f32.mrb[77].mxu1  ;;  %3441 = vmatmul.mubr.msk.bf16.vlgmr.msra.gmra.mrb[60].mxu0 %vm752_vm4, %v2490_v55 }
 0xb76   : > { %v2472_v40 = vpop.f32.mrb[78].mxu1  ;;  %3444 = vmatprep.mubr.msk.bf16.mxu0 %vm3733_vm5, %v3732_v13  ;;  %3453 = vmatpush3.bf16.msra.mxu0 %v2652_v3 }
 0xb77   : > { %v2473_v59 = vadd.f32 %v2472_v40, %v2378_v48  ;;  %v3431_v4 = vpop.f32.mrb[79].mxu1  ;;  %v4650_v31 = vadd.f32 %v2470_v58, %v4532_v15 }
 0xb79   : > { %v4653_v19 = vadd.f32 %v2473_v59, %v4534_v12 }
 0xb7b   : > { %v2491_v10 = vpack.c.bf16 %v4653_v19, %v4650_v31 }
 0xb7c   : > { %v2477_v57 = vpop.f32.mrb[80].mxu1 }
 0xb7d   : > { %v2478_v11 = vadd.f32 %v2477_v57, %v2378_v48  ;;  %v3434_v21 = vpop.f32.mrb[81].mxu1  ;;  %3445 = vmatmul.mubr.msk.bf16.gmra.mrb[64].mxu0 %vm752_vm4, %v2491_v10 }
 0xb7e   : > { %v2480_v50 = vpop.f32.mrb[82].mxu1  ;;  %3448 = vmatprep.mubr.msk.bf16.mxu0 %vm3733_vm5, %v3732_v13 }
 0xb7f   : > { %v2481_v26 = vadd.f32 %v2480_v50, %v2378_v48  ;;  %v3435_v36 = vpop.f32.mrb[83].mxu1  ;;  %v4661_v15 = vadd.f32 %v2478_v11, %v4540_v41  ;;  %v2500_v41 = vrot.slane %v4626_v63, %v2195_v49 }
 0xb81   : > { %v4664_v12 = vadd.f32 %v2481_v26, %v4542_v43 }
 0xb83   : > { %v2492_v61 = vpack.c.bf16 %v4664_v12, %v4661_v15 }
 0xb85   : > { %3449 = vmatmul.mubr.msk.bf16.gmra.mrb[68].mxu0 %vm752_vm4, %v2492_v61 }
 0xb86   : > { %3454 = vmatprep.mubr.msk.bf16.mxu0 %vm3733_vm5, %v3732_v13 }
 0xc48   : > { %v2556_v9 = vpop.f32.mrb[60].mxu0 }
 0xc49   : > { %v2557_v17 = vadd.f32 %v2556_v9, %v2500_v41  ;;  %v3442_v43 = vpop.f32.mrb[61].mxu0 }
 0xc4a   : > { %v2559_v30 = vpop.f32.mrb[62].mxu0 }
 0xc4b   : > { %v2579_v22 = vmul.f32 %v2557_v17, %v2557_v17  ;;  %v2560_v16 = vadd.f32 %v2559_v30, %v2500_v41  ;;  %v3443_v34 = vpop.f32.mrb[63].mxu0 }
 0xc4d   : > { %v2585_v42 = vmul.f32 %v2579_v22, %v2557_v17  ;;  %v2580_v25 = vmul.f32 %v2560_v16, %v2560_v16 }
 0xc4f   : > { %v2591_v29 = vmul.f32 0.044715, %v2585_v42  ;;  %v2586_v44 = vmul.f32 %v2580_v25, %v2560_v16 }
 0xc50   : > { %v2564_v45 = vpop.f32.mrb[64].mxu0 }
 0xc51   : > { %v2597_v53 = vadd.f32 %v2591_v29, %v2557_v17  ;;  %v2592_v37 = vmul.f32 0.044715, %v2586_v44  ;;  %v2565_v35 = vadd.f32 %v2564_v45, %v2500_v41  ;;  %v3446_v62 = vpop.f32.mrb[65].mxu0 }
 0xc52   : > { %v2567_v39 = vpop.f32.mrb[66].mxu0 }
 0xc53   : > { %v2603_v8 = vmul.f32 0.7978846, %v2597_v53  ;;  %v2598_v52 = vadd.f32 %v2592_v37, %v2560_v16  ;;  %v2581_v49 = vmul.f32 %v2565_v35, %v2565_v35  ;;  %v2568_v32 = vadd.f32 %v2567_v39, %v2500_v41  ;;  %v3447_v33 = vpop.f32.mrb[67].mxu0 }
 0xc55   : > { %3660 = vtanh.f32 %v2603_v8  ;;  %v2604_v28 = vmul.f32 0.7978846, %v2598_v52  ;;  %v2587_v60 = vmul.f32 %v2581_v49, %v2565_v35  ;;  %v2582_v46 = vmul.f32 %v2568_v32, %v2568_v32 }
 0xc57   : > { %3662 = vtanh.f32 %v2604_v28  ;;  %v2593_v5 = vmul.f32 0.044715, %v2587_v60  ;;  %v2588_v2 = vmul.f32 %v2582_v46, %v2568_v32 }
 0xc58   : > { %v2572_v23 = vpop.f32.mrb[68].mxu0 }
 0xc59   : > { %v2599_v48 = vadd.f32 %v2593_v5, %v2565_v35  ;;  %v2594_v18 = vmul.f32 0.044715, %v2588_v2  ;;  %v2573_v0 = vadd.f32 %v2572_v23, %v2500_v41  ;;  %v3450_v47 = vpop.f32.mrb[69].mxu0 }
 0xc5a   : > { %v2575_v7 = vpop.f32.mrb[70].mxu0 }
 0xc5b   : > { %v2605_v6 = vmul.f32 0.7978846, %v2599_v48  ;;  %v2600_v54 = vadd.f32 %v2594_v18, %v2568_v32  ;;  %v2583_v55 = vmul.f32 %v2573_v0, %v2573_v0  ;;  %v2576_v20 = vadd.f32 %v2575_v7, %v2500_v41  ;;  %v3451_v58 = vpop.f32.mrb[71].mxu0 }
 0xc5d   : > { %3664 = vtanh.f32 %v2605_v6  ;;  %v2606_v24 = vmul.f32 0.7978846, %v2600_v54  ;;  %v2589_v40 = vmul.f32 %v2583_v55, %v2573_v0  ;;  %v2584_v59 = vmul.f32 %v2576_v20, %v2576_v20 }
 0xc5f   : > { %v3661_v4 = vpop.eup %3660  ;;  %3666 = vtanh.f32 %v2606_v24  ;;  %v2595_v10 = vmul.f32 0.044715, %v2589_v40  ;;  %v2590_v57 = vmul.f32 %v2584_v59, %v2576_v20 }
 0xc60   : > { %v2615_v11 = vadd.f32 1.0, %v3661_v4 }
 0xc61   : > { %v3663_v21 = vpop.eup %3662  ;;  %v2601_v50 = vadd.f32 %v2595_v10, %v2573_v0  ;;  %v2596_v26 = vmul.f32 0.044715, %v2590_v57 }
 0xc62   : > { %v2621_v36 = vmul.f32 0.5, %v2615_v11  ;;  %v2616_v61 = vadd.f32 1.0, %v3663_v21 }
 0xc63   : > { %v2607_v38 = vmul.f32 0.7978846, %v2601_v50  ;;  %v2602_v3 = vadd.f32 %v2596_v26, %v2576_v20 }
 0xc64   : > { %v2622_v9 = vmul.f32 0.5, %v2616_v61  ;;  %v2627_v43 = vmul.f32 %v2621_v36, %v2557_v17 }
 0xc65   : > { %3668 = vtanh.f32 %v2607_v38  ;;  %v2608_v41 = vmul.f32 0.7978846, %v2602_v3 }
 0xc66   : > { %v2628_v30 = vmul.f32 %v2622_v9, %v2560_v16 }
 0xc67   : > { %v3665_v22 = vpop.eup %3664  ;;  %3670 = vtanh.f32 %v2608_v41 }
 0xc68   : > { %v2633_v34 = vpack.c.bf16 %v2628_v30, %v2627_v43  ;;  %v2617_v42 = vadd.f32 1.0, %v3665_v22 }
 0xc69   : > { %v3667_v25 = vpop.eup %3666 }
 0xc6a   : > { %v2623_v29 = vmul.f32 0.5, %v2617_v42  ;;  %v2618_v44 = vadd.f32 1.0, %v3667_v25  ;;  %3455 = vmatmul.mubr.msk.bf16.vlgmr.msra.gmra.mrb[72].mxu0 %vm953_vm6, %v2633_v34 }
 0xc6b   : > { %3458 = vmatprep.mubr.msk.bf16.mxu0 %vm3733_vm5, %v3732_v13 }
 0xc6c   : > { %v2624_v45 = vmul.f32 0.5, %v2618_v44  ;;  %v2629_v53 = vmul.f32 %v2623_v29, %v2565_v35  ;;  %v2640_v35 = vrot.slane %v4626_v63, %v2205_v1 }
 0xc6e   : > { %v2630_v37 = vmul.f32 %v2624_v45, %v2568_v32 }
 0xc6f   : > { %v3669_v62 = vpop.eup %3668 }
 0xc70   : > { %v2619_v39 = vadd.f32 1.0, %v3669_v62  ;;  %v2634_v8 = vpack.c.bf16 %v2630_v37, %v2629_v53 }
 0xc71   : > { %v3671_v17 = vpop.eup %3670 }
 0xc72   : > { %v2625_v16 = vmul.f32 0.5, %v2619_v39  ;;  %v2620_v52 = vadd.f32 1.0, %v3671_v17  ;;  %3459 = vmatmul.mubr.msk.bf16.gmra.mrb[76].mxu0 %vm953_vm6, %v2634_v8 }
 0xc73   : > { %3462 = vmatprep.mubr.msk.bf16.mxu0 %vm3733_vm5, %v3732_v13 }
 0xc74   : > { %v2626_v49 = vmul.f32 0.5, %v2620_v52  ;;  %v2631_v33 = vmul.f32 %v2625_v16, %v2573_v0 }
 0xc76   : > { %v2632_v28 = vmul.f32 %v2626_v49, %v2576_v20 }
 0xc78   : > { %v2635_v60 = vpack.c.bf16 %v2632_v28, %v2631_v33 }
 0xc7a   : > { %3463 = vmatmul.mubr.msk.bf16.gmra.mrb[80].mxu0 %vm953_vm6, %v2635_v60 }
 0xd3d   : > { %v2688_v32 = vpop.f32.mrb[72].mxu0 }
 0xd3e   : > { %v2689_v46 = vadd.f32 %v2688_v32, %v2640_v35  ;;  %v3456_v5 = vpop.f32.mrb[73].mxu0 }
 0xd3f   : > { %v2691_v2 = vpop.f32.mrb[74].mxu0 }
 0xd40   : > { %v2711_v23 = vadd.f32 %v2689_v46, %v4639_v14  ;;  %v2692_v48 = vadd.f32 %v2691_v2, %v2640_v35  ;;  %v3457_v18 = vpop.f32.mrb[75].mxu0 }
 0xd41   : > { %v2797_v18 = vsub.s32 4, %v3974_v27 }
 0xd42   : > { %v2712_v13 = vadd.f32 %v2692_v48, %v4642_v51  ;;  %v2717_v0 = vsel %vm752_vm4, %v2711_v23, 0.0 }
 0xd43   : > { %2718 = vadd.xlane.f32.xlu0 %v2717_v0 }
 0xd44   : > { %v2720_v47 = vsel %vm752_vm4, %v2712_v13, 0.0 }
 0xd45   : > { %2721 = vadd.xlane.f32.xlu1 %v2720_v47  ;;  %v2696_v7 = vpop.f32.mrb[76].mxu0 }
 0xd46   : > { %v2697_v6 = vadd.f32 %v2696_v7, %v2640_v35  ;;  %v3460_v54 = vpop.f32.mrb[77].mxu0  ;;  %v2807_v7 = vsub.s32 5, %v3974_v27 }
 0xd47   : > { %v2699_v1 = vpop.f32.mrb[78].mxu0  ;;  %v2798_v54 = vrot.slane %v4521_v56, %v2797_v18 }
 0xd48   : > { %v2713_v63 = vadd.f32 %v2697_v6, %v4650_v31  ;;  %v2700_v55 = vadd.f32 %v2699_v1, %v2640_v35  ;;  %v3461_v20 = vpop.f32.mrb[79].mxu0 }
 0xd4a   : > { %v2714_v14 = vadd.f32 %v2700_v55, %v4653_v19  ;;  %v2723_v58 = vsel %vm752_vm4, %v2713_v63, 0.0 }
 0xd4b   : > { %2724 = vadd.xlane.f32.xlu0 %v2723_v58 }
 0xd4c   : > { %v2726_v51 = vsel %vm752_vm4, %v2714_v14, 0.0 }
 0xd4d   : > { %2727 = vadd.xlane.f32.xlu1 %v2726_v51  ;;  %v2704_v24 = vpop.f32.mrb[80].mxu0 }
 0xd4e   : > { %v2705_v40 = vadd.f32 %v2704_v24, %v2640_v35  ;;  %v3464_v59 = vpop.f32.mrb[81].mxu0 }
 0xd4f   : > { %v2707_v4 = vpop.f32.mrb[82].mxu0 }
 0xd50   : > { %v2715_v10 = vadd.f32 %v2705_v40, %v4661_v15  ;;  %v2708_v57 = vadd.f32 %v2707_v4, %v2640_v35  ;;  %v3465_v11 = vpop.f32.mrb[83].mxu0 }
 0xd52   : > { %v2716_v31 = vadd.f32 %v2708_v57, %v4664_v12  ;;  %v2729_v21 = vsel %vm752_vm4, %v2715_v10, 0.0 }
 0xd53   : > { %2730 = vadd.xlane.f32.xlu0 %v2729_v21 }
 0xd54   : > { %v2732_v19 = vsel %vm752_vm4, %v2716_v31, 0.0 }
 0xd55   : > { %2733 = vadd.xlane.f32.xlu1 %v2732_v19 }
 0xdd0   : > { %v2719_v50 = vpop.xlane.xlu0 %2718 }
 0xdd1   : > { %v2735_v26 = vmul.f32 0.03125, %v2719_v50 }
 0xdd2   : > { %v2722_v36 = vpop.xlane.xlu1 %2721 }
 0xdd3   : > { %v2741_v61 = vsub.f32 %v2711_v23, %v2735_v26  ;;  %v2736_v38 = vmul.f32 0.03125, %v2722_v36 }
 0xdd5   : > { %v2742_v3 = vsub.f32 %v2712_v13, %v2736_v38  ;;  %v2747_v9 = vmul.f32 %v2741_v61, %v2741_v61 }
 0xdd7   : > { %v2753_v41 = vsel %vm752_vm4, %v2747_v9, 0.0  ;;  %v2748_v15 = vmul.f32 %v2742_v3, %v2742_v3 }
 0xdd8   : > { %v2725_v43 = vpop.xlane.xlu0 %2724  ;;  %2754 = vadd.xlane.f32.xlu0 %v2753_v41 }
 0xdd9   : > { %v2737_v30 = vmul.f32 0.03125, %v2725_v43  ;;  %v2756_v12 = vsel %vm752_vm4, %v2748_v15, 0.0 }
 0xdda   : > { %v2728_v22 = vpop.xlane.xlu1 %2727  ;;  %2757 = vadd.xlane.f32.xlu1 %v2756_v12 }
 0xddb   : > { %v2743_v34 = vsub.f32 %v2713_v63, %v2737_v30  ;;  %v2738_v42 = vmul.f32 0.03125, %v2728_v22  ;;  %v2808_v63 = vrot.slane %v4521_v56, %v2807_v7  ;;  %v3691_v22 = vld [vmem:[%s4777_s16] sm:$0xff] (!%p3097_p5)  }
 0xddd   : > { %v2744_v25 = vsub.f32 %v2714_v14, %v2738_v42  ;;  %v2749_v29 = vmul.f32 %v2743_v34, %v2743_v34  ;;  %v3692_v42 = vld [vmem:[%s4777_s16 + $0x8] sm:$0xff] (!%p3097_p5)  }
 0xddf   : > { %v2759_v44 = vsel %vm752_vm4, %v2749_v29, 0.0  ;;  %v2750_v45 = vmul.f32 %v2744_v25, %v2744_v25 }
 0xde0   : > { %2760 = vadd.xlane.f32.xlu0 %v2759_v44  ;;  %v2731_v53 = vpop.xlane.xlu0 %2730 }
 0xde1   : > { %v2739_v37 = vmul.f32 0.03125, %v2731_v53  ;;  %v2762_v62 = vsel %vm752_vm4, %v2750_v45, 0.0  ;;  %v3098_v45 = vld [vmem:[%s4778_s5] ss:$0 sm:$0xff] (!%p3097_p5) }
 0xde2   : > { %2763 = vadd.xlane.f32.xlu1 %v2762_v62  ;;  %v2734_v39 = vpop.xlane.xlu1 %2733 }
 0xde3   : > { %v2745_v8 = vsub.f32 %v2715_v10, %v2739_v37  ;;  %v2740_v17 = vmul.f32 0.03125, %v2734_v39 }
 0xde5   : > { %v2746_v16 = vsub.f32 %v2716_v31, %v2740_v17  ;;  %v2751_v52 = vmul.f32 %v2745_v8, %v2745_v8 }
 0xde7   : > { %v2765_v49 = vsel %vm752_vm4, %v2751_v52, 0.0  ;;  %v2752_v33 = vmul.f32 %v2746_v16, %v2746_v16 }
 0xde8   : > { %2766 = vadd.xlane.f32.xlu0 %v2765_v49 }
 0xde9   : > { %v2768_v28 = vsel %vm752_vm4, %v2752_v33, 0.0 }
 0xdea   : > { %2769 = vadd.xlane.f32.xlu1 %v2768_v28 }
 0xe65   : > { %v2755_v60 = vpop.xlane.xlu0 %2754 }
 0xe66   : > { %v2771_v35 = vmul.f32 0.03125, %v2755_v60 }
 0xe67   : > { %v2758_v32 = vpop.xlane.xlu1 %2757 }
 0xe68   : > { %v2777_v46 = vadd.f32 1e-05, %v2771_v35  ;;  %v2772_v5 = vmul.f32 0.03125, %v2758_v32 }
 0xe6a   : > { %3672 = vrsqrt.f32 %v2777_v46  ;;  %v2778_v2 = vadd.f32 1e-05, %v2772_v5 }
 0xe6c   : > { %3674 = vrsqrt.f32 %v2778_v2 }
 0xe6d   : > { %v2761_v23 = vpop.xlane.xlu0 %2760 }
 0xe6e   : > { %v2773_v48 = vmul.f32 0.03125, %v2761_v23 }
 0xe6f   : > { %v2764_v13 = vpop.xlane.xlu1 %2763 }
 0xe70   : > { %v2779_v0 = vadd.f32 1e-05, %v2773_v48  ;;  %v2774_v47 = vmul.f32 0.03125, %v2764_v13 }
 0xe72   : > { %3676 = vrsqrt.f32 %v2779_v0  ;;  %v2780_v6 = vadd.f32 1e-05, %v2774_v47 }
 0xe74   : > { %v3673_v1 = vpop.eup %3672  ;;  %3678 = vrsqrt.f32 %v2780_v6 }
 0xe75   : > { %v2789_v55 = vmul.f32 %v3673_v1, %v2741_v61  ;;  %v2767_v20 = vpop.xlane.xlu0 %2766 }
 0xe76   : > { %v3675_v14 = vpop.eup %3674  ;;  %v2775_v58 = vmul.f32 0.03125, %v2767_v20 }
 0xe77   : > { %v2799_v51 = vmul.f32 %v2798_v54, %v2789_v55  ;;  %v2790_v24 = vmul.f32 %v3675_v14, %v2742_v3  ;;  %v2770_v40 = vpop.xlane.xlu1 %2769 }
 0xe78   : > { %v2781_v59 = vadd.f32 1e-05, %v2775_v58  ;;  %v2776_v4 = vmul.f32 0.03125, %v2770_v40 }
 0xe79   : > { %v2809_v10 = vadd.f32 %v2808_v63, %v2799_v51  ;;  %v2800_v57 = vmul.f32 %v2798_v54, %v2790_v24 }
 0xe7a   : > { %3680 = vrsqrt.f32 %v2781_v59  ;;  %v2782_v27 = vadd.f32 1e-05, %v2776_v4 }
 0xe7b   : > { %2815 = vst.msk [vmem:[#allocation2] sm:$0xff] %vm752_vm4, %v2809_v10  ;;  %v2810_v11 = vadd.f32 %v2808_v63, %v2800_v57 }
 0xe7c   : > { %v3677_v31 = vpop.eup %3676  ;;  %3682 = vrsqrt.f32 %v2782_v27 }
 0xe7d   : > { %2816 = vst.msk [vmem:[#allocation2 + $0x8] sm:$0xff] %vm752_vm4, %v2810_v11  ;;  %v2791_v56 = vmul.f32 %v3677_v31, %v2743_v34  ;;  %v3748_v34 = vmov (!%p3097_p5), 0.0  }
 0xe7e   : > { %v3679_v21 = vpop.eup %3678  ;;  %3466 = vmatprep.subr.bf16.mxu0 (!%p3097_p5), %v3748_v34  ;;  %3470 = vmatprep.mubr.msk.bf16.mxu0 (!%p3097_p5), %vm3749_vm12, %v3748_v34 }
 0xe7f   : > { %v2801_v19 = vmul.f32 %v2798_v54, %v2791_v56  ;;  %v2792_v50 = vmul.f32 %v3679_v21, %v2744_v25  ;;  %3467 = vmatpush3.bf16.msra.mxu0 (!%p3097_p5), %v3691_v22 }
 0xe80   : > { %3468 = vmatprep.subr.bf16.mxu0 (!%p3097_p5), %v3748_v34 }
 0xe81   : > { %v2811_v26 = vadd.f32 %v2808_v63, %v2801_v19  ;;  %v2802_v36 = vmul.f32 %v2798_v54, %v2792_v50 }
 0xe83   : > { %2817 = vst.msk [vmem:[#allocation2 + $0x10] sm:$0xff] %vm752_vm4, %v2811_v26  ;;  %v2812_v61 = vadd.f32 %v2808_v63, %v2802_v36  ;;  %3469 = vmatpush3.bf16.msra.mxu0 (!%p3097_p5), %v3692_v42 }
 0xe84   : > { %v3681_v38 = vpop.eup %3680 }
 0xe85   : > { %2818 = vst.msk [vmem:[#allocation2 + $0x18] sm:$0xff] %vm752_vm4, %v2812_v61  ;;  %v2793_v3 = vmul.f32 %v3681_v38, %v2745_v8  ;;  %v2826_v25 = vrot.slane (!%p3097_p5), %v2812_v61, 7 }
 0xe86   : > { %v3683_v9 = vpop.eup %3682 }
 0xe87   : > { %v2803_v41 = vmul.f32 %v2798_v54, %v2793_v3  ;;  %v2794_v15 = vmul.f32 %v3683_v9, %v2746_v16  ;;  %2824 = sbr.rel (%p3097_p5) target bundleno = 3937 (0xf61), region = 88  ;;  %v2829_v29 = vsel (!%p3097_p5), %vm2828_vm13, %v2809_v10, %v2826_v25 }
 0xe88   : > { %v2830_v44 = vpack.c.bf16 (!%p3097_p5), %v2829_v29, %v2829_v29 }
 0xe89   : > { %v2813_v43 = vadd.f32 %v2808_v63, %v2803_v41  ;;  %v2804_v30 = vmul.f32 %v2798_v54, %v2794_v15 }
 0xe8a   : > { %3471 = vmatmul.mubr.msk.bf16.vlgmr.msra.gmra.mrb[0].mxu0 (!%p3097_p5), %vm752_vm4, %v2830_v44 }
 0xe8b   : > { %2819 = vst.msk [vmem:[#allocation2 + $0x20] sm:$0xff] %vm752_vm4, %v2813_v43  ;;  %v2814_v12 = vadd.f32 %v2808_v63, %v2804_v30 }
 0xe8d   : > { %2820 = vst.msk [vmem:[#allocation2 + $0x28] sm:$0xff] %vm752_vm4, %v2814_v12 }
 0xf5d   : > { %v2891_v53 = vpop.f32.mrb[0].mxu0 }
 0xf5e   : > { %v2892_v37 = vadd.f32 %v3098_v45, %v2891_v53  ;;  %v3472_v62 = vpop.f32.mrb[1].mxu0 }
 0xf5f   : > { %v2894_v39 = vpop.f32.mrb[2].mxu0 }
 0xf60   : > { %2898 = vst.msk [vmem:[#allocation4] sm:$0x3] %vm2897_vm14, %v2892_v37  ;;  %v3473_v8 = vpop.f32.mrb[3].mxu0 }
 0xf61 PF: > { %p3478_p6 = scmp.eq.s32.totalorder %s3837_s19, 1  ;;  %s3750_s6 = smov [#allocation4]  }
 0xf62   : > { %s2906_s8 = sshll.u32 %s3750_s6, 4  ;;  %s2907_s8 = int_to_ptr.vmem [resolvable:$true] %s2906_s8 }
 0xf63   : > { %s3693_s9 = scalar_lea.vmem %s2907_s8, 32  ;;  %p3700_p10 = scmp.lt.s32.totalorder %s2907_s8, %s2907_s8 }
 0xf64   : > { %p3694_p7 = scmp.ne.s32.totalorder %s2907_s8, %s3693_s9  ;;  %p3701_p11 = scmp.lt.s32.totalorder %s3693_s9, %s3693_s9 }
 0xf66   : > { %p3695_p8 = pnand %p3694_p7, %p3478_p6  ;;  %p3702_p12 = por %p3701_p11, %p3700_p10 }
 0xf68   : > { %p3696_p9 = pneg %p3695_p8 }
 0xf6a   : > { %p3703_p13 = pnand %p3702_p12, %p3696_p9 }
 0xf6c   : > { %3706 = shalt.err (!%p3703_p13)
}
 0xf6d   : > { %s4779_s22 = sld [smem:[#allocation12_spill]] }
 0xf73   : > { %s3707_s27 = scalar_lea.hbm %s4779_s22, 32 }
 0xf74   : > { %p3708_p0 = scmp.ne.s32.totalorder %s4779_s22, %s3707_s27  ;;  %p3713_p3 = scmp.lt.u32.totalorder %s3707_s27, %s4779_s22 }
 0xf76   : > { %p3709_p1 = pnand %p3708_p0, %p3478_p6 }
 0xf78   : > { %p3710_p2 = pneg %p3709_p1 }
 0xf7a   : > { %p3715_p4 = pnand %p3713_p3, %p3710_p2 }
 0xf7c   : > { %3718 = shalt.err (!%p3715_p4)
}
 0xf7d   : > { %3475 = dma.vmem_to_hbm [thread:$0]  (%p3478_p6), %s2907_s8, 32, %s4779_s22, [#allocation5]  }
 0xf7e   : > { %3724 = dma.done.wait (%p3478_p6), [#allocation5], 32  }
 0xf7f   : > { %3726 = vsyncadd (%p3478_p6), [#allocation5], 4294967264 }
 0xf80 PF: > { %s4780_s23 = sld [smem:[#allocation7_spill]] }
 0xf86   : > { %s26_s18 = sadd.s32 1, %s4780_s23  }
 0xf87   : > { %p23_p5 = scmp.ge.s32.totalorder %s26_s18, 4  }
 0xf89   :  { %25 = sbr.rel (!%p23_p5) target bundleno = 7 (0x7), region = 133 }
 0xf90   :  { %2919 = vsyncpa [#allocation5], 1 }
 0xf91   :  { %2921 = vsyncpa [#allocation5 + $0x1], 1 }

</bundles_post_ra>
